<compile_context>
chip_gen: v7x
topology: tpu7x:2x2x1
jax: 0.10.0
libtpu: 0.0.40
codegen_flags: <defaults>
</compile_context>

<pallas_src>
import math
from functools import partial

import jax
import jax.numpy as jnp
from jax.experimental import pallas as pl
from jax.experimental.pallas import tpu as pltpu

LN_EPS = 1e-5


# ---------------------------------------------------------------------------
# Shared math helpers (pure jnp; used by both the kernels and the reference)
# ---------------------------------------------------------------------------

def _layer_norm(x, w, b):
    """x: (..., E); w, b: (1, E)."""
    mean = jnp.mean(x, axis=-1, keepdims=True)
    cent = x - mean
    var = jnp.mean(cent * cent, axis=-1, keepdims=True)
    return cent * jax.lax.rsqrt(var + LN_EPS) * w + b


def _gelu(x):
    # TODO(synk): torch nn.GELU() defaults to the exact erf form; the tanh
    # approximation is used (guaranteed Mosaic/EUP lowering).  The in-script
    # reference uses the same approximation.
    c = math.sqrt(2.0 / math.pi)
    return 0.5 * x * (1.0 + jnp.tanh(c * (x + 0.044715 * x * x * x)))


def _mlp(xn, w1, b1, w2, b2):
    h = jnp.dot(xn, w1, preferred_element_type=jnp.float32) + b1
    h = _gelu(h)
    return jnp.dot(h, w2, preferred_element_type=jnp.float32) + b2


# ---------------------------------------------------------------------------
# In-kernel multi-head attention on a flattened (B*T, E) slab
# ---------------------------------------------------------------------------

def _mha_flat(xn, *, batch, seq, heads, wq, wk, wv, wo, mask=None, biases=None):
    """Multi-head self-attention.

    xn: (batch*seq, E).  QKV and the output projection are full-width GEMMs on
    the whole slab (M = batch*seq).  Scores / softmax / PV are computed with
    heads batched into a single contraction per batch element; head outputs
    are re-assembled in registers (lane concat), never through scratch.
    """
    M, E = xn.shape
    e = E // heads
    scale = 1.0 / math.sqrt(e)

    q = jnp.dot(xn, wq, preferred_element_type=jnp.float32)
    k = jnp.dot(xn, wk, preferred_element_type=jnp.float32)
    v = jnp.dot(xn, wv, preferred_element_type=jnp.float32)
    if biases is not None:
        q = q + biases[0]
        k = k + biases[1]
        v = v + biases[2]

    def split_heads(z):                       # (seq, E) -> (heads, seq, e)
        return jnp.transpose(z.reshape(seq, heads, e), (1, 0, 2))

    per_batch = []
    for b in range(batch):                    # static unroll; batch is small
        rows = slice(b * seq, (b + 1) * seq)
        qh = split_heads(q[rows])
        kh = split_heads(k[rows])
        vh = split_heads(v[rows])

        # Batched scores over all heads at once: (heads, seq, seq)
        s = jnp.einsum("hqe,hke->hqk", qh, kh,
                       preferred_element_type=jnp.float32) * scale
        if mask is not None:
            s = s + mask                      # (seq, seq) broadcast over heads

        # One batched softmax (exact division; no approximate reciprocal).
        m = jnp.max(s, axis=-1, keepdims=True)
        p = jnp.exp(s - m)
        p = p / jnp.sum(p, axis=-1, keepdims=True)

        av = jnp.einsum("hqk,hke->hqe", p, vh,
                        preferred_element_type=jnp.float32)   # (heads, seq, e)

        # Assemble (seq, heads*e) in registers: lane-axis concat of head slabs.
        per_batch.append(jnp.concatenate([av[h] for h in range(heads)], axis=-1))

    a = jnp.concatenate(per_batch, axis=0)    # (M, E)
    out = jnp.dot(a, wo, preferred_element_type=jnp.float32)
    if biases is not None:
        out = out + biases[3]
    return out


# ---------------------------------------------------------------------------
# Fused layer-stack kernels (grid axis = layer, activation carried in o_ref)
# ---------------------------------------------------------------------------

def _encoder_stack_kernel(x_ref, ln0w_ref, ln0b_ref,
                          wq_ref, wk_ref, wv_ref, wo_ref,
                          ln1w_ref, ln1b_ref,
                          w1_ref, b1_ref, w2_ref, b2_ref,
                          o_ref, *, heads, batch, seq):
    layer = pl.program_id(0)

    @pl.when(layer == 0)
    def _():
        o_ref[...] = x_ref[...]

    x = o_ref[...]                                            # (B*T, E) carry

    # Self-attention (the reference encoder runs with mask=None).
    xn = _layer_norm(x, ln0w_ref[0], ln0b_ref[0])
    x = x + _mha_flat(xn, batch=batch, seq=seq, heads=heads,
                      wq=wq_ref[0], wk=wk_ref[0], wv=wv_ref[0], wo=wo_ref[0],
                      mask=None)

    # MLP.
    xn = _layer_norm(x, ln1w_ref[0], ln1b_ref[0])
    x = x + _mlp(xn, w1_ref[0], b1_ref[0], w2_ref[0], b2_ref[0])

    o_ref[...] = x.astype(o_ref.dtype)


def _decoder_stack_kernel(x_ref, mask_ref,
                          ln0w_ref, ln0b_ref,
                          wq_ref, wk_ref, wv_ref, wo_ref,
                          ln1w_ref, ln1b_ref,
                          cwq_ref, cbq_ref, cwk_ref, cbk_ref,
                          cwv_ref, cbv_ref, cwo_ref, cbo_ref,
                          ln2w_ref, ln2b_ref,
                          w1_ref, b1_ref, w2_ref, b2_ref,
                          o_ref, *, heads, batch, seq):
    layer = pl.program_id(0)

    @pl.when(layer == 0)
    def _():
        o_ref[...] = x_ref[...]

    x = o_ref[...]                                            # (B*T, E) carry
    mask = mask_ref[...]                                      # (T, T) shared

    # Masked self-attention (bias-free fused-QKV Attention module).
    xn = _layer_norm(x, ln0w_ref[0], ln0b_ref[0])
    x = x + _mha_flat(xn, batch=batch, seq=seq, heads=heads,
                      wq=wq_ref[0], wk=wk_ref[0], wv=wv_ref[0], wo=wo_ref[0],
                      mask=mask)

    # "Cross"-attention: the reference CrossAttention computes q, k AND v from
    # its own (decoder-side) input and never reads the encoder output y, so
    # this is a biased self-attention with mask=None; reproduced faithfully.
    xn = _layer_norm(x, ln1w_ref[0], ln1b_ref[0])
    x = x + _mha_flat(xn, batch=batch, seq=seq, heads=heads,
                      wq=cwq_ref[0], wk=cwk_ref[0], wv=cwv_ref[0], wo=cwo_ref[0],
                      mask=None,
                      biases=(cbq_ref[0], cbk_ref[0], cbv_ref[0], cbo_ref[0]))

    # MLP.
    xn = _layer_norm(x, ln2w_ref[0], ln2b_ref[0])
    x = x + _mlp(xn, w1_ref[0], b1_ref[0], w2_ref[0], b2_ref[0])

    o_ref[...] = x.astype(o_ref.dtype)


# ---------------------------------------------------------------------------
# pallas_call wrappers
# ---------------------------------------------------------------------------

def _full_spec(shape):
    nd = len(shape)
    return pl.BlockSpec(shape, lambda l, nd=nd: (0,) * nd)


def _layer_spec(shape):
    nd = len(shape)
    return pl.BlockSpec((1,) + shape, lambda l, nd=nd: (l,) + (0,) * nd)


_COMPILER_PARAMS = pltpu.CompilerParams(
    dimension_semantics=("arbitrary",),          # layer axis carries state
    vmem_limit_bytes=32 * 1024 * 1024,
)


def encoder_stack_forward(x_flat, p, *, heads, batch, seq, layers):
    M, E = x_flat.shape
    assert M == batch * seq
    FF = p["w1_t"].shape[-1]
    kernel = partial(_encoder_stack_kernel, heads=heads, batch=batch, seq=seq)
    return pl.pallas_call(
        kernel,
        out_shape=jax.ShapeDtypeStruct((M, E), x_flat.dtype),
        grid=(layers,),
        in_specs=[
            _full_spec((M, E)),                                 # x (carry seed)
            _layer_spec((1, E)), _layer_spec((1, E)),           # ln0 w, b
            _layer_spec((E, E)), _layer_spec((E, E)),           # wq, wk
            _layer_spec((E, E)), _layer_spec((E, E)),           # wv, wo
            _layer_spec((1, E)), _layer_spec((1, E)),           # ln1 w, b
            _layer_spec((E, FF)), _layer_spec((1, FF)),         # w1, b1
            _layer_spec((FF, E)), _layer_spec((1, E)),          # w2, b2
        ],
        out_specs=_full_spec((M, E)),
        compiler_params=_COMPILER_PARAMS,
    )(x_flat,
      p["ln0_w"], p["ln0_b"],
      p["wq_t"], p["wk_t"], p["wv_t"], p["wo_t"],
      p["ln1_w"], p["ln1_b"],
      p["w1_t"], p["b1"], p["w2_t"], p["b2"])


def decoder_stack_forward(x_flat, mask, p, *, heads, batch, seq, layers):
    M, E = x_flat.shape
    assert M == batch * seq
    FF = p["w1_t"].shape[-1]
    T = mask.shape[0]
    kernel = partial(_decoder_stack_kernel, heads=heads, batch=batch, seq=seq)
    return pl.pallas_call(
        kernel,
        out_shape=jax.ShapeDtypeStruct((M, E), x_flat.dtype),
        grid=(layers,),
        in_specs=[
            _full_spec((M, E)),                                 # x (carry seed)
            _full_spec((T, T)),                                 # shared mask
            _layer_spec((1, E)), _layer_spec((1, E)),           # ln0 w, b
            _layer_spec((E, E)), _layer_spec((E, E)),           # wq, wk
            _layer_spec((E, E)), _layer_spec((E, E)),           # wv, wo
            _layer_spec((1, E)), _layer_spec((1, E)),           # ln1 w, b
            _layer_spec((E, E)), _layer_spec((1, E)),           # cwq, cbq
            _layer_spec((E, E)), _layer_spec((1, E)),           # cwk, cbk
            _layer_spec((E, E)), _layer_spec((1, E)),           # cwv, cbv
            _layer_spec((E, E)), _layer_spec((1, E)),           # cwo, cbo
            _layer_spec((1, E)), _layer_spec((1, E)),           # ln2 w, b
            _layer_spec((E, FF)), _layer_spec((1, FF)),         # w1, b1
            _layer_spec((FF, E)), _layer_spec((1, E)),          # w2, b2
        ],
        out_specs=_full_spec((M, E)),
        compiler_params=_COMPILER_PARAMS,
    )(x_flat, mask,
      p["ln0_w"], p["ln0_b"],
      p["wq_t"], p["wk_t"], p["wv_t"], p["wo_t"],
      p["ln1_w"], p["ln1_b"],
      p["cwq_t"], p["cbq"], p["cwk_t"], p["cbk"],
      p["cwv_t"], p["cbv"], p["cwo_t"], p["cbo"],
      p["ln2_w"], p["ln2_b"],
      p["w1_t"], p["b1"], p["w2_t"], p["b2"])


def transformer_forward(enc, dec, xs, xt, mask, *, heads, layers):
    B, T_src, E = xs.shape
    _, T_tgt, _ = xt.shape
    # Encoder (computed as in the reference; its output is never consumed by
    # the reference CrossAttention, which reads only the decoder stream).
    _y = encoder_stack_forward(xs.reshape(B * T_src, E), enc,
                               heads=heads, batch=B, seq=T_src, layers=layers)
    out = decoder_stack_forward(xt.reshape(B * T_tgt, E), mask, dec,
                                heads=heads, batch=B, seq=T_tgt, layers=layers)
    return out.reshape(B, T_tgt, E)


# ---------------------------------------------------------------------------
# Pure-JAX reference mirroring the PyTorch module
# ---------------------------------------------------------------------------

def _mha_ref(x, heads, wq_t, wk_t, wv_t, wo_t, mask=None, biases=None):
    B, T, E = x.shape
    e = E // heads
    q, k, v = x @ wq_t, x @ wk_t, x @ wv_t
    if biases is not None:
        q, k, v = q + biases[0], k + biases[1], v + biases[2]

    def split(z):
        return z.reshape(B, T, heads, e).transpose(0, 2, 1, 3)

    q, k, v = split(q), split(k), split(v)
    s = jnp.einsum("bhqe,bhke->bhqk", q, k) / math.sqrt(e)
    if mask is not None:
        s = s + mask
    p = jax.nn.softmax(s, axis=-1)
    a = jnp.einsum("bhqk,bhke->bhqe", p, v).transpose(0, 2, 1, 3).reshape(B, T, E)
    out = a @ wo_t
    if biases is not None:
        out = out + biases[3]
    return out


def _mlp_ref(x, w1_t, b1, w2_t, b2):
    return _gelu(x @ w1_t + b1) @ w2_t + b2


def encoder_stack_ref(p, x, *, heads, layers):
    for l in range(layers):
        xn = _layer_norm(x, p["ln0_w"][l], p["ln0_b"][l])
        x = x + _mha_ref(xn, heads, p["wq_t"][l], p["wk_t"][l],
                         p["wv_t"][l], p["wo_t"][l])
        xn = _layer_norm(x, p["ln1_w"][l], p["ln1_b"][l])
        x = x + _mlp_ref(xn, p["w1_t"][l], p["b1"][l], p["w2_t"][l], p["b2"][l])
    return x


def decoder_stack_ref(p, x, mask, *, heads, layers):
    for l in range(layers):
        xn = _layer_norm(x, p["ln0_w"][l], p["ln0_b"][l])
        x = x + _mha_ref(xn, heads, p["wq_t"][l], p["wk_t"][l],
                         p["wv_t"][l], p["wo_t"][l], mask=mask)
        xn = _layer_norm(x, p["ln1_w"][l], p["ln1_b"][l])
        x = x + _mha_ref(xn, heads, p["cwq_t"][l], p["cwk_t"][l],
                         p["cwv_t"][l], p["cwo_t"][l],
                         biases=(p["cbq"][l], p["cbk"][l], p["cbv"][l], p["cbo"][l]))
        xn = _layer_norm(x, p["ln2_w"][l], p["ln2_b"][l])
        x = x + _mlp_ref(xn, p["w1_t"][l], p["b1"][l], p["w2_t"][l], p["b2"][l])
    return x


def transformer_ref(enc, dec, xs, xt, mask, *, heads, layers):
    y = encoder_stack_ref(enc, xs, heads=heads, layers=layers)
    del y  # the reference CrossAttention never consumes the encoder output
    return decoder_stack_ref(dec, xt, mask, heads=heads, layers=layers)


# ---------------------------------------------------------------------------
# Parameter init (matches the torch module's parameterization, stacked over L)
# ---------------------------------------------------------------------------

class _KeyGen:
    def __init__(self, key):
        self._key = key

    def __call__(self):
        self._key, sub = jax.random.split(self._key)
        return sub


def _init_stack(kg, E, L, cross):
    FF = 3 * E
    inv_e = 1.0 / math.sqrt(E)
    inv_ff = 1.0 / math.sqrt(FF)

    def n(shape, s):
        return s * jax.random.normal(kg(), shape, jnp.float32)

    p = {
        "ln0_w": 1.0 + 0.1 * n((L, 1, E), 1.0), "ln0_b": 0.1 * n((L, 1, E), 1.0),
        "ln1_w": 1.0 + 0.1 * n((L, 1, E), 1.0), "ln1_b": 0.1 * n((L, 1, E), 1.0),
        "w1_t": n((L, E, FF), inv_e), "b1": n((L, 1, FF), inv_e),
        "w2_t": n((L, FF, E), inv_ff), "b2": n((L, 1, E), inv_ff),
    }
    # Attention: fused nn.Linear(E, 3E, bias=False); the 3E output dim factors
    # as (n=3, heads, e) with n outermost -> rows [0:E]=Q, [E:2E]=K, [2E:3E]=V.
    w_qkv = n((L, 3 * E, E), inv_e)
    w_o = n((L, E, E), inv_e)
    p["wq_t"] = jnp.swapaxes(w_qkv[:, 0:E, :], 1, 2)
    p["wk_t"] = jnp.swapaxes(w_qkv[:, E:2 * E, :], 1, 2)
    p["wv_t"] = jnp.swapaxes(w_qkv[:, 2 * E:, :], 1, 2)
    p["wo_t"] = jnp.swapaxes(w_o, 1, 2)
    if cross:
        # CrossAttention: four nn.Linear(E, E) layers WITH bias (q, k, v, o).
        p["ln2_w"] = 1.0 + 0.1 * n((L, 1, E), 1.0)
        p["ln2_b"] = 0.1 * n((L, 1, E), 1.0)
        for name in ("q", "k", "v", "o"):
            p[f"cw{name}_t"] = jnp.swapaxes(n((L, E, E), inv_e), 1, 2)
            p[f"cb{name}"] = n((L, 1, E), inv_e)
    return p


if __name__ == "__main__":
    B, T_SRC, T_TGT, E, HEADS, LAYERS = 2, 16, 8, 32, 4, 2

    key = jax.random.PRNGKey(0)
    k_params, k_xs, k_xt = jax.random.split(key, 3)

    kg = _KeyGen(k_params)
    enc = _init_stack(kg, E, LAYERS, cross=False)
    dec = _init_stack(kg, E, LAYERS, cross=True)

    xs = jax.random.normal(k_xs, (B, T_SRC, E), dtype=jnp.float32)
    xt = jax.random.normal(k_xt, (B, T_TGT, E), dtype=jnp.float32)

    # Additive float mask for the decoder self-attention (causal), shared
    # across batch and heads: (T_TGT, T_TGT).
    causal = jnp.tril(jnp.ones((T_TGT, T_TGT), dtype=bool))
    mask = jnp.where(causal, 0.0, -1e9).astype(jnp.float32)

    # Full module forward (Pallas) vs. pure-JAX reference.
    fwd = jax.jit(partial(transformer_forward, heads=HEADS, layers=LAYERS))
    out = jax.block_until_ready(fwd(enc, dec, xs, xt, mask))
    ref = transformer_ref(enc, dec, xs, xt, mask, heads=HEADS, layers=LAYERS)
    assert out.shape == (B, T_TGT, E)
    assert jnp.allclose(out, ref, atol=5e-3, rtol=5e-3), "decoder mismatch vs. reference"

    # Also exercise + check the encoder-stack kernel explicitly (the module
    # computes it even though its CrossAttention never consumes it).
    enc_fn = jax.jit(partial(encoder_stack_forward, heads=HEADS, batch=B,
                             seq=T_SRC, layers=LAYERS))
    y_kernel = jax.block_until_ready(
        enc_fn(xs.reshape(B * T_SRC, E), enc)).reshape(B, T_SRC, E)
    y_ref = encoder_stack_ref(enc, xs, heads=HEADS, layers=LAYERS)
    assert jnp.allclose(y_kernel, y_ref, atol=5e-3, rtol=5e-3), "encoder mismatch vs. reference"

    print("KERNEL_OK")
</pallas_src>

<mosaic_0001>
module attributes {stable_mosaic.version = 11 : i64} {
  func.func @_decoder_stack_kernel(%arg0: i32, %arg1: memref<16x32xf32, #tpu.memory_space<vmem>>, %arg2: memref<8x8xf32, #tpu.memory_space<vmem>>, %arg3: memref<1x1x32xf32, #tpu.memory_space<vmem>>, %arg4: memref<1x1x32xf32, #tpu.memory_space<vmem>>, %arg5: memref<1x32x32xf32, #tpu.memory_space<vmem>>, %arg6: memref<1x32x32xf32, #tpu.memory_space<vmem>>, %arg7: memref<1x32x32xf32, #tpu.memory_space<vmem>>, %arg8: memref<1x32x32xf32, #tpu.memory_space<vmem>>, %arg9: memref<1x1x32xf32, #tpu.memory_space<vmem>>, %arg10: memref<1x1x32xf32, #tpu.memory_space<vmem>>, %arg11: memref<1x32x32xf32, #tpu.memory_space<vmem>>, %arg12: memref<1x1x32xf32, #tpu.memory_space<vmem>>, %arg13: memref<1x32x32xf32, #tpu.memory_space<vmem>>, %arg14: memref<1x1x32xf32, #tpu.memory_space<vmem>>, %arg15: memref<1x32x32xf32, #tpu.memory_space<vmem>>, %arg16: memref<1x1x32xf32, #tpu.memory_space<vmem>>, %arg17: memref<1x32x32xf32, #tpu.memory_space<vmem>>, %arg18: memref<1x1x32xf32, #tpu.memory_space<vmem>>, %arg19: memref<1x1x32xf32, #tpu.memory_space<vmem>>, %arg20: memref<1x1x32xf32, #tpu.memory_space<vmem>>, %arg21: memref<1x32x96xf32, #tpu.memory_space<vmem>>, %arg22: memref<1x1x96xf32, #tpu.memory_space<vmem>>, %arg23: memref<1x96x32xf32, #tpu.memory_space<vmem>>, %arg24: memref<1x1x32xf32, #tpu.memory_space<vmem>>, %arg25: memref<16x32xf32, #tpu.memory_space<vmem>>) attributes {dimension_semantics = [#tpu.dimension_semantics<arbitrary>], iteration_bounds = array<i64: 2>, scalar_prefetch = 0 : i64, scratch_operands = 0 : i64, tpu.core_type = #tpu.core_type<tc>, window_params = [{pipeline_mode = #tpu.pipeline_mode<synchronous>, transform_indices = @transform_0, window_bounds = array<i64: 16, 32>}, {pipeline_mode = #tpu.pipeline_mode<synchronous>, transform_indices = @transform_1, window_bounds = array<i64: 8, 8>}, {transform_indices = @transform_2, window_bounds = array<i64: 1, 1, 32>}, {transform_indices = @transform_3, window_bounds = array<i64: 1, 1, 32>}, {transform_indices = @transform_4, window_bounds = array<i64: 1, 32, 32>}, {transform_indices = @transform_5, window_bounds = array<i64: 1, 32, 32>}, {transform_indices = @transform_6, window_bounds = array<i64: 1, 32, 32>}, {transform_indices = @transform_7, window_bounds = array<i64: 1, 32, 32>}, {transform_indices = @transform_8, window_bounds = array<i64: 1, 1, 32>}, {transform_indices = @transform_9, window_bounds = array<i64: 1, 1, 32>}, {transform_indices = @transform_10, window_bounds = array<i64: 1, 32, 32>}, {transform_indices = @transform_11, window_bounds = array<i64: 1, 1, 32>}, {transform_indices = @transform_12, window_bounds = array<i64: 1, 32, 32>}, {transform_indices = @transform_13, window_bounds = array<i64: 1, 1, 32>}, {transform_indices = @transform_14, window_bounds = array<i64: 1, 32, 32>}, {transform_indices = @transform_15, window_bounds = array<i64: 1, 1, 32>}, {transform_indices = @transform_16, window_bounds = array<i64: 1, 32, 32>}, {transform_indices = @transform_17, window_bounds = array<i64: 1, 1, 32>}, {transform_indices = @transform_18, window_bounds = array<i64: 1, 1, 32>}, {transform_indices = @transform_19, window_bounds = array<i64: 1, 1, 32>}, {transform_indices = @transform_20, window_bounds = array<i64: 1, 32, 96>}, {transform_indices = @transform_21, window_bounds = array<i64: 1, 1, 96>}, {transform_indices = @transform_22, window_bounds = array<i64: 1, 96, 32>}, {transform_indices = @transform_23, window_bounds = array<i64: 1, 1, 32>}, {pipeline_mode = #tpu.pipeline_mode<synchronous>, transform_indices = @transform_24, window_bounds = array<i64: 16, 32>}]} {
    %c0_i32 = arith.constant 0 : i32
    %0 = arith.cmpi eq, %arg0, %c0_i32 : i32
    %1 = arith.extui %0 : i1 to i32
    %c0_i32_0 = arith.constant 0 : i32
    %2 = arith.cmpi ne, %1, %c0_i32_0 : i32
    scf.if %2 {
      %c0_120 = arith.constant 0 : index
      %c0_121 = arith.constant 0 : index
      %280 = vector.load %arg1[%c0_120, %c0_121] : memref<16x32xf32, #tpu.memory_space<vmem>>, vector<16x32xf32>
      %c0_122 = arith.constant 0 : index
      %c0_123 = arith.constant 0 : index
      %281 = vector.load %arg25[%c0_122, %c0_123] : memref<16x32xf32, #tpu.memory_space<vmem>>, vector<16x32xf32>
      tpu.vector_store %arg25[%c0_122, %c0_123], %280 {strides = array<i32>} : memref<16x32xf32, #tpu.memory_space<vmem>>, vector<16x32xf32>,
    } else {
    }
    %c0 = arith.constant 0 : index
    %c0_1 = arith.constant 0 : index
    %3 = vector.load %arg25[%c0, %c0_1] : memref<16x32xf32, #tpu.memory_space<vmem>>, vector<16x32xf32>
    %c0_2 = arith.constant 0 : index
    %c0_3 = arith.constant 0 : index
    %4 = vector.load %arg2[%c0_2, %c0_3] : memref<8x8xf32, #tpu.memory_space<vmem>>, vector<8x8xf32>
    %c0_4 = arith.constant 0 : index
    %c0_5 = arith.constant 0 : index
    %c0_6 = arith.constant 0 : index
    %5 = vector.load %arg3[%c0_4, %c0_5, %c0_6] : memref<1x1x32xf32, #tpu.memory_space<vmem>>, vector<1x1x32xf32>
    %6 = vector.shape_cast %5 : vector<1x1x32xf32> to vector<1x32xf32>
    %c0_7 = arith.constant 0 : index
    %c0_8 = arith.constant 0 : index
    %c0_9 = arith.constant 0 : index
    %7 = vector.load %arg4[%c0_7, %c0_8, %c0_9] : memref<1x1x32xf32, #tpu.memory_space<vmem>>, vector<1x1x32xf32>
    %8 = vector.shape_cast %7 : vector<1x1x32xf32> to vector<1x32xf32>
    %cst = arith.constant dense<0.000000e+00> : vector<16xf32>
    %9 = vector.multi_reduction <add>, %3, %cst [1] : vector<16x32xf32> to vector<16xf32>
    %10 = vector.shape_cast %9 : vector<16xf32> to vector<16x1xf32>
    %cst_10 = arith.constant 3.200000e+01 : f32
    %11 = vector.broadcast %cst_10 : f32 to vector<16x1xf32>
    %12 = arith.divf %10, %11 : vector<16x1xf32>
    %13 = vector.broadcast %12 : vector<16x1xf32> to vector<16x32xf32>
    %14 = arith.subf %3, %13 : vector<16x32xf32>
    %15 = arith.mulf %14, %14 : vector<16x32xf32>
    %cst_11 = arith.constant dense<0.000000e+00> : vector<16xf32>
    %16 = vector.multi_reduction <add>, %15, %cst_11 [1] : vector<16x32xf32> to vector<16xf32>
    %17 = vector.shape_cast %16 : vector<16xf32> to vector<16x1xf32>
    %cst_12 = arith.constant 3.200000e+01 : f32
    %18 = vector.broadcast %cst_12 : f32 to vector<16x1xf32>
    %19 = arith.divf %17, %18 : vector<16x1xf32>
    %cst_13 = arith.constant 9.99999974E-6 : f32
    %20 = vector.broadcast %cst_13 : f32 to vector<16x1xf32>
    %21 = arith.addf %19, %20 : vector<16x1xf32>
    %22 = math.rsqrt %21 : vector<16x1xf32>
    %23 = vector.broadcast %22 : vector<16x1xf32> to vector<16x32xf32>
    %24 = arith.mulf %14, %23 : vector<16x32xf32>
    %25 = vector.broadcast %6 : vector<1x32xf32> to vector<16x32xf32>
    %26 = arith.mulf %24, %25 : vector<16x32xf32>
    %27 = vector.broadcast %8 : vector<1x32xf32> to vector<16x32xf32>
    %28 = arith.addf %26, %27 : vector<16x32xf32>
    %c0_14 = arith.constant 0 : index
    %c0_15 = arith.constant 0 : index
    %c0_16 = arith.constant 0 : index
    %29 = vector.load %arg5[%c0_14, %c0_15, %c0_16] : memref<1x32x32xf32, #tpu.memory_space<vmem>>, vector<1x32x32xf32>
    %30 = vector.shape_cast %29 : vector<1x32x32xf32> to vector<32x32xf32>
    %c0_17 = arith.constant 0 : index
    %c0_18 = arith.constant 0 : index
    %c0_19 = arith.constant 0 : index
    %31 = vector.load %arg6[%c0_17, %c0_18, %c0_19] : memref<1x32x32xf32, #tpu.memory_space<vmem>>, vector<1x32x32xf32>
    %32 = vector.shape_cast %31 : vector<1x32x32xf32> to vector<32x32xf32>
    %c0_20 = arith.constant 0 : index
    %c0_21 = arith.constant 0 : index
    %c0_22 = arith.constant 0 : index
    %33 = vector.load %arg7[%c0_20, %c0_21, %c0_22] : memref<1x32x32xf32, #tpu.memory_space<vmem>>, vector<1x32x32xf32>
    %34 = vector.shape_cast %33 : vector<1x32x32xf32> to vector<32x32xf32>
    %c0_23 = arith.constant 0 : index
    %c0_24 = arith.constant 0 : index
    %c0_25 = arith.constant 0 : index
    %35 = vector.load %arg8[%c0_23, %c0_24, %c0_25] : memref<1x32x32xf32, #tpu.memory_space<vmem>>, vector<1x32x32xf32>
    %36 = vector.shape_cast %35 : vector<1x32x32xf32> to vector<32x32xf32>
    %cst_26 = arith.constant dense<0.000000e+00> : vector<16x32xf32>
    %37 = tpu.matmul %28, %30, %cst_26 {dimension_numbers = #tpu.dot_dimension_numbers<[1], [0], [0], [1], [0, 0, 1, 1], [], []>} : vector<16x32xf32>, vector<32x32xf32>, vector<16x32xf32> -> vector<16x32xf32>
    %cst_27 = arith.constant dense<0.000000e+00> : vector<16x32xf32>
    %38 = tpu.matmul %28, %32, %cst_27 {dimension_numbers = #tpu.dot_dimension_numbers<[1], [0], [0], [1], [0, 0, 1, 1], [], []>} : vector<16x32xf32>, vector<32x32xf32>, vector<16x32xf32> -> vector<16x32xf32>
    %cst_28 = arith.constant dense<0.000000e+00> : vector<16x32xf32>
    %39 = tpu.matmul %28, %34, %cst_28 {dimension_numbers = #tpu.dot_dimension_numbers<[1], [0], [0], [1], [0, 0, 1, 1], [], []>} : vector<16x32xf32>, vector<32x32xf32>, vector<16x32xf32> -> vector<16x32xf32>
    %40 = vector.extract_strided_slice %37 {offsets = [0, 0], sizes = [8, 32], strides = [1, 1]} : vector<16x32xf32> to vector<8x32xf32>
    %41 = vector.shape_cast %40 : vector<8x32xf32> to vector<8x4x8xf32>
    %42 = tpu.transpose %41, [1, 0, 2] : vector<8x4x8xf32> -> vector<4x8x8xf32>
    %43 = vector.extract_strided_slice %38 {offsets = [0, 0], sizes = [8, 32], strides = [1, 1]} : vector<16x32xf32> to vector<8x32xf32>
    %44 = vector.shape_cast %43 : vector<8x32xf32> to vector<8x4x8xf32>
    %45 = tpu.transpose %44, [1, 0, 2] : vector<8x4x8xf32> -> vector<4x8x8xf32>
    %46 = vector.extract_strided_slice %39 {offsets = [0, 0], sizes = [8, 32], strides = [1, 1]} : vector<16x32xf32> to vector<8x32xf32>
    %47 = vector.shape_cast %46 : vector<8x32xf32> to vector<8x4x8xf32>
    %48 = tpu.transpose %47, [1, 0, 2] : vector<8x4x8xf32> -> vector<4x8x8xf32>
    "tpu.trace_start"() <{level = 10 : i32, message = "hqe,hke->hqk"}> : () -> ()
    %cst_29 = arith.constant dense<0.000000e+00> : vector<4x8x8xf32>
    %49 = tpu.matmul %42, %45, %cst_29 {dimension_numbers = #tpu.dot_dimension_numbers<[2], [2], [1], [1], [0, 0, 0, 1, 1, 1], [0], [0]>} : vector<4x8x8xf32>, vector<4x8x8xf32>, vector<4x8x8xf32> -> vector<4x8x8xf32>
    "tpu.trace_stop"() : () -> ()
    %cst_30 = arith.constant 0.353553385 : f32
    %50 = vector.broadcast %cst_30 : f32 to vector<4x8x8xf32>
    %51 = arith.mulf %49, %50 : vector<4x8x8xf32>
    %52 = vector.shape_cast %4 : vector<8x8xf32> to vector<1x8x8xf32>
    %53 = vector.broadcast %52 : vector<1x8x8xf32> to vector<4x8x8xf32>
    %54 = arith.addf %51, %53 : vector<4x8x8xf32>
    %cst_31 = arith.constant dense<0xFF800000> : vector<4x8xf32>
    %55 = vector.multi_reduction <maximumf>, %54, %cst_31 [2] : vector<4x8x8xf32> to vector<4x8xf32>
    %56 = vector.shape_cast %55 : vector<4x8xf32> to vector<4x8x1xf32>
    %57 = vector.broadcast %56 : vector<4x8x1xf32> to vector<4x8x8xf32>
    %58 = arith.subf %54, %57 : vector<4x8x8xf32>
    %59 = math.exp %58 : vector<4x8x8xf32>
    %cst_32 = arith.constant dense<0.000000e+00> : vector<4x8xf32>
    %60 = vector.multi_reduction <add>, %59, %cst_32 [2] : vector<4x8x8xf32> to vector<4x8xf32>
    %61 = vector.shape_cast %60 : vector<4x8xf32> to vector<4x8x1xf32>
    %62 = vector.broadcast %61 : vector<4x8x1xf32> to vector<4x8x8xf32>
    %63 = arith.divf %59, %62 : vector<4x8x8xf32>
    "tpu.trace_start"() <{level = 10 : i32, message = "hqk,hke->hqe"}> : () -> ()
    %cst_33 = arith.constant dense<0.000000e+00> : vector<4x8x8xf32>
    %64 = tpu.matmul %63, %48, %cst_33 {dimension_numbers = #tpu.dot_dimension_numbers<[2], [1], [1], [2], [0, 0, 0, 1, 1, 2], [0], [0]>} : vector<4x8x8xf32>, vector<4x8x8xf32>, vector<4x8x8xf32> -> vector<4x8x8xf32>
    "tpu.trace_stop"() : () -> ()
    %65 = vector.extract_strided_slice %64 {offsets = [0, 0, 0], sizes = [1, 8, 8], strides = [1, 1, 1]} : vector<4x8x8xf32> to vector<1x8x8xf32>
    %66 = vector.shape_cast %65 : vector<1x8x8xf32> to vector<8x8xf32>
    %67 = vector.extract_strided_slice %64 {offsets = [1, 0, 0], sizes = [1, 8, 8], strides = [1, 1, 1]} : vector<4x8x8xf32> to vector<1x8x8xf32>
    %68 = vector.shape_cast %67 : vector<1x8x8xf32> to vector<8x8xf32>
    %69 = vector.extract_strided_slice %64 {offsets = [2, 0, 0], sizes = [1, 8, 8], strides = [1, 1, 1]} : vector<4x8x8xf32> to vector<1x8x8xf32>
    %70 = vector.shape_cast %69 : vector<1x8x8xf32> to vector<8x8xf32>
    %71 = vector.extract_strided_slice %64 {offsets = [3, 0, 0], sizes = [1, 8, 8], strides = [1, 1, 1]} : vector<4x8x8xf32> to vector<1x8x8xf32>
    %72 = vector.shape_cast %71 : vector<1x8x8xf32> to vector<8x8xf32>
    %73 = tpu.concatenate %66, %68, %70, %72 in 1 : vector<8x8xf32>, vector<8x8xf32>, vector<8x8xf32>, vector<8x8xf32> -> vector<8x32xf32>
    %74 = vector.extract_strided_slice %37 {offsets = [8, 0], sizes = [8, 32], strides = [1, 1]} : vector<16x32xf32> to vector<8x32xf32>
    %75 = vector.shape_cast %74 : vector<8x32xf32> to vector<8x4x8xf32>
    %76 = tpu.transpose %75, [1, 0, 2] : vector<8x4x8xf32> -> vector<4x8x8xf32>
    %77 = vector.extract_strided_slice %38 {offsets = [8, 0], sizes = [8, 32], strides = [1, 1]} : vector<16x32xf32> to vector<8x32xf32>
    %78 = vector.shape_cast %77 : vector<8x32xf32> to vector<8x4x8xf32>
    %79 = tpu.transpose %78, [1, 0, 2] : vector<8x4x8xf32> -> vector<4x8x8xf32>
    %80 = vector.extract_strided_slice %39 {offsets = [8, 0], sizes = [8, 32], strides = [1, 1]} : vector<16x32xf32> to vector<8x32xf32>
    %81 = vector.shape_cast %80 : vector<8x32xf32> to vector<8x4x8xf32>
    %82 = tpu.transpose %81, [1, 0, 2] : vector<8x4x8xf32> -> vector<4x8x8xf32>
    "tpu.trace_start"() <{level = 10 : i32, message = "hqe,hke->hqk"}> : () -> ()
    %cst_34 = arith.constant dense<0.000000e+00> : vector<4x8x8xf32>
    %83 = tpu.matmul %76, %79, %cst_34 {dimension_numbers = #tpu.dot_dimension_numbers<[2], [2], [1], [1], [0, 0, 0, 1, 1, 1], [0], [0]>} : vector<4x8x8xf32>, vector<4x8x8xf32>, vector<4x8x8xf32> -> vector<4x8x8xf32>
    "tpu.trace_stop"() : () -> ()
    %cst_35 = arith.constant 0.353553385 : f32
    %84 = vector.broadcast %cst_35 : f32 to vector<4x8x8xf32>
    %85 = arith.mulf %83, %84 : vector<4x8x8xf32>
    %86 = vector.shape_cast %4 : vector<8x8xf32> to vector<1x8x8xf32>
    %87 = vector.broadcast %86 : vector<1x8x8xf32> to vector<4x8x8xf32>
    %88 = arith.addf %85, %87 : vector<4x8x8xf32>
    %cst_36 = arith.constant dense<0xFF800000> : vector<4x8xf32>
    %89 = vector.multi_reduction <maximumf>, %88, %cst_36 [2] : vector<4x8x8xf32> to vector<4x8xf32>
    %90 = vector.shape_cast %89 : vector<4x8xf32> to vector<4x8x1xf32>
    %91 = vector.broadcast %90 : vector<4x8x1xf32> to vector<4x8x8xf32>
    %92 = arith.subf %88, %91 : vector<4x8x8xf32>
    %93 = math.exp %92 : vector<4x8x8xf32>
    %cst_37 = arith.constant dense<0.000000e+00> : vector<4x8xf32>
    %94 = vector.multi_reduction <add>, %93, %cst_37 [2] : vector<4x8x8xf32> to vector<4x8xf32>
    %95 = vector.shape_cast %94 : vector<4x8xf32> to vector<4x8x1xf32>
    %96 = vector.broadcast %95 : vector<4x8x1xf32> to vector<4x8x8xf32>
    %97 = arith.divf %93, %96 : vector<4x8x8xf32>
    "tpu.trace_start"() <{level = 10 : i32, message = "hqk,hke->hqe"}> : () -> ()
    %cst_38 = arith.constant dense<0.000000e+00> : vector<4x8x8xf32>
    %98 = tpu.matmul %97, %82, %cst_38 {dimension_numbers = #tpu.dot_dimension_numbers<[2], [1], [1], [2], [0, 0, 0, 1, 1, 2], [0], [0]>} : vector<4x8x8xf32>, vector<4x8x8xf32>, vector<4x8x8xf32> -> vector<4x8x8xf32>
    "tpu.trace_stop"() : () -> ()
    %99 = vector.extract_strided_slice %98 {offsets = [0, 0, 0], sizes = [1, 8, 8], strides = [1, 1, 1]} : vector<4x8x8xf32> to vector<1x8x8xf32>
    %100 = vector.shape_cast %99 : vector<1x8x8xf32> to vector<8x8xf32>
    %101 = vector.extract_strided_slice %98 {offsets = [1, 0, 0], sizes = [1, 8, 8], strides = [1, 1, 1]} : vector<4x8x8xf32> to vector<1x8x8xf32>
    %102 = vector.shape_cast %101 : vector<1x8x8xf32> to vector<8x8xf32>
    %103 = vector.extract_strided_slice %98 {offsets = [2, 0, 0], sizes = [1, 8, 8], strides = [1, 1, 1]} : vector<4x8x8xf32> to vector<1x8x8xf32>
    %104 = vector.shape_cast %103 : vector<1x8x8xf32> to vector<8x8xf32>
    %105 = vector.extract_strided_slice %98 {offsets = [3, 0, 0], sizes = [1, 8, 8], strides = [1, 1, 1]} : vector<4x8x8xf32> to vector<1x8x8xf32>
    %106 = vector.shape_cast %105 : vector<1x8x8xf32> to vector<8x8xf32>
    %107 = tpu.concatenate %100, %102, %104, %106 in 1 : vector<8x8xf32>, vector<8x8xf32>, vector<8x8xf32>, vector<8x8xf32> -> vector<8x32xf32>
    %108 = tpu.concatenate %73, %107 in 0 : vector<8x32xf32>, vector<8x32xf32> -> vector<16x32xf32>
    %cst_39 = arith.constant dense<0.000000e+00> : vector<16x32xf32>
    %109 = tpu.matmul %108, %36, %cst_39 {dimension_numbers = #tpu.dot_dimension_numbers<[1], [0], [0], [1], [0, 0, 1, 1], [], []>} : vector<16x32xf32>, vector<32x32xf32>, vector<16x32xf32> -> vector<16x32xf32>
    %110 = arith.addf %3, %109 : vector<16x32xf32>
    %c0_40 = arith.constant 0 : index
    %c0_41 = arith.constant 0 : index
    %c0_42 = arith.constant 0 : index
    %111 = vector.load %arg9[%c0_40, %c0_41, %c0_42] : memref<1x1x32xf32, #tpu.memory_space<vmem>>, vector<1x1x32xf32>
    %112 = vector.shape_cast %111 : vector<1x1x32xf32> to vector<1x32xf32>
    %c0_43 = arith.constant 0 : index
    %c0_44 = arith.constant 0 : index
    %c0_45 = arith.constant 0 : index
    %113 = vector.load %arg10[%c0_43, %c0_44, %c0_45] : memref<1x1x32xf32, #tpu.memory_space<vmem>>, vector<1x1x32xf32>
    %114 = vector.shape_cast %113 : vector<1x1x32xf32> to vector<1x32xf32>
    %cst_46 = arith.constant dense<0.000000e+00> : vector<16xf32>
    %115 = vector.multi_reduction <add>, %110, %cst_46 [1] : vector<16x32xf32> to vector<16xf32>
    %116 = vector.shape_cast %115 : vector<16xf32> to vector<16x1xf32>
    %cst_47 = arith.constant 3.200000e+01 : f32
    %117 = vector.broadcast %cst_47 : f32 to vector<16x1xf32>
    %118 = arith.divf %116, %117 : vector<16x1xf32>
    %119 = vector.broadcast %118 : vector<16x1xf32> to vector<16x32xf32>
    %120 = arith.subf %110, %119 : vector<16x32xf32>
    %121 = arith.mulf %120, %120 : vector<16x32xf32>
    %cst_48 = arith.constant dense<0.000000e+00> : vector<16xf32>
    %122 = vector.multi_reduction <add>, %121, %cst_48 [1] : vector<16x32xf32> to vector<16xf32>
    %123 = vector.shape_cast %122 : vector<16xf32> to vector<16x1xf32>
    %cst_49 = arith.constant 3.200000e+01 : f32
    %124 = vector.broadcast %cst_49 : f32 to vector<16x1xf32>
    %125 = arith.divf %123, %124 : vector<16x1xf32>
    %cst_50 = arith.constant 9.99999974E-6 : f32
    %126 = vector.broadcast %cst_50 : f32 to vector<16x1xf32>
    %127 = arith.addf %125, %126 : vector<16x1xf32>
    %128 = math.rsqrt %127 : vector<16x1xf32>
    %129 = vector.broadcast %128 : vector<16x1xf32> to vector<16x32xf32>
    %130 = arith.mulf %120, %129 : vector<16x32xf32>
    %131 = vector.broadcast %112 : vector<1x32xf32> to vector<16x32xf32>
    %132 = arith.mulf %130, %131 : vector<16x32xf32>
    %133 = vector.broadcast %114 : vector<1x32xf32> to vector<16x32xf32>
    %134 = arith.addf %132, %133 : vector<16x32xf32>
    %c0_51 = arith.constant 0 : index
    %c0_52 = arith.constant 0 : index
    %c0_53 = arith.constant 0 : index
    %135 = vector.load %arg11[%c0_51, %c0_52, %c0_53] : memref<1x32x32xf32, #tpu.memory_space<vmem>>, vector<1x32x32xf32>
    %136 = vector.shape_cast %135 : vector<1x32x32xf32> to vector<32x32xf32>
    %c0_54 = arith.constant 0 : index
    %c0_55 = arith.constant 0 : index
    %c0_56 = arith.constant 0 : index
    %137 = vector.load %arg13[%c0_54, %c0_55, %c0_56] : memref<1x32x32xf32, #tpu.memory_space<vmem>>, vector<1x32x32xf32>
    %138 = vector.shape_cast %137 : vector<1x32x32xf32> to vector<32x32xf32>
    %c0_57 = arith.constant 0 : index
    %c0_58 = arith.constant 0 : index
    %c0_59 = arith.constant 0 : index
    %139 = vector.load %arg15[%c0_57, %c0_58, %c0_59] : memref<1x32x32xf32, #tpu.memory_space<vmem>>, vector<1x32x32xf32>
    %140 = vector.shape_cast %139 : vector<1x32x32xf32> to vector<32x32xf32>
    %c0_60 = arith.constant 0 : index
    %c0_61 = arith.constant 0 : index
    %c0_62 = arith.constant 0 : index
    %141 = vector.load %arg17[%c0_60, %c0_61, %c0_62] : memref<1x32x32xf32, #tpu.memory_space<vmem>>, vector<1x32x32xf32>
    %142 = vector.shape_cast %141 : vector<1x32x32xf32> to vector<32x32xf32>
    %c0_63 = arith.constant 0 : index
    %c0_64 = arith.constant 0 : index
    %c0_65 = arith.constant 0 : index
    %143 = vector.load %arg12[%c0_63, %c0_64, %c0_65] : memref<1x1x32xf32, #tpu.memory_space<vmem>>, vector<1x1x32xf32>
    %144 = vector.shape_cast %143 : vector<1x1x32xf32> to vector<1x32xf32>
    %c0_66 = arith.constant 0 : index
    %c0_67 = arith.constant 0 : index
    %c0_68 = arith.constant 0 : index
    %145 = vector.load %arg14[%c0_66, %c0_67, %c0_68] : memref<1x1x32xf32, #tpu.memory_space<vmem>>, vector<1x1x32xf32>
    %146 = vector.shape_cast %145 : vector<1x1x32xf32> to vector<1x32xf32>
    %c0_69 = arith.constant 0 : index
    %c0_70 = arith.constant 0 : index
    %c0_71 = arith.constant 0 : index
    %147 = vector.load %arg16[%c0_69, %c0_70, %c0_71] : memref<1x1x32xf32, #tpu.memory_space<vmem>>, vector<1x1x32xf32>
    %148 = vector.shape_cast %147 : vector<1x1x32xf32> to vector<1x32xf32>
    %c0_72 = arith.constant 0 : index
    %c0_73 = arith.constant 0 : index
    %c0_74 = arith.constant 0 : index
    %149 = vector.load %arg18[%c0_72, %c0_73, %c0_74] : memref<1x1x32xf32, #tpu.memory_space<vmem>>, vector<1x1x32xf32>
    %150 = vector.shape_cast %149 : vector<1x1x32xf32> to vector<1x32xf32>
    %cst_75 = arith.constant dense<0.000000e+00> : vector<16x32xf32>
    %151 = tpu.matmul %134, %136, %cst_75 {dimension_numbers = #tpu.dot_dimension_numbers<[1], [0], [0], [1], [0, 0, 1, 1], [], []>} : vector<16x32xf32>, vector<32x32xf32>, vector<16x32xf32> -> vector<16x32xf32>
    %cst_76 = arith.constant dense<0.000000e+00> : vector<16x32xf32>
    %152 = tpu.matmul %134, %138, %cst_76 {dimension_numbers = #tpu.dot_dimension_numbers<[1], [0], [0], [1], [0, 0, 1, 1], [], []>} : vector<16x32xf32>, vector<32x32xf32>, vector<16x32xf32> -> vector<16x32xf32>
    %cst_77 = arith.constant dense<0.000000e+00> : vector<16x32xf32>
    %153 = tpu.matmul %134, %140, %cst_77 {dimension_numbers = #tpu.dot_dimension_numbers<[1], [0], [0], [1], [0, 0, 1, 1], [], []>} : vector<16x32xf32>, vector<32x32xf32>, vector<16x32xf32> -> vector<16x32xf32>
    %154 = vector.broadcast %144 : vector<1x32xf32> to vector<16x32xf32>
    %155 = arith.addf %151, %154 : vector<16x32xf32>
    %156 = vector.broadcast %146 : vector<1x32xf32> to vector<16x32xf32>
    %157 = arith.addf %152, %156 : vector<16x32xf32>
    %158 = vector.broadcast %148 : vector<1x32xf32> to vector<16x32xf32>
    %159 = arith.addf %153, %158 : vector<16x32xf32>
    %160 = vector.extract_strided_slice %155 {offsets = [0, 0], sizes = [8, 32], strides = [1, 1]} : vector<16x32xf32> to vector<8x32xf32>
    %161 = vector.shape_cast %160 : vector<8x32xf32> to vector<8x4x8xf32>
    %162 = tpu.transpose %161, [1, 0, 2] : vector<8x4x8xf32> -> vector<4x8x8xf32>
    %163 = vector.extract_strided_slice %157 {offsets = [0, 0], sizes = [8, 32], strides = [1, 1]} : vector<16x32xf32> to vector<8x32xf32>
    %164 = vector.shape_cast %163 : vector<8x32xf32> to vector<8x4x8xf32>
    %165 = tpu.transpose %164, [1, 0, 2] : vector<8x4x8xf32> -> vector<4x8x8xf32>
    %166 = vector.extract_strided_slice %159 {offsets = [0, 0], sizes = [8, 32], strides = [1, 1]} : vector<16x32xf32> to vector<8x32xf32>
    %167 = vector.shape_cast %166 : vector<8x32xf32> to vector<8x4x8xf32>
    %168 = tpu.transpose %167, [1, 0, 2] : vector<8x4x8xf32> -> vector<4x8x8xf32>
    "tpu.trace_start"() <{level = 10 : i32, message = "hqe,hke->hqk"}> : () -> ()
    %cst_78 = arith.constant dense<0.000000e+00> : vector<4x8x8xf32>
    %169 = tpu.matmul %162, %165, %cst_78 {dimension_numbers = #tpu.dot_dimension_numbers<[2], [2], [1], [1], [0, 0, 0, 1, 1, 1], [0], [0]>} : vector<4x8x8xf32>, vector<4x8x8xf32>, vector<4x8x8xf32> -> vector<4x8x8xf32>
    "tpu.trace_stop"() : () -> ()
    %cst_79 = arith.constant 0.353553385 : f32
    %170 = vector.broadcast %cst_79 : f32 to vector<4x8x8xf32>
    %171 = arith.mulf %169, %170 : vector<4x8x8xf32>
    %cst_80 = arith.constant dense<0xFF800000> : vector<4x8xf32>
    %172 = vector.multi_reduction <maximumf>, %171, %cst_80 [2] : vector<4x8x8xf32> to vector<4x8xf32>
    %173 = vector.shape_cast %172 : vector<4x8xf32> to vector<4x8x1xf32>
    %174 = vector.broadcast %173 : vector<4x8x1xf32> to vector<4x8x8xf32>
    %175 = arith.subf %171, %174 : vector<4x8x8xf32>
    %176 = math.exp %175 : vector<4x8x8xf32>
    %cst_81 = arith.constant dense<0.000000e+00> : vector<4x8xf32>
    %177 = vector.multi_reduction <add>, %176, %cst_81 [2] : vector<4x8x8xf32> to vector<4x8xf32>
    %178 = vector.shape_cast %177 : vector<4x8xf32> to vector<4x8x1xf32>
    %179 = vector.broadcast %178 : vector<4x8x1xf32> to vector<4x8x8xf32>
    %180 = arith.divf %176, %179 : vector<4x8x8xf32>
    "tpu.trace_start"() <{level = 10 : i32, message = "hqk,hke->hqe"}> : () -> ()
    %cst_82 = arith.constant dense<0.000000e+00> : vector<4x8x8xf32>
    %181 = tpu.matmul %180, %168, %cst_82 {dimension_numbers = #tpu.dot_dimension_numbers<[2], [1], [1], [2], [0, 0, 0, 1, 1, 2], [0], [0]>} : vector<4x8x8xf32>, vector<4x8x8xf32>, vector<4x8x8xf32> -> vector<4x8x8xf32>
    "tpu.trace_stop"() : () -> ()
    %182 = vector.extract_strided_slice %181 {offsets = [0, 0, 0], sizes = [1, 8, 8], strides = [1, 1, 1]} : vector<4x8x8xf32> to vector<1x8x8xf32>
    %183 = vector.shape_cast %182 : vector<1x8x8xf32> to vector<8x8xf32>
    %184 = vector.extract_strided_slice %181 {offsets = [1, 0, 0], sizes = [1, 8, 8], strides = [1, 1, 1]} : vector<4x8x8xf32> to vector<1x8x8xf32>
    %185 = vector.shape_cast %184 : vector<1x8x8xf32> to vector<8x8xf32>
    %186 = vector.extract_strided_slice %181 {offsets = [2, 0, 0], sizes = [1, 8, 8], strides = [1, 1, 1]} : vector<4x8x8xf32> to vector<1x8x8xf32>
    %187 = vector.shape_cast %186 : vector<1x8x8xf32> to vector<8x8xf32>
    %188 = vector.extract_strided_slice %181 {offsets = [3, 0, 0], sizes = [1, 8, 8], strides = [1, 1, 1]} : vector<4x8x8xf32> to vector<1x8x8xf32>
    %189 = vector.shape_cast %188 : vector<1x8x8xf32> to vector<8x8xf32>
    %190 = tpu.concatenate %183, %185, %187, %189 in 1 : vector<8x8xf32>, vector<8x8xf32>, vector<8x8xf32>, vector<8x8xf32> -> vector<8x32xf32>
    %191 = vector.extract_strided_slice %155 {offsets = [8, 0], sizes = [8, 32], strides = [1, 1]} : vector<16x32xf32> to vector<8x32xf32>
    %192 = vector.shape_cast %191 : vector<8x32xf32> to vector<8x4x8xf32>
    %193 = tpu.transpose %192, [1, 0, 2] : vector<8x4x8xf32> -> vector<4x8x8xf32>
    %194 = vector.extract_strided_slice %157 {offsets = [8, 0], sizes = [8, 32], strides = [1, 1]} : vector<16x32xf32> to vector<8x32xf32>
    %195 = vector.shape_cast %194 : vector<8x32xf32> to vector<8x4x8xf32>
    %196 = tpu.transpose %195, [1, 0, 2] : vector<8x4x8xf32> -> vector<4x8x8xf32>
    %197 = vector.extract_strided_slice %159 {offsets = [8, 0], sizes = [8, 32], strides = [1, 1]} : vector<16x32xf32> to vector<8x32xf32>
    %198 = vector.shape_cast %197 : vector<8x32xf32> to vector<8x4x8xf32>
    %199 = tpu.transpose %198, [1, 0, 2] : vector<8x4x8xf32> -> vector<4x8x8xf32>
    "tpu.trace_start"() <{level = 10 : i32, message = "hqe,hke->hqk"}> : () -> ()
    %cst_83 = arith.constant dense<0.000000e+00> : vector<4x8x8xf32>
    %200 = tpu.matmul %193, %196, %cst_83 {dimension_numbers = #tpu.dot_dimension_numbers<[2], [2], [1], [1], [0, 0, 0, 1, 1, 1], [0], [0]>} : vector<4x8x8xf32>, vector<4x8x8xf32>, vector<4x8x8xf32> -> vector<4x8x8xf32>
    "tpu.trace_stop"() : () -> ()
    %cst_84 = arith.constant 0.353553385 : f32
    %201 = vector.broadcast %cst_84 : f32 to vector<4x8x8xf32>
    %202 = arith.mulf %200, %201 : vector<4x8x8xf32>
    %cst_85 = arith.constant dense<0xFF800000> : vector<4x8xf32>
    %203 = vector.multi_reduction <maximumf>, %202, %cst_85 [2] : vector<4x8x8xf32> to vector<4x8xf32>
    %204 = vector.shape_cast %203 : vector<4x8xf32> to vector<4x8x1xf32>
    %205 = vector.broadcast %204 : vector<4x8x1xf32> to vector<4x8x8xf32>
    %206 = arith.subf %202, %205 : vector<4x8x8xf32>
    %207 = math.exp %206 : vector<4x8x8xf32>
    %cst_86 = arith.constant dense<0.000000e+00> : vector<4x8xf32>
    %208 = vector.multi_reduction <add>, %207, %cst_86 [2] : vector<4x8x8xf32> to vector<4x8xf32>
    %209 = vector.shape_cast %208 : vector<4x8xf32> to vector<4x8x1xf32>
    %210 = vector.broadcast %209 : vector<4x8x1xf32> to vector<4x8x8xf32>
    %211 = arith.divf %207, %210 : vector<4x8x8xf32>
    "tpu.trace_start"() <{level = 10 : i32, message = "hqk,hke->hqe"}> : () -> ()
    %cst_87 = arith.constant dense<0.000000e+00> : vector<4x8x8xf32>
    %212 = tpu.matmul %211, %199, %cst_87 {dimension_numbers = #tpu.dot_dimension_numbers<[2], [1], [1], [2], [0, 0, 0, 1, 1, 2], [0], [0]>} : vector<4x8x8xf32>, vector<4x8x8xf32>, vector<4x8x8xf32> -> vector<4x8x8xf32>
    "tpu.trace_stop"() : () -> ()
    %213 = vector.extract_strided_slice %212 {offsets = [0, 0, 0], sizes = [1, 8, 8], strides = [1, 1, 1]} : vector<4x8x8xf32> to vector<1x8x8xf32>
    %214 = vector.shape_cast %213 : vector<1x8x8xf32> to vector<8x8xf32>
    %215 = vector.extract_strided_slice %212 {offsets = [1, 0, 0], sizes = [1, 8, 8], strides = [1, 1, 1]} : vector<4x8x8xf32> to vector<1x8x8xf32>
    %216 = vector.shape_cast %215 : vector<1x8x8xf32> to vector<8x8xf32>
    %217 = vector.extract_strided_slice %212 {offsets = [2, 0, 0], sizes = [1, 8, 8], strides = [1, 1, 1]} : vector<4x8x8xf32> to vector<1x8x8xf32>
    %218 = vector.shape_cast %217 : vector<1x8x8xf32> to vector<8x8xf32>
    %219 = vector.extract_strided_slice %212 {offsets = [3, 0, 0], sizes = [1, 8, 8], strides = [1, 1, 1]} : vector<4x8x8xf32> to vector<1x8x8xf32>
    %220 = vector.shape_cast %219 : vector<1x8x8xf32> to vector<8x8xf32>
    %221 = tpu.concatenate %214, %216, %218, %220 in 1 : vector<8x8xf32>, vector<8x8xf32>, vector<8x8xf32>, vector<8x8xf32> -> vector<8x32xf32>
    %222 = tpu.concatenate %190, %221 in 0 : vector<8x32xf32>, vector<8x32xf32> -> vector<16x32xf32>
    %cst_88 = arith.constant dense<0.000000e+00> : vector<16x32xf32>
    %223 = tpu.matmul %222, %142, %cst_88 {dimension_numbers = #tpu.dot_dimension_numbers<[1], [0], [0], [1], [0, 0, 1, 1], [], []>} : vector<16x32xf32>, vector<32x32xf32>, vector<16x32xf32> -> vector<16x32xf32>
    %224 = vector.broadcast %150 : vector<1x32xf32> to vector<16x32xf32>
    %225 = arith.addf %223, %224 : vector<16x32xf32>
    %226 = arith.addf %110, %225 : vector<16x32xf32>
    %c0_89 = arith.constant 0 : index
    %c0_90 = arith.constant 0 : index
    %c0_91 = arith.constant 0 : index
    %227 = vector.load %arg19[%c0_89, %c0_90, %c0_91] : memref<1x1x32xf32, #tpu.memory_space<vmem>>, vector<1x1x32xf32>
    %228 = vector.shape_cast %227 : vector<1x1x32xf32> to vector<1x32xf32>
    %c0_92 = arith.constant 0 : index
    %c0_93 = arith.constant 0 : index
    %c0_94 = arith.constant 0 : index
    %229 = vector.load %arg20[%c0_92, %c0_93, %c0_94] : memref<1x1x32xf32, #tpu.memory_space<vmem>>, vector<1x1x32xf32>
    %230 = vector.shape_cast %229 : vector<1x1x32xf32> to vector<1x32xf32>
    %cst_95 = arith.constant dense<0.000000e+00> : vector<16xf32>
    %231 = vector.multi_reduction <add>, %226, %cst_95 [1] : vector<16x32xf32> to vector<16xf32>
    %232 = vector.shape_cast %231 : vector<16xf32> to vector<16x1xf32>
    %cst_96 = arith.constant 3.200000e+01 : f32
    %233 = vector.broadcast %cst_96 : f32 to vector<16x1xf32>
    %234 = arith.divf %232, %233 : vector<16x1xf32>
    %235 = vector.broadcast %234 : vector<16x1xf32> to vector<16x32xf32>
    %236 = arith.subf %226, %235 : vector<16x32xf32>
    %237 = arith.mulf %236, %236 : vector<16x32xf32>
    %cst_97 = arith.constant dense<0.000000e+00> : vector<16xf32>
    %238 = vector.multi_reduction <add>, %237, %cst_97 [1] : vector<16x32xf32> to vector<16xf32>
    %239 = vector.shape_cast %238 : vector<16xf32> to vector<16x1xf32>
    %cst_98 = arith.constant 3.200000e+01 : f32
    %240 = vector.broadcast %cst_98 : f32 to vector<16x1xf32>
    %241 = arith.divf %239, %240 : vector<16x1xf32>
    %cst_99 = arith.constant 9.99999974E-6 : f32
    %242 = vector.broadcast %cst_99 : f32 to vector<16x1xf32>
    %243 = arith.addf %241, %242 : vector<16x1xf32>
    %244 = math.rsqrt %243 : vector<16x1xf32>
    %245 = vector.broadcast %244 : vector<16x1xf32> to vector<16x32xf32>
    %246 = arith.mulf %236, %245 : vector<16x32xf32>
    %247 = vector.broadcast %228 : vector<1x32xf32> to vector<16x32xf32>
    %248 = arith.mulf %246, %247 : vector<16x32xf32>
    %249 = vector.broadcast %230 : vector<1x32xf32> to vector<16x32xf32>
    %250 = arith.addf %248, %249 : vector<16x32xf32>
    %c0_100 = arith.constant 0 : index
    %c0_101 = arith.constant 0 : index
    %c0_102 = arith.constant 0 : index
    %251 = vector.load %arg21[%c0_100, %c0_101, %c0_102] : memref<1x32x96xf32, #tpu.memory_space<vmem>>, vector<1x32x96xf32>
    %252 = vector.shape_cast %251 : vector<1x32x96xf32> to vector<32x96xf32>
    %c0_103 = arith.constant 0 : index
    %c0_104 = arith.constant 0 : index
    %c0_105 = arith.constant 0 : index
    %253 = vector.load %arg22[%c0_103, %c0_104, %c0_105] : memref<1x1x96xf32, #tpu.memory_space<vmem>>, vector<1x1x96xf32>
    %254 = vector.shape_cast %253 : vector<1x1x96xf32> to vector<1x96xf32>
    %c0_106 = arith.constant 0 : index
    %c0_107 = arith.constant 0 : index
    %c0_108 = arith.constant 0 : index
    %255 = vector.load %arg23[%c0_106, %c0_107, %c0_108] : memref<1x96x32xf32, #tpu.memory_space<vmem>>, vector<1x96x32xf32>
    %256 = vector.shape_cast %255 : vector<1x96x32xf32> to vector<96x32xf32>
    %c0_109 = arith.constant 0 : index
    %c0_110 = arith.constant 0 : index
    %c0_111 = arith.constant 0 : index
    %257 = vector.load %arg24[%c0_109, %c0_110, %c0_111] : memref<1x1x32xf32, #tpu.memory_space<vmem>>, vector<1x1x32xf32>
    %258 = vector.shape_cast %257 : vector<1x1x32xf32> to vector<1x32xf32>
    %cst_112 = arith.constant dense<0.000000e+00> : vector<16x96xf32>
    %259 = tpu.matmul %250, %252, %cst_112 {dimension_numbers = #tpu.dot_dimension_numbers<[1], [0], [0], [1], [0, 0, 1, 1], [], []>} : vector<16x32xf32>, vector<32x96xf32>, vector<16x96xf32> -> vector<16x96xf32>
    %260 = vector.broadcast %254 : vector<1x96xf32> to vector<16x96xf32>
    %261 = arith.addf %259, %260 : vector<16x96xf32>
    %cst_113 = arith.constant 5.000000e-01 : f32
    %262 = vector.broadcast %cst_113 : f32 to vector<16x96xf32>
    %263 = arith.mulf %262, %261 : vector<16x96xf32>
    %cst_114 = arith.constant 4.471500e-02 : f32
    %264 = vector.broadcast %cst_114 : f32 to vector<16x96xf32>
    %265 = arith.mulf %264, %261 : vector<16x96xf32>
    %266 = arith.mulf %265, %261 : vector<16x96xf32>
    %267 = arith.mulf %266, %261 : vector<16x96xf32>
    %268 = arith.addf %261, %267 : vector<16x96xf32>
    %cst_115 = arith.constant 0.797884583 : f32
    %269 = vector.broadcast %cst_115 : f32 to vector<16x96xf32>
    %270 = arith.mulf %269, %268 : vector<16x96xf32>
    %271 = math.tanh %270 : vector<16x96xf32>
    %cst_116 = arith.constant 1.000000e+00 : f32
    %272 = vector.broadcast %cst_116 : f32 to vector<16x96xf32>
    %273 = arith.addf %272, %271 : vector<16x96xf32>
    %274 = arith.mulf %263, %273 : vector<16x96xf32>
    %cst_117 = arith.constant dense<0.000000e+00> : vector<16x32xf32>
    %275 = tpu.matmul %274, %256, %cst_117 {dimension_numbers = #tpu.dot_dimension_numbers<[1], [0], [0], [1], [0, 0, 1, 1], [], []>} : vector<16x96xf32>, vector<96x32xf32>, vector<16x32xf32> -> vector<16x32xf32>
    %276 = vector.broadcast %258 : vector<1x32xf32> to vector<16x32xf32>
    %277 = arith.addf %275, %276 : vector<16x32xf32>
    %278 = arith.addf %226, %277 : vector<16x32xf32>
    %c0_118 = arith.constant 0 : index
    %c0_119 = arith.constant 0 : index
    %279 = vector.load %arg25[%c0_118, %c0_119] : memref<16x32xf32, #tpu.memory_space<vmem>>, vector<16x32xf32>
    tpu.vector_store %arg25[%c0_118, %c0_119], %278 {strides = array<i32>} : memref<16x32xf32, #tpu.memory_space<vmem>>, vector<16x32xf32>,
    return
  }
  func.func @transform_0(%arg0: i32) -> (i32, i32) {
    %c0_i32 = arith.constant 0 : i32
    %c0_i32_0 = arith.constant 0 : i32
    %c0_i32_1 = arith.constant 0 : i32
    return %c0_i32, %c0_i32_0 : i32, i32
  }
  func.func @transform_1(%arg0: i32) -> (i32, i32) {
    %c0_i32 = arith.constant 0 : i32
    %c0_i32_0 = arith.constant 0 : i32
    %c0_i32_1 = arith.constant 0 : i32
    return %c0_i32, %c0_i32_0 : i32, i32
  }
  func.func @transform_2(%arg0: i32) -> (i32, i32, i32) {
    %c0_i32 = arith.constant 0 : i32
    %c0_i32_0 = arith.constant 0 : i32
    %c0_i32_1 = arith.constant 0 : i32
    return %arg0, %c0_i32, %c0_i32_0 : i32, i32, i32
  }
  func.func @transform_3(%arg0: i32) -> (i32, i32, i32) {
    %c0_i32 = arith.constant 0 : i32
    %c0_i32_0 = arith.constant 0 : i32
    %c0_i32_1 = arith.constant 0 : i32
    return %arg0, %c0_i32, %c0_i32_0 : i32, i32, i32
  }
  func.func @transform_4(%arg0: i32) -> (i32, i32, i32) {
    %c0_i32 = arith.constant 0 : i32
    %c0_i32_0 = arith.constant 0 : i32
    %c0_i32_1 = arith.constant 0 : i32
    return %arg0, %c0_i32, %c0_i32_0 : i32, i32, i32
  }
  func.func @transform_5(%arg0: i32) -> (i32, i32, i32) {
    %c0_i32 = arith.constant 0 : i32
    %c0_i32_0 = arith.constant 0 : i32
    %c0_i32_1 = arith.constant 0 : i32
    return %arg0, %c0_i32, %c0_i32_0 : i32, i32, i32
  }
  func.func @transform_6(%arg0: i32) -> (i32, i32, i32) {
    %c0_i32 = arith.constant 0 : i32
    %c0_i32_0 = arith.constant 0 : i32
    %c0_i32_1 = arith.constant 0 : i32
    return %arg0, %c0_i32, %c0_i32_0 : i32, i32, i32
  }
  func.func @transform_7(%arg0: i32) -> (i32, i32, i32) {
    %c0_i32 = arith.constant 0 : i32
    %c0_i32_0 = arith.constant 0 : i32
    %c0_i32_1 = arith.constant 0 : i32
    return %arg0, %c0_i32, %c0_i32_0 : i32, i32, i32
  }
  func.func @transform_8(%arg0: i32) -> (i32, i32, i32) {
    %c0_i32 = arith.constant 0 : i32
    %c0_i32_0 = arith.constant 0 : i32
    %c0_i32_1 = arith.constant 0 : i32
    return %arg0, %c0_i32, %c0_i32_0 : i32, i32, i32
  }
  func.func @transform_9(%arg0: i32) -> (i32, i32, i32) {
    %c0_i32 = arith.constant 0 : i32
    %c0_i32_0 = arith.constant 0 : i32
    %c0_i32_1 = arith.constant 0 : i32
    return %arg0, %c0_i32, %c0_i32_0 : i32, i32, i32
  }
  func.func @transform_10(%arg0: i32) -> (i32, i32, i32) {
    %c0_i32 = arith.constant 0 : i32
    %c0_i32_0 = arith.constant 0 : i32
    %c0_i32_1 = arith.constant 0 : i32
    return %arg0, %c0_i32, %c0_i32_0 : i32, i32, i32
  }
  func.func @transform_11(%arg0: i32) -> (i32, i32, i32) {
    %c0_i32 = arith.constant 0 : i32
    %c0_i32_0 = arith.constant 0 : i32
    %c0_i32_1 = arith.constant 0 : i32
    return %arg0, %c0_i32, %c0_i32_0 : i32, i32, i32
  }
  func.func @transform_12(%arg0: i32) -> (i32, i32, i32) {
    %c0_i32 = arith.constant 0 : i32
    %c0_i32_0 = arith.constant 0 : i32
    %c0_i32_1 = arith.constant 0 : i32
    return %arg0, %c0_i32, %c0_i32_0 : i32, i32, i32
  }
  func.func @transform_13(%arg0: i32) -> (i32, i32, i32) {
    %c0_i32 = arith.constant 0 : i32
    %c0_i32_0 = arith.constant 0 : i32
    %c0_i32_1 = arith.constant 0 : i32
    return %arg0, %c0_i32, %c0_i32_0 : i32, i32, i32
  }
  func.func @transform_14(%arg0: i32) -> (i32, i32, i32) {
    %c0_i32 = arith.constant 0 : i32
    %c0_i32_0 = arith.constant 0 : i32
    %c0_i32_1 = arith.constant 0 : i32
    return %arg0, %c0_i32, %c0_i32_0 : i32, i32, i32
  }
  func.func @transform_15(%arg0: i32) -> (i32, i32, i32) {
    %c0_i32 = arith.constant 0 : i32
    %c0_i32_0 = arith.constant 0 : i32
    %c0_i32_1 = arith.constant 0 : i32
    return %arg0, %c0_i32, %c0_i32_0 : i32, i32, i32
  }
  func.func @transform_16(%arg0: i32) -> (i32, i32, i32) {
    %c0_i32 = arith.constant 0 : i32
    %c0_i32_0 = arith.constant 0 : i32
    %c0_i32_1 = arith.constant 0 : i32
    return %arg0, %c0_i32, %c0_i32_0 : i32, i32, i32
  }
  func.func @transform_17(%arg0: i32) -> (i32, i32, i32) {
    %c0_i32 = arith.constant 0 : i32
    %c0_i32_0 = arith.constant 0 : i32
    %c0_i32_1 = arith.constant 0 : i32
    return %arg0, %c0_i32, %c0_i32_0 : i32, i32, i32
  }
  func.func @transform_18(%arg0: i32) -> (i32, i32, i32) {
    %c0_i32 = arith.constant 0 : i32
    %c0_i32_0 = arith.constant 0 : i32
    %c0_i32_1 = arith.constant 0 : i32
    return %arg0, %c0_i32, %c0_i32_0 : i32, i32, i32
  }
  func.func @transform_19(%arg0: i32) -> (i32, i32, i32) {
    %c0_i32 = arith.constant 0 : i32
    %c0_i32_0 = arith.constant 0 : i32
    %c0_i32_1 = arith.constant 0 : i32
    return %arg0, %c0_i32, %c0_i32_0 : i32, i32, i32
  }
  func.func @transform_20(%arg0: i32) -> (i32, i32, i32) {
    %c0_i32 = arith.constant 0 : i32
    %c0_i32_0 = arith.constant 0 : i32
    %c0_i32_1 = arith.constant 0 : i32
    return %arg0, %c0_i32, %c0_i32_0 : i32, i32, i32
  }
  func.func @transform_21(%arg0: i32) -> (i32, i32, i32) {
    %c0_i32 = arith.constant 0 : i32
    %c0_i32_0 = arith.constant 0 : i32
    %c0_i32_1 = arith.constant 0 : i32
    return %arg0, %c0_i32, %c0_i32_0 : i32, i32, i32
  }
  func.func @transform_22(%arg0: i32) -> (i32, i32, i32) {
    %c0_i32 = arith.constant 0 : i32
    %c0_i32_0 = arith.constant 0 : i32
    %c0_i32_1 = arith.constant 0 : i32
    return %arg0, %c0_i32, %c0_i32_0 : i32, i32, i32
  }
  func.func @transform_23(%arg0: i32) -> (i32, i32, i32) {
    %c0_i32 = arith.constant 0 : i32
    %c0_i32_0 = arith.constant 0 : i32
    %c0_i32_1 = arith.constant 0 : i32
    return %arg0, %c0_i32, %c0_i32_0 : i32, i32, i32
  }
  func.func @transform_24(%arg0: i32) -> (i32, i32) {
    %c0_i32 = arith.constant 0 : i32
    %c0_i32_0 = arith.constant 0 : i32
    %c0_i32_1 = arith.constant 0 : i32
    return %c0_i32, %c0_i32_0 : i32, i32
  }
}

</mosaic_0001>

<bundles_post_ra>
// kernel: transformer_forward.1
= control target key start
LH: loop header
LB: loop body
LE: loop exit
PB: predicated region body
PF: predicated region fallthrough
CT: control target
= control target key end

     0   :  { %s10165_s0 = inlined_call_operand.vmem [shape: f32[16,32], index: 0, kind: input, shape index: {}]   ;;  %s10166_s1 = inlined_call_operand.vmem [shape: f32[8,8], index: 1, kind: input, shape index: {}]   ;;  %s10167_s2 = inlined_call_operand.vmem [shape: f32[2,1,32], index: 2, kind: input, shape index: {}]   ;;  %s10168_s3 = inlined_call_operand.hbm [shape: f32[2,1,32], index: 3, kind: input, shape index: {}]   ;;  %s10169_s4 = inlined_call_operand.vmem [shape: f32[2,32,32], index: 4, kind: input, shape index: {}]   ;;  %s10170_s5 = inlined_call_operand.vmem [shape: f32[2,32,32], index: 5, kind: input, shape index: {}]   ;;  %s10171_s6 = inlined_call_operand.vmem [shape: f32[2,32,32], index: 6, kind: input, shape index: {}]   ;;  %s10172_s7 = inlined_call_operand.vmem [shape: f32[2,32,32], index: 7, kind: input, shape index: {}]   ;;  %s10173_s8 = inlined_call_operand.hbm [shape: f32[2,1,32], index: 8, kind: input, shape index: {}]   ;;  %s10174_s9 = inlined_call_operand.hbm [shape: f32[2,1,32], index: 9, kind: input, shape index: {}]   ;;  %s10175_s10 = inlined_call_operand.hbm [shape: f32[2,32,32], index: 10, kind: input, shape index: {}]   ;;  %s10176_s11 = inlined_call_operand.hbm [shape: f32[2,1,32], index: 11, kind: input, shape index: {}]   ;;  %s10177_s12 = inlined_call_operand.hbm [shape: f32[2,32,32], index: 12, kind: input, shape index: {}]   ;;  %s10178_s13 = inlined_call_operand.hbm [shape: f32[2,1,32], index: 13, kind: input, shape index: {}]   ;;  %s10179_s14 = inlined_call_operand.hbm [shape: f32[2,32,32], index: 14, kind: input, shape index: {}]   ;;  %s10180_s15 = inlined_call_operand.hbm [shape: f32[2,1,32], index: 15, kind: input, shape index: {}]   ;;  %s10181_s16 = inlined_call_operand.hbm [shape: f32[2,32,32], index: 16, kind: input, shape index: {}]   ;;  %s10182_s17 = inlined_call_operand.hbm [shape: f32[2,1,32], index: 17, kind: input, shape index: {}]   ;;  %s10183_s18 = inlined_call_operand.hbm [shape: f32[2,1,32], index: 18, kind: input, shape index: {}]   ;;  %s10184_s19 = inlined_call_operand.hbm [shape: f32[2,1,32], index: 19, kind: input, shape index: {}]   ;;  %s10185_s20 = inlined_call_operand.hbm [shape: f32[2,32,96], index: 20, kind: input, shape index: {}]   ;;  %s10186_s21 = inlined_call_operand.hbm [shape: f32[2,1,96], index: 21, kind: input, shape index: {}]   ;;  %s10187_s22 = inlined_call_operand.vmem [shape: f32[2,96,32], index: 22, kind: input, shape index: {}]   ;;  %s10188_s23 = inlined_call_operand.hbm [shape: f32[2,1,32], index: 23, kind: input, shape index: {}]   ;;  %s10189_s24 = inlined_call_operand.hbm [shape: f32[16,32], index: 24, kind: output, shape index: {}]  }
   0x1   :  { %10214 = sst [smem:[#allocation46_spill]] %s10165_s0 }
   0x2   :  { %10215 = sst [smem:[#allocation47_spill]] %s10166_s1 }
   0x3   :  { %10216 = sst [smem:[#allocation48_spill]] %s10167_s2 }
   0x4   :  { %10217 = sst [smem:[#allocation49_spill]] %s10168_s3 }
   0x5   :  { %10218 = sst [smem:[#allocation50_spill]] %s10169_s4 }
   0x6   :  { %10219 = sst [smem:[#allocation51_spill]] %s10170_s5 }
   0x7   :  { %10220 = sst [smem:[#allocation52_spill]] %s10171_s6 }
   0x8   :  { %10221 = sst [smem:[#allocation53_spill]] %s10172_s7 }
   0x9   :  { %10222 = sst [smem:[#allocation54_spill]] %s10173_s8 }
   0xa   :  { %10223 = sst [smem:[#allocation55_spill]] %s10174_s9 }
   0xb   :  { %10224 = sst [smem:[#allocation56_spill]] %s10175_s10 }
   0xc   :  { %10225 = sst [smem:[#allocation57_spill]] %s10176_s11 }
   0xd   :  { %10226 = sst [smem:[#allocation58_spill]] %s10177_s12 }
   0xe   :  { %10227 = sst [smem:[#allocation59_spill]] %s10178_s13 }
   0xf   :  { %10228 = sst [smem:[#allocation60_spill]] %s10179_s14 }
  0x10   :  { %10229 = sst [smem:[#allocation61_spill]] %s10180_s15 }
  0x11   :  { %10230 = sst [smem:[#allocation62_spill]] %s10181_s16 }
  0x12   :  { %10231 = sst [smem:[#allocation63_spill]] %s10182_s17 }
  0x13   :  { %10232 = sst [smem:[#allocation64_spill]] %s10183_s18 }
  0x14   :  { %10233 = sst [smem:[#allocation65_spill]] %s10187_s22 }
  0x15   :  { %10234 = sst [smem:[#allocation66_spill]] %s10189_s24 }
  0x16   :  { %29 = vsyncpa [#allocation3], 0 }
  0x17   :  { %31 = vsyncpa [#allocation3 + $0x1], 0 }
  0x18   :  { %32 = vsyncpa [#allocation6], 0 }
  0x19   :  { %34 = vsyncpa [#allocation6 + $0x1], 0 }
  0x1a   :  { %35 = vsyncpa [#allocation9], 0 }
  0x1b   :  { %37 = vsyncpa [#allocation9 + $0x1], 0 }
  0x1c   :  { %38 = vsyncpa [#allocation12], 0 }
  0x1d   :  { %40 = vsyncpa [#allocation12 + $0x1], 0 }
  0x1e   :  { %41 = vsyncpa [#allocation15], 0 }
  0x1f   :  { %43 = vsyncpa [#allocation15 + $0x1], 0 }
  0x20   :  { %44 = vsyncpa [#allocation18], 0 }
  0x21   :  { %46 = vsyncpa [#allocation18 + $0x1], 0 }
  0x22   :  { %47 = vsyncpa [#allocation21], 0 }
  0x23   :  { %49 = vsyncpa [#allocation21 + $0x1], 0 }
  0x24   :  { %50 = vsyncpa [#allocation24], 0 }
  0x25   :  { %52 = vsyncpa [#allocation24 + $0x1], 0 }
  0x26   :  { %53 = vsyncpa [#allocation27], 0 }
  0x27   :  { %55 = vsyncpa [#allocation27 + $0x1], 0 }
  0x28   :  { %56 = vsyncpa [#allocation4], 0  ;;  %s8782_s5 = smov 0   ;;  %s8784_s26 = smov 0  }
  0x29   :  { %s8786_s27 = smov 0   ;;  %s8788_s28 = smov 0  }
  0x2a LB: > { %10235 = sst [smem:[#allocation39_spill]] %s8617_s26  ;;  %s8801_s6 = sadd.s32 4294967295, %s8625_s28   ;;  %s8625_s28 = sphi %s8788_s28, %s10290_s28   ;;  %s8621_s27 = sphi %s8786_s27, %s10293_s27   ;;  %s8617_s26 = sphi %s8784_s26, %s10292_s26   ;;  %s8613_s5 = sphi %s8782_s5, %s10291_s5  }
  0x2b   : > { %10236 = sst [smem:[#allocation40_spill]] %s8621_s27  ;;  %s8804_s2 = sadd.s32 1, %s8625_s28  }
  0x2c   : > { %10237 = sst [smem:[#allocation41_spill]] %s8625_s28  ;;  %s134_s29 = ssub.s32 %s8625_s28, %s8804_s2 }
  0x2d   : > { %10238 = sst [smem:[#allocation42_spill]] %s8801_s6  ;;  %s137_s0 = sadd.s32 1, %s8621_s27 }
  0x2e   : > { %10239 = sst [smem:[#allocation43_spill]] %s8804_s2  ;;  %p135_p0 = scmp.eq.s32.totalorder %s134_s29, 0 }
  0x2f   : > { %p144_p1 = scmp.ne.s32.totalorder %s8621_s27, %s8617_s26  ;;  %p145_p2 = scmp.eq.s32.totalorder %s8625_s28, 0 }
  0x30   : > { %p150_p3 = scmp.ne.s32.totalorder %s8617_s26, %s8613_s5  ;;  %p151_p5 = scmp.eq.s32.totalorder %s8801_s6, 0 }
  0x31   : > { %s8814_s7 = scalar_select %p135_p0, %s8621_s27, %s137_s0  }
  0x32   : > { %p8816_p4 = por %p145_p2, %p144_p1  ;;  %p8821_p6 = por %p151_p5, %p150_p3 }
  0x33   : > { %10240 = sst [smem:[#allocation44_spill]] %s8814_s7  ;;  %p7240_p7 = scmp.ge.s32.totalorder %s8625_s28, 2 }
  0x34   : > { %s10242_s3 = scalar_select %p8821_p6, 1, 0 }
  0x35   : > { %717 = sbr.rel (%p7240_p7) target bundleno = 482 (0x1e2), region = 24  ;;  %s8827_s25 = sand.u32 (!%p7240_p7), 1, %s8621_s27  }
  0x36   : > { %10243 = sst [smem:[#allocation45_spill]] %s10242_s3  ;;  %s8830_s8 = sshll.u32 (!%p7240_p7), %s8625_s28, 4 }
  0x37   : > { %s8833_s4 = sand.u32 (!%p7240_p7), 1, %s8625_s28   ;;  %s10244_s29 = sld [smem:[#allocation54_spill]] (!%p7240_p7) }
  0x38   : > { %s779_s7 = scalar_lea.vmem (!%p7240_p7), [#allocation5], %s8827_s25  ;;  %s8845_s2 = sshll.u32 (!%p7240_p7), %s8827_s25, 5 }
  0x39   : > { %s786_s27 = sshll.u32 (!%p7240_p7), %s779_s7, 4  ;;  %s10204_s24 = scalar_lea.sflag (!%p7240_p7), [#allocation6], %s8833_s4  ;;  %s8842_s27 = int_to_ptr.vmem [resolvable:$true] %s786_s27 }
  0x3d   : > { %s8839_s0 = scalar_lea.hbm %s10244_s29, %s8830_s8  ;;  %s8085_s6 = scalar_lea.hbm %s10244_s29, 32 }
  0x3e   : > { %s8081_s22 = scalar_lea.hbm %s8839_s0, 16  ;;  %p8086_p11 = scmp.lt.u32.totalorder %s8839_s0, %s10244_s29 }
  0x3f   : > { %p8082_p8 = scmp.ne.s32.totalorder %s8839_s0, %s8081_s22  ;;  %p8087_p12 = scmp.lt.u32.totalorder %s8085_s6, %s8081_s22 }
  0x40   : > { %p8089_p0 = scmp.lt.u32.totalorder %s8081_s22, %s8839_s0 }
  0x41   : > { %p8083_p9 = pnand %p8082_p8, %p8816_p4  ;;  %p8088_p13 = por %p8087_p12, %p8086_p11 }
  0x43   : > { %p8084_p10 = pneg %p8083_p9  ;;  %p8090_p1 = por %p8089_p0, %p8088_p13 }
  0x45   : > { %p8091_p2 = pnand %p8090_p1, %p8084_p10 }
  0x47   : > { %8094 = shalt.err (!%p8091_p2)
}
  0x48   : > { %s8095_s7 = scalar_lea.vmem %s8842_s27, 16  ;;  %s8627_s1 = smov [#allocation5]  }
  0x49   : > { %p8096_p3 = scmp.ne.s32.totalorder %s8842_s27, %s8095_s7  ;;  %s8099_s5 = sshll.u32 %s8627_s1, 4  ;;  %s8100_s5 = int_to_ptr.vmem [resolvable:$false] %s8099_s5 }
  0x4a   : > { %s8101_s26 = scalar_lea.vmem %s8100_s5, 32  ;;  %p8102_p8 = scmp.lt.s32.totalorder %s8842_s27, %s8100_s5 }
  0x4b   : > { %p8097_p5 = pnand %p8096_p3, %p8816_p4  ;;  %p8103_p9 = scmp.lt.s32.totalorder %s8101_s26, %s8095_s7 }
  0x4d   : > { %p8098_p7 = pneg %p8097_p5  ;;  %p8104_p11 = por %p8103_p9, %p8102_p8 }
  0x4f   : > { %p8105_p12 = pnand %p8104_p11, %p8098_p7 }
  0x51   : > { %8108 = shalt.err (!%p8105_p12)
}
  0x52   : > { %7916 = dma.hbm_to_vmem [thread:$0]  (%p8816_p4), %s8839_s0, 16, %s8842_s27, %s10204_s24  }
  0x53   : > { %s8872_s22 = sshll.u32 %s8625_s28, 9  ;;  %s10245_s10 = sld [smem:[#allocation56_spill]] }
  0x54   : > { %s814_s1 = scalar_lea.vmem [#allocation8], %s8845_s2  ;;  %s10207_s26 = scalar_lea.sflag [#allocation9], %s8833_s4 }
  0x55   : > { %s821_s5 = sshll.u32 %s814_s1, 4  ;;  %s8881_s5 = int_to_ptr.vmem [resolvable:$true] %s821_s5 }
  0x59   : > { %s8878_s7 = scalar_lea.hbm %s10245_s10, %s8872_s22  ;;  %s8113_s6 = scalar_lea.hbm %s10245_s10, 1024 }
  0x5a   : > { %s8109_s29 = scalar_lea.hbm %s8878_s7, 512  ;;  %p8114_p1 = scmp.lt.u32.totalorder %s8878_s7, %s10245_s10 }
  0x5b   : > { %p8110_p10 = scmp.ne.s32.totalorder %s8878_s7, %s8109_s29  ;;  %p8115_p2 = scmp.lt.u32.totalorder %s8113_s6, %s8109_s29 }
  0x5c   : > { %p8117_p5 = scmp.lt.u32.totalorder %s8109_s29, %s8878_s7 }
  0x5d   : > { %p8111_p13 = pnand %p8110_p10, %p8816_p4  ;;  %p8116_p3 = por %p8115_p2, %p8114_p1 }
  0x5f   : > { %p8112_p0 = pneg %p8111_p13  ;;  %p8118_p7 = por %p8117_p5, %p8116_p3 }
  0x61   : > { %p8119_p8 = pnand %p8118_p7, %p8112_p0 }
  0x63   : > { %8122 = shalt.err (!%p8119_p8)
}
  0x64   : > { %s8123_s1 = scalar_lea.vmem %s8881_s5, 512  ;;  %s8628_s27 = smov [#allocation8]  }
  0x65   : > { %p8124_p9 = scmp.ne.s32.totalorder %s8881_s5, %s8123_s1  ;;  %s8127_s0 = sshll.u32 %s8628_s27, 4  ;;  %s8128_s0 = int_to_ptr.vmem [resolvable:$false] %s8127_s0 }
  0x66   : > { %s8129_s24 = scalar_lea.vmem %s8128_s0, 1024  ;;  %p8130_p10 = scmp.lt.s32.totalorder %s8881_s5, %s8128_s0 }
  0x67   : > { %p8125_p11 = pnand %p8124_p9, %p8816_p4  ;;  %p8131_p13 = scmp.lt.s32.totalorder %s8129_s24, %s8123_s1 }
  0x69   : > { %p8126_p12 = pneg %p8125_p11  ;;  %p8132_p1 = por %p8131_p13, %p8130_p10 }
  0x6b   : > { %p8133_p2 = pnand %p8132_p1, %p8126_p12 }
  0x6d   : > { %8136 = shalt.err (!%p8133_p2)
}
  0x6e   : > { %s10211_s29 = smov 128   ;;  %s8630_s6 = smov 8  }
  0x6f   : > { %7918 = dma.hbm_to_vmem [thread:$0]  (%p8816_p4), %s8878_s7, 512, %s8881_s5, %s10207_s26, %s10211_s29, %s10211_s29, %s8630_s6  }
  0x70   : > { %s10246_s12 = sld [smem:[#allocation58_spill]]  ;;  %s852_s0 = scalar_lea.vmem [#allocation11], %s8845_s2 }
  0x71   : > { %s859_s24 = sshll.u32 %s852_s0, 4  ;;  %s10208_s10 = scalar_lea.sflag [#allocation12], %s8833_s4  ;;  %s8917_s24 = int_to_ptr.vmem [resolvable:$true] %s859_s24 }
  0x76   : > { %s8914_s27 = scalar_lea.hbm %s10246_s12, %s8872_s22  ;;  %s8141_s3 = scalar_lea.hbm %s10246_s12, 1024 }
  0x77   : > { %s8137_s28 = scalar_lea.hbm %s8914_s27, 512  ;;  %p8142_p7 = scmp.lt.u32.totalorder %s8914_s27, %s10246_s12 }
  0x78   : > { %p8138_p0 = scmp.ne.s32.totalorder %s8914_s27, %s8137_s28  ;;  %p8143_p8 = scmp.lt.u32.totalorder %s8141_s3, %s8137_s28 }
  0x79   : > { %p8145_p11 = scmp.lt.u32.totalorder %s8137_s28, %s8914_s27 }
  0x7a   : > { %p8139_p3 = pnand %p8138_p0, %p8816_p4  ;;  %p8144_p9 = por %p8143_p8, %p8142_p7 }
  0x7c   : > { %p8140_p5 = pneg %p8139_p3  ;;  %p8146_p12 = por %p8145_p11, %p8144_p9 }
  0x7e   : > { %p8147_p10 = pnand %p8146_p12, %p8140_p5 }
  0x80   : > { %8150 = shalt.err (!%p8147_p10)
}
  0x81   : > { %s8151_s0 = scalar_lea.vmem %s8917_s24, 512  ;;  %s8631_s7 = smov [#allocation11]  }
  0x82   : > { %p8152_p13 = scmp.ne.s32.totalorder %s8917_s24, %s8151_s0  ;;  %s8155_s5 = sshll.u32 %s8631_s7, 4  ;;  %s8156_s5 = int_to_ptr.vmem [resolvable:$false] %s8155_s5 }
  0x83   : > { %s8157_s26 = scalar_lea.vmem %s8156_s5, 1024  ;;  %p8158_p0 = scmp.lt.s32.totalorder %s8917_s24, %s8156_s5 }
  0x84   : > { %p8153_p1 = pnand %p8152_p13, %p8816_p4  ;;  %p8159_p3 = scmp.lt.s32.totalorder %s8157_s26, %s8151_s0 }
  0x86   : > { %p8154_p2 = pneg %p8153_p1  ;;  %p8160_p7 = por %p8159_p3, %p8158_p0 }
  0x88   : > { %p8161_p8 = pnand %p8160_p7, %p8154_p2 }
  0x8a   : > { %8164 = shalt.err (!%p8161_p8)
}
  0x8b   : > { %7920 = dma.hbm_to_vmem [thread:$0]  (%p8816_p4), %s8914_s27, 512, %s8917_s24, %s10208_s10, %s10211_s29, %s10211_s29, %s8630_s6  }
  0x8c   : > { %s10247_s14 = sld [smem:[#allocation60_spill]]  ;;  %s890_s0 = scalar_lea.vmem [#allocation14], %s8845_s2 }
  0x8d   : > { %s897_s7 = sshll.u32 %s890_s0, 4  ;;  %s10209_s5 = scalar_lea.sflag [#allocation15], %s8833_s4  ;;  %s8953_s7 = int_to_ptr.vmem [resolvable:$true] %s897_s7 }
  0x92   : > { %s8950_s1 = scalar_lea.hbm %s10247_s14, %s8872_s22  ;;  %s8169_s28 = scalar_lea.hbm %s10247_s14, 1024 }
  0x93   : > { %s8165_s26 = scalar_lea.hbm %s8950_s1, 512  ;;  %p8170_p12 = scmp.lt.u32.totalorder %s8950_s1, %s10247_s14 }
  0x94   : > { %p8166_p5 = scmp.ne.s32.totalorder %s8950_s1, %s8165_s26  ;;  %p8171_p10 = scmp.lt.u32.totalorder %s8169_s28, %s8165_s26 }
  0x95   : > { %p8173_p1 = scmp.lt.u32.totalorder %s8165_s26, %s8950_s1 }
  0x96   : > { %p8167_p9 = pnand %p8166_p5, %p8816_p4  ;;  %p8172_p13 = por %p8171_p10, %p8170_p12 }
  0x98   : > { %p8168_p11 = pneg %p8167_p9  ;;  %p8174_p2 = por %p8173_p1, %p8172_p13 }
  0x9a   : > { %p8175_p0 = pnand %p8174_p2, %p8168_p11 }
  0x9c   : > { %8178 = shalt.err (!%p8175_p0)
}
  0x9d   : > { %s8179_s0 = scalar_lea.vmem %s8953_s7, 512  ;;  %s8632_s27 = smov [#allocation14]  }
  0x9e   : > { %p8180_p3 = scmp.ne.s32.totalorder %s8953_s7, %s8179_s0  ;;  %s8183_s24 = sshll.u32 %s8632_s27, 4  ;;  %s8184_s24 = int_to_ptr.vmem [resolvable:$false] %s8183_s24 }
  0x9f   : > { %s8185_s10 = scalar_lea.vmem %s8184_s24, 1024  ;;  %p8186_p5 = scmp.lt.s32.totalorder %s8953_s7, %s8184_s24 }
  0xa0   : > { %p8181_p7 = pnand %p8180_p3, %p8816_p4  ;;  %p8187_p9 = scmp.lt.s32.totalorder %s8185_s10, %s8179_s0 }
  0xa2   : > { %p8182_p8 = pneg %p8181_p7  ;;  %p8188_p12 = por %p8187_p9, %p8186_p5 }
  0xa4   : > { %p8189_p10 = pnand %p8188_p12, %p8182_p8 }
  0xa6   : > { %8192 = shalt.err (!%p8189_p10)
}
  0xa7   : > { %7922 = dma.hbm_to_vmem [thread:$0]  (%p8816_p4), %s8950_s1, 512, %s8953_s7, %s10209_s5, %s10211_s29, %s10211_s29, %s8630_s6  }
  0xa8   : > { %s10248_s16 = sld [smem:[#allocation62_spill]]  ;;  %s928_s0 = scalar_lea.vmem [#allocation17], %s8845_s2 }
  0xa9   : > { %s935_s27 = sshll.u32 %s928_s0, 4  ;;  %s10210_s24 = scalar_lea.sflag [#allocation18], %s8833_s4  ;;  %s8989_s27 = int_to_ptr.vmem [resolvable:$true] %s935_s27 }
  0xae   : > { %s8986_s3 = scalar_lea.hbm %s10248_s16, %s8872_s22  ;;  %s8197_s26 = scalar_lea.hbm %s10248_s16, 1024 }
  0xaf   : > { %s8193_s10 = scalar_lea.hbm %s8986_s3, 512  ;;  %p8198_p2 = scmp.lt.u32.totalorder %s8986_s3, %s10248_s16 }
  0xb0   : > { %p8194_p11 = scmp.ne.s32.totalorder %s8986_s3, %s8193_s10  ;;  %p8199_p0 = scmp.lt.u32.totalorder %s8197_s26, %s8193_s10 }
  0xb1   : > { %p8201_p7 = scmp.lt.u32.totalorder %s8193_s10, %s8986_s3 }
  0xb2   : > { %p8195_p13 = pnand %p8194_p11, %p8816_p4  ;;  %p8200_p3 = por %p8199_p0, %p8198_p2 }
  0xb4   : > { %p8196_p1 = pneg %p8195_p13  ;;  %p8202_p8 = por %p8201_p7, %p8200_p3 }
  0xb6   : > { %p8203_p5 = pnand %p8202_p8, %p8196_p1 }
  0xb8   : > { %8206 = shalt.err (!%p8203_p5)
}
  0xb9   : > { %s8207_s0 = scalar_lea.vmem %s8989_s27, 512  ;;  %s8633_s1 = smov [#allocation17]  }
  0xba   : > { %p8208_p9 = scmp.ne.s32.totalorder %s8989_s27, %s8207_s0  ;;  %s8211_s7 = sshll.u32 %s8633_s1, 4  ;;  %s8212_s7 = int_to_ptr.vmem [resolvable:$false] %s8211_s7 }
  0xbb   : > { %s8213_s5 = scalar_lea.vmem %s8212_s7, 1024  ;;  %p8214_p11 = scmp.lt.s32.totalorder %s8989_s27, %s8212_s7 }
  0xbc   : > { %p8209_p12 = pnand %p8208_p9, %p8816_p4  ;;  %p8215_p13 = scmp.lt.s32.totalorder %s8213_s5, %s8207_s0 }
  0xbe   : > { %p8210_p10 = pneg %p8209_p12  ;;  %p8216_p2 = por %p8215_p13, %p8214_p11 }
  0xc0   : > { %p8217_p0 = pnand %p8216_p2, %p8210_p10 }
  0xc2   : > { %8220 = shalt.err (!%p8217_p0)
}
  0xc3   : > { %7924 = dma.hbm_to_vmem [thread:$0]  (%p8816_p4), %s8986_s3, 512, %s8989_s27, %s10210_s24, %s10211_s29, %s10211_s29, %s8630_s6  }
  0xc4   : > { %s10249_s18 = sld [smem:[#allocation64_spill]]  ;;  %s965_s0 = scalar_lea.vmem [#allocation20], %s8827_s25 }
  0xc5   : > { %s972_s1 = sshll.u32 %s965_s0, 4  ;;  %s963_s7 = scalar_lea.sflag [#allocation21], %s8833_s4  ;;  %s973_s1 = int_to_ptr.vmem [resolvable:$true] %s972_s1 }
  0xca   : > { %s9022_s28 = scalar_lea.hbm %s10249_s18, %s8830_s8  ;;  %s8225_s27 = scalar_lea.hbm %s10249_s18, 32 }
  0xcb   : > { %s8221_s5 = scalar_lea.hbm %s9022_s28, 16  ;;  %p8226_p8 = scmp.lt.u32.totalorder %s9022_s28, %s10249_s18 }
  0xcc   : > { %p8222_p1 = scmp.ne.s32.totalorder %s9022_s28, %s8221_s5  ;;  %p8227_p5 = scmp.lt.u32.totalorder %s8225_s27, %s8221_s5 }
  0xcd   : > { %p8229_p12 = scmp.lt.u32.totalorder %s8221_s5, %s9022_s28 }
  0xce   : > { %p8223_p3 = pnand %p8222_p1, %p8816_p4  ;;  %p8228_p9 = por %p8227_p5, %p8226_p8 }
  0xd0   : > { %p8224_p7 = pneg %p8223_p3  ;;  %p8230_p10 = por %p8229_p12, %p8228_p9 }
  0xd2   : > { %p8231_p11 = pnand %p8230_p10, %p8224_p7 }
  0xd4   : > { %8234 = shalt.err (!%p8231_p11)
}
  0xd5   : > { %s8235_s0 = scalar_lea.vmem %s973_s1, 16  ;;  %s8634_s24 = smov [#allocation20]  }
  0xd6   : > { %p8236_p13 = scmp.ne.s32.totalorder %s973_s1, %s8235_s0  ;;  %s8239_s29 = sshll.u32 %s8634_s24, 4  ;;  %s8240_s29 = int_to_ptr.vmem [resolvable:$false] %s8239_s29 }
  0xd7   : > { %s8241_s12 = scalar_lea.vmem %s8240_s29, 32  ;;  %p8242_p1 = scmp.lt.s32.totalorder %s973_s1, %s8240_s29 }
  0xd8   : > { %p8237_p2 = pnand %p8236_p13, %p8816_p4  ;;  %p8243_p3 = scmp.lt.s32.totalorder %s8241_s12, %s8235_s0 }
  0xda   : > { %p8238_p0 = pneg %p8237_p2  ;;  %p8244_p6 = por %p8243_p3, %p8242_p1 }
  0xdc   : > { %p8245_p5 = pnand %p8244_p6, %p8238_p0 }
  0xde   : > { %8248 = shalt.err (!%p8245_p5)
}
  0xdf   : > { %7926 = dma.hbm_to_vmem [thread:$0]  (%p8816_p4), %s9022_s28, 16, %s973_s1, %s963_s7  }
  0xe0   : > { %s9049_s24 = scalar_lea.hbm %s10185_s20, %s8872_s22  ;;  %s1000_s29 = scalar_lea.vmem [#allocation23], %s8845_s2 }
  0xe1   : > { %s1007_s27 = sshll.u32 %s1000_s29, 4  ;;  %s997_s10 = scalar_lea.sflag [#allocation24], %s8833_s4  ;;  %s9052_s27 = int_to_ptr.vmem [resolvable:$true] %s1007_s27 }
  0xe2   : > { %s8249_s26 = scalar_lea.hbm %s9049_s24, 512  ;;  %s8253_s0 = scalar_lea.hbm %s10185_s20, 1024 }
  0xe3   : > { %p8250_p6 = scmp.ne.s32.totalorder %s9049_s24, %s8249_s26  ;;  %p8254_p9 = scmp.lt.u32.totalorder %s9049_s24, %s10185_s20 }
  0xe4   : > { %p8255_p12 = scmp.lt.u32.totalorder %s8253_s0, %s8249_s26  ;;  %p8257_p11 = scmp.lt.u32.totalorder %s8249_s26, %s9049_s24 }
  0xe5   : > { %p8251_p7 = pnand %p8250_p6, %p8816_p4 }
  0xe6   : > { %p8256_p10 = por %p8255_p12, %p8254_p9 }
  0xe7   : > { %p8252_p8 = pneg %p8251_p7 }
  0xe8   : > { %p8258_p13 = por %p8257_p11, %p8256_p10 }
  0xea   : > { %p8259_p2 = pnand %p8258_p13, %p8252_p8 }
  0xec   : > { %8262 = shalt.err (!%p8259_p2)
}
  0xed   : > { %s8263_s2 = scalar_lea.vmem %s9052_s27, 512  ;;  %s8635_s5 = smov [#allocation23]  }
  0xee   : > { %p8264_p0 = scmp.ne.s32.totalorder %s9052_s27, %s8263_s2  ;;  %s8267_s3 = sshll.u32 %s8635_s5, 4  ;;  %s8268_s3 = int_to_ptr.vmem [resolvable:$false] %s8267_s3 }
  0xef   : > { %s8269_s29 = scalar_lea.vmem %s8268_s3, 1024  ;;  %p8270_p5 = scmp.lt.s32.totalorder %s9052_s27, %s8268_s3 }
  0xf0   : > { %p8265_p1 = pnand %p8264_p0, %p8816_p4  ;;  %p8271_p6 = scmp.lt.s32.totalorder %s8269_s29, %s8263_s2 }
  0xf2   : > { %p8266_p3 = pneg %p8265_p1  ;;  %p8272_p7 = por %p8271_p6, %p8270_p5 }
  0xf4   : > { %p8273_p9 = pnand %p8272_p7, %p8266_p3 }
  0xf6   : > { %8276 = shalt.err (!%p8273_p9)
}
  0xf7   : > { %s10250_s26 = smov 128   ;;  %s10251_s0 = sld [smem:[#allocation49_spill]] }
  0xf8   : > { %7928 = dma.hbm_to_vmem [thread:$0]  (%p8816_p4), %s9049_s24, 512, %s9052_s27, %s997_s10, %s10250_s26, %s10250_s26, %s8630_s6  }
  0xf9   : > { %s730_s12 = scalar_lea.vmem [#allocation2], %s8827_s25  ;;  %s728_s5 = scalar_lea.sflag [#allocation3], %s8827_s25 }
  0xfa   : > { %s737_s2 = sshll.u32 %s730_s12, 4  ;;  %s738_s2 = int_to_ptr.vmem [resolvable:$true] %s737_s2 }
  0xfd   : > { %s9085_s22 = scalar_lea.hbm %s10251_s0, %s8830_s8  ;;  %s8281_s24 = scalar_lea.hbm %s10251_s0, 32 }
  0xfe   : > { %s8277_s3 = scalar_lea.hbm %s9085_s22, 16  ;;  %p8282_p11 = scmp.lt.u32.totalorder %s9085_s22, %s10251_s0 }
  0xff   : > { %p8278_p8 = scmp.ne.s32.totalorder %s9085_s22, %s8277_s3  ;;  %p8283_p13 = scmp.lt.u32.totalorder %s8281_s24, %s8277_s3 }
 0x100   : > { %p8285_p0 = scmp.lt.u32.totalorder %s8277_s3, %s9085_s22 }
 0x101   : > { %p8279_p12 = pnand %p8278_p8, %p8816_p4  ;;  %p8284_p2 = por %p8283_p13, %p8282_p11 }
 0x103   : > { %p8280_p10 = pneg %p8279_p12  ;;  %p8286_p1 = por %p8285_p0, %p8284_p2 }
 0x105   : > { %p8287_p3 = pnand %p8286_p1, %p8280_p10 }
 0x107   : > { %8290 = shalt.err (!%p8287_p3)
}
 0x108   : > { %s8291_s28 = scalar_lea.vmem %s738_s2, 16  ;;  %s8636_s1 = smov [#allocation2]  }
 0x109   : > { %p8292_p5 = scmp.ne.s32.totalorder %s738_s2, %s8291_s28  ;;  %s8295_s12 = sshll.u32 %s8636_s1, 4  ;;  %s8296_s12 = int_to_ptr.vmem [resolvable:$false] %s8295_s12 }
 0x10a   : > { %s8297_s29 = scalar_lea.vmem %s8296_s12, 32  ;;  %p8298_p9 = scmp.lt.s32.totalorder %s738_s2, %s8296_s12 }
 0x10b   : > { %p8293_p6 = pnand %p8292_p5, %p8816_p4  ;;  %p8299_p8 = scmp.lt.s32.totalorder %s8297_s29, %s8291_s28 }
 0x10d   : > { %p8294_p7 = pneg %p8293_p6  ;;  %p8300_p12 = por %p8299_p8, %p8298_p9 }
 0x10f   : > { %p8301_p11 = pnand %p8300_p12, %p8294_p7 }
 0x111   : > { %8304 = shalt.err (!%p8301_p11)
}
 0x112   : > { %7915 = dma.hbm_to_vmem [thread:$0]  (%p8816_p4), %s9085_s22, 16, %s738_s2, %s728_s5  }
 0x113   : > { %s10252_s9 = sld [smem:[#allocation55_spill]]  ;;  %s796_s27 = scalar_lea.vmem [#allocation7], %s8827_s25 }
 0x114   : > { %s803_s26 = sshll.u32 %s796_s27, 4  ;;  %s804_s26 = int_to_ptr.vmem [resolvable:$true] %s803_s26 }
 0x119   : > { %s9110_s24 = scalar_lea.hbm %s10252_s9, %s8830_s8  ;;  %s8309_s22 = scalar_lea.hbm %s10252_s9, 32 }
 0x11a   : > { %s8305_s28 = scalar_lea.hbm %s9110_s24, 16  ;;  %p8310_p0 = scmp.lt.u32.totalorder %s9110_s24, %s10252_s9 }
 0x11b   : > { %p8306_p10 = scmp.ne.s32.totalorder %s9110_s24, %s8305_s28  ;;  %p8311_p1 = scmp.lt.u32.totalorder %s8309_s22, %s8305_s28 }
 0x11c   : > { %p8313_p5 = scmp.lt.u32.totalorder %s8305_s28, %s9110_s24 }
 0x11d   : > { %p8307_p13 = pnand %p8306_p10, %p8816_p4  ;;  %p8312_p3 = por %p8311_p1, %p8310_p0 }
 0x11f   : > { %p8308_p2 = pneg %p8307_p13  ;;  %p8314_p6 = por %p8313_p5, %p8312_p3 }
 0x121   : > { %p8315_p7 = pnand %p8314_p6, %p8308_p2 }
 0x123   : > { %8318 = shalt.err (!%p8315_p7)
}
 0x124   : > { %s8319_s29 = scalar_lea.vmem %s804_s26, 16  ;;  %s8637_s3 = smov [#allocation7]  }
 0x125   : > { %p8320_p9 = scmp.ne.s32.totalorder %s804_s26, %s8319_s29  ;;  %s8323_s6 = sshll.u32 %s8637_s3, 4  ;;  %s8324_s6 = int_to_ptr.vmem [resolvable:$false] %s8323_s6 }
 0x126   : > { %s8325_s27 = scalar_lea.vmem %s8324_s6, 32  ;;  %p8326_p11 = scmp.lt.s32.totalorder %s804_s26, %s8324_s6 }
 0x127   : > { %p8321_p8 = pnand %p8320_p9, %p8816_p4  ;;  %p8327_p10 = scmp.lt.s32.totalorder %s8325_s27, %s8319_s29 }
 0x129   : > { %p8322_p12 = pneg %p8321_p8  ;;  %p8328_p13 = por %p8327_p10, %p8326_p11 }
 0x12b   : > { %p8329_p0 = pnand %p8328_p13, %p8322_p12 }
 0x12d   : > { %8332 = shalt.err (!%p8329_p0)
}
 0x12e   : > { %s10253_s28 = scalar_lea.sflag [#allocation6], %s8833_s4  ;;  %s10254_s11 = sld [smem:[#allocation57_spill]] }
 0x12f   : > { %7917 = dma.hbm_to_vmem [thread:$0]  (%p8816_p4), %s9110_s24, 16, %s804_s26, %s10253_s28  }
 0x130   : > { %s834_s2 = scalar_lea.vmem [#allocation10], %s8827_s25 }
 0x131   : > { %s841_s5 = sshll.u32 %s834_s2, 4  ;;  %s842_s5 = int_to_ptr.vmem [resolvable:$true] %s841_s5 }
 0x134   : > { %s9136_s22 = scalar_lea.hbm %s10254_s11, %s8830_s8  ;;  %s8337_s24 = scalar_lea.hbm %s10254_s11, 32 }
 0x135   : > { %s8333_s29 = scalar_lea.hbm %s9136_s22, 16  ;;  %p8338_p5 = scmp.lt.u32.totalorder %s9136_s22, %s10254_s11 }
 0x136   : > { %p8334_p2 = scmp.ne.s32.totalorder %s9136_s22, %s8333_s29  ;;  %p8339_p6 = scmp.lt.u32.totalorder %s8337_s24, %s8333_s29 }
 0x137   : > { %p8341_p9 = scmp.lt.u32.totalorder %s8333_s29, %s9136_s22 }
 0x138   : > { %p8335_p1 = pnand %p8334_p2, %p8816_p4  ;;  %p8340_p7 = por %p8339_p6, %p8338_p5 }
 0x13a   : > { %p8336_p3 = pneg %p8335_p1  ;;  %p8342_p8 = por %p8341_p9, %p8340_p7 }
 0x13c   : > { %p8343_p12 = pnand %p8342_p8, %p8336_p3 }
 0x13e   : > { %8346 = shalt.err (!%p8343_p12)
}
 0x13f   : > { %s8347_s28 = scalar_lea.vmem %s842_s5, 16  ;;  %s8638_s1 = smov [#allocation10]  }
 0x140   : > { %p8348_p11 = scmp.ne.s32.totalorder %s842_s5, %s8347_s28  ;;  %s8351_s12 = sshll.u32 %s8638_s1, 4  ;;  %s8352_s12 = int_to_ptr.vmem [resolvable:$false] %s8351_s12 }
 0x141   : > { %s8353_s2 = scalar_lea.vmem %s8352_s12, 32  ;;  %p8354_p0 = scmp.lt.s32.totalorder %s842_s5, %s8352_s12 }
 0x142   : > { %p8349_p10 = pnand %p8348_p11, %p8816_p4  ;;  %p8355_p2 = scmp.lt.s32.totalorder %s8353_s2, %s8347_s28 }
 0x144   : > { %p8350_p13 = pneg %p8349_p10  ;;  %p8356_p1 = por %p8355_p2, %p8354_p0 }
 0x146   : > { %p8357_p5 = pnand %p8356_p1, %p8350_p13 }
 0x148   : > { %8360 = shalt.err (!%p8357_p5)
}
 0x149   : > { %s10255_s29 = scalar_lea.sflag [#allocation9], %s8833_s4  ;;  %s10256_s13 = sld [smem:[#allocation59_spill]] }
 0x14a   : > { %7919 = dma.hbm_to_vmem [thread:$0]  (%p8816_p4), %s9136_s22, 16, %s842_s5, %s10255_s29  }
 0x14b   : > { %s872_s26 = scalar_lea.vmem [#allocation13], %s8827_s25 }
 0x14c   : > { %s879_s27 = sshll.u32 %s872_s26, 4  ;;  %s880_s27 = int_to_ptr.vmem [resolvable:$true] %s879_s27 }
 0x14f   : > { %s9162_s24 = scalar_lea.hbm %s10256_s13, %s8830_s8  ;;  %s8365_s22 = scalar_lea.hbm %s10256_s13, 32 }
 0x150   : > { %s8361_s28 = scalar_lea.hbm %s9162_s24, 16  ;;  %p8366_p9 = scmp.lt.u32.totalorder %s9162_s24, %s10256_s13 }
 0x151   : > { %p8362_p3 = scmp.ne.s32.totalorder %s9162_s24, %s8361_s28  ;;  %p8367_p8 = scmp.lt.u32.totalorder %s8365_s22, %s8361_s28 }
 0x152   : > { %p8369_p11 = scmp.lt.u32.totalorder %s8361_s28, %s9162_s24 }
 0x153   : > { %p8363_p6 = pnand %p8362_p3, %p8816_p4  ;;  %p8368_p12 = por %p8367_p8, %p8366_p9 }
 0x155   : > { %p8364_p7 = pneg %p8363_p6  ;;  %p8370_p10 = por %p8369_p11, %p8368_p12 }
 0x157   : > { %p8371_p13 = pnand %p8370_p10, %p8364_p7 }
 0x159   : > { %8374 = shalt.err (!%p8371_p13)
}
 0x15a   : > { %s8375_s29 = scalar_lea.vmem %s880_s27, 16  ;;  %s8639_s3 = smov [#allocation13]  }
 0x15b   : > { %p8376_p0 = scmp.ne.s32.totalorder %s880_s27, %s8375_s29  ;;  %s8379_s6 = sshll.u32 %s8639_s3, 4  ;;  %s8380_s6 = int_to_ptr.vmem [resolvable:$false] %s8379_s6 }
 0x15c   : > { %s8381_s26 = scalar_lea.vmem %s8380_s6, 32  ;;  %p8382_p5 = scmp.lt.s32.totalorder %s880_s27, %s8380_s6 }
 0x15d   : > { %p8377_p2 = pnand %p8376_p0, %p8816_p4  ;;  %p8383_p3 = scmp.lt.s32.totalorder %s8381_s26, %s8375_s29 }
 0x15f   : > { %p8378_p1 = pneg %p8377_p2  ;;  %p8384_p6 = por %p8383_p3, %p8382_p5 }
 0x161   : > { %p8385_p8 = pnand %p8384_p6, %p8378_p1 }
 0x163   : > { %8388 = shalt.err (!%p8385_p8)
}
 0x164   : > { %s10257_s28 = scalar_lea.sflag [#allocation12], %s8833_s4  ;;  %s10258_s15 = sld [smem:[#allocation61_spill]] }
 0x165   : > { %7921 = dma.hbm_to_vmem [thread:$0]  (%p8816_p4), %s9162_s24, 16, %s880_s27, %s10257_s28  }
 0x166   : > { %s910_s5 = scalar_lea.vmem [#allocation16], %s8827_s25 }
 0x167   : > { %s917_s2 = sshll.u32 %s910_s5, 4  ;;  %s918_s2 = int_to_ptr.vmem [resolvable:$true] %s917_s2 }
 0x16a   : > { %s9188_s22 = scalar_lea.hbm %s10258_s15, %s8830_s8  ;;  %s8393_s24 = scalar_lea.hbm %s10258_s15, 32 }
 0x16b   : > { %s8389_s29 = scalar_lea.hbm %s9188_s22, 16  ;;  %p8394_p11 = scmp.lt.u32.totalorder %s9188_s22, %s10258_s15 }
 0x16c   : > { %p8390_p7 = scmp.ne.s32.totalorder %s9188_s22, %s8389_s29  ;;  %p8395_p10 = scmp.lt.u32.totalorder %s8393_s24, %s8389_s29 }
 0x16d   : > { %p8397_p0 = scmp.lt.u32.totalorder %s8389_s29, %s9188_s22 }
 0x16e   : > { %p8391_p9 = pnand %p8390_p7, %p8816_p4  ;;  %p8396_p13 = por %p8395_p10, %p8394_p11 }
 0x170   : > { %p8392_p12 = pneg %p8391_p9  ;;  %p8398_p2 = por %p8397_p0, %p8396_p13 }
 0x172   : > { %p8399_p1 = pnand %p8398_p2, %p8392_p12 }
 0x174   : > { %8402 = shalt.err (!%p8399_p1)
}
 0x175   : > { %s8403_s28 = scalar_lea.vmem %s918_s2, 16  ;;  %s8640_s1 = smov [#allocation16]  }
 0x176   : > { %p8404_p5 = scmp.ne.s32.totalorder %s918_s2, %s8403_s28  ;;  %s8407_s12 = sshll.u32 %s8640_s1, 4  ;;  %s8408_s12 = int_to_ptr.vmem [resolvable:$false] %s8407_s12 }
 0x177   : > { %s8409_s5 = scalar_lea.vmem %s8408_s12, 32  ;;  %p8410_p8 = scmp.lt.s32.totalorder %s918_s2, %s8408_s12 }
 0x178   : > { %p8405_p3 = pnand %p8404_p5, %p8816_p4  ;;  %p8411_p7 = scmp.lt.s32.totalorder %s8409_s5, %s8403_s28 }
 0x17a   : > { %p8406_p6 = pneg %p8405_p3  ;;  %p8412_p9 = por %p8411_p7, %p8410_p8 }
 0x17c   : > { %p8413_p10 = pnand %p8412_p9, %p8406_p6 }
 0x17e   : > { %8416 = shalt.err (!%p8413_p10)
}
 0x17f   : > { %s10259_s29 = scalar_lea.sflag [#allocation15], %s8833_s4  ;;  %s10260_s17 = sld [smem:[#allocation63_spill]] }
 0x180   : > { %7923 = dma.hbm_to_vmem [thread:$0]  (%p8816_p4), %s9188_s22, 16, %s918_s2, %s10259_s29  }
 0x181   : > { %s948_s27 = scalar_lea.vmem [#allocation19], %s8827_s25 }
 0x182   : > { %s955_s26 = sshll.u32 %s948_s27, 4  ;;  %s956_s26 = int_to_ptr.vmem [resolvable:$true] %s955_s26 }
 0x185   : > { %s9214_s24 = scalar_lea.hbm %s10260_s17, %s8830_s8  ;;  %s8421_s22 = scalar_lea.hbm %s10260_s17, 32 }
 0x186   : > { %s8417_s28 = scalar_lea.hbm %s9214_s24, 16  ;;  %p8422_p0 = scmp.lt.u32.totalorder %s9214_s24, %s10260_s17 }
 0x187   : > { %p8418_p12 = scmp.ne.s32.totalorder %s9214_s24, %s8417_s28  ;;  %p8423_p2 = scmp.lt.u32.totalorder %s8421_s22, %s8417_s28 }
 0x188   : > { %p8425_p5 = scmp.lt.u32.totalorder %s8417_s28, %s9214_s24 }
 0x189   : > { %p8419_p11 = pnand %p8418_p12, %p8816_p4  ;;  %p8424_p1 = por %p8423_p2, %p8422_p0 }
 0x18b   : > { %p8420_p13 = pneg %p8419_p11  ;;  %p8426_p3 = por %p8425_p5, %p8424_p1 }
 0x18d   : > { %p8427_p6 = pnand %p8426_p3, %p8420_p13 }
 0x18f   : > { %8430 = shalt.err (!%p8427_p6)
}
 0x190   : > { %s8431_s29 = scalar_lea.vmem %s956_s26, 16  ;;  %s8641_s3 = smov [#allocation19]  }
 0x191   : > { %p8432_p8 = scmp.ne.s32.totalorder %s956_s26, %s8431_s29  ;;  %s8435_s6 = sshll.u32 %s8641_s3, 4  ;;  %s8436_s6 = int_to_ptr.vmem [resolvable:$false] %s8435_s6 }
 0x192   : > { %s8437_s27 = scalar_lea.vmem %s8436_s6, 32  ;;  %p8438_p10 = scmp.lt.s32.totalorder %s956_s26, %s8436_s6 }
 0x193   : > { %p8433_p7 = pnand %p8432_p8, %p8816_p4  ;;  %p8439_p12 = scmp.lt.s32.totalorder %s8437_s27, %s8431_s29 }
 0x195   : > { %p8434_p9 = pneg %p8433_p7  ;;  %p8440_p11 = por %p8439_p12, %p8438_p10 }
 0x197   : > { %p8441_p0 = pnand %p8440_p11, %p8434_p9 }
 0x199   : > { %8444 = shalt.err (!%p8441_p0)
}
 0x19a   : > { %s10261_s28 = scalar_lea.sflag [#allocation18], %s8833_s4  ;;  %s9240_s22 = scalar_lea.hbm %s10184_s19, %s8830_s8 }
 0x19b   : > { %7925 = dma.hbm_to_vmem [thread:$0]  (%p8816_p4), %s9214_s24, 16, %s956_s26, %s10261_s28  }
 0x19c   : > { %s982_s2 = scalar_lea.vmem [#allocation22], %s8827_s25  ;;  %s8445_s29 = scalar_lea.hbm %s9240_s22, 16 }
 0x19d   : > { %s989_s5 = sshll.u32 %s982_s2, 4  ;;  %p8446_p13 = scmp.ne.s32.totalorder %s9240_s22, %s8445_s29  ;;  %s990_s5 = int_to_ptr.vmem [resolvable:$true] %s989_s5 }
 0x19e   : > { %s8449_s24 = scalar_lea.hbm %s10184_s19, 32  ;;  %p8450_p5 = scmp.lt.u32.totalorder %s9240_s22, %s10184_s19 }
 0x19f   : > { %p8447_p2 = pnand %p8446_p13, %p8816_p4  ;;  %p8451_p3 = scmp.lt.u32.totalorder %s8449_s24, %s8445_s29 }
 0x1a0   : > { %p8453_p8 = scmp.lt.u32.totalorder %s8445_s29, %s9240_s22 }
 0x1a1   : > { %p8448_p1 = pneg %p8447_p2  ;;  %p8452_p6 = por %p8451_p3, %p8450_p5 }
 0x1a3   : > { %p8454_p7 = por %p8453_p8, %p8452_p6 }
 0x1a5   : > { %p8455_p9 = pnand %p8454_p7, %p8448_p1 }
 0x1a7   : > { %8458 = shalt.err (!%p8455_p9)
}
 0x1a8   : > { %s8459_s28 = scalar_lea.vmem %s990_s5, 16  ;;  %s8642_s1 = smov [#allocation22]  }
 0x1a9   : > { %p8460_p10 = scmp.ne.s32.totalorder %s990_s5, %s8459_s28  ;;  %s8463_s12 = sshll.u32 %s8642_s1, 4  ;;  %s8464_s12 = int_to_ptr.vmem [resolvable:$false] %s8463_s12 }
 0x1aa   : > { %s8465_s2 = scalar_lea.vmem %s8464_s12, 32  ;;  %p8466_p0 = scmp.lt.s32.totalorder %s990_s5, %s8464_s12 }
 0x1ab   : > { %p8461_p12 = pnand %p8460_p10, %p8816_p4  ;;  %p8467_p13 = scmp.lt.s32.totalorder %s8465_s2, %s8459_s28 }
 0x1ad   : > { %p8462_p11 = pneg %p8461_p12  ;;  %p8468_p2 = por %p8467_p13, %p8466_p0 }
 0x1af   : > { %p8469_p3 = pnand %p8468_p2, %p8462_p11 }
 0x1b1   : > { %8472 = shalt.err (!%p8469_p3)
}
 0x1b2   : > { %7927 = dma.hbm_to_vmem [thread:$0]  (%p8816_p4), %s9240_s22, 16, %s990_s5, %s963_s7  }
 0x1b3   : > { %s9266_s6 = scalar_lea.hbm %s10186_s21, %s8830_s8  ;;  %s1020_s24 = scalar_lea.vmem [#allocation25], %s8827_s25 }
 0x1b4   : > { %s1027_s26 = sshll.u32 %s1020_s24, 4  ;;  %s8473_s27 = scalar_lea.hbm %s9266_s6, 16  ;;  %s1028_s26 = int_to_ptr.vmem [resolvable:$true] %s1027_s26 }
 0x1b5   : > { %p8474_p1 = scmp.ne.s32.totalorder %s9266_s6, %s8473_s27  ;;  %s8477_s7 = scalar_lea.hbm %s10186_s21, 32 }
 0x1b6   : > { %p8478_p8 = scmp.lt.u32.totalorder %s9266_s6, %s10186_s21  ;;  %p8479_p7 = scmp.lt.u32.totalorder %s8477_s7, %s8473_s27 }
 0x1b7   : > { %p8475_p5 = pnand %p8474_p1, %p8816_p4  ;;  %p8481_p10 = scmp.lt.u32.totalorder %s8473_s27, %s9266_s6 }
 0x1b8   : > { %p8480_p9 = por %p8479_p7, %p8478_p8 }
 0x1b9   : > { %p8476_p6 = pneg %p8475_p5 }
 0x1ba   : > { %p8482_p12 = por %p8481_p10, %p8480_p9 }
 0x1bc   : > { %p8483_p11 = pnand %p8482_p12, %p8476_p6 }
 0x1be   : > { %8486 = shalt.err (!%p8483_p11)
}
 0x1bf   : > { %s8487_s12 = scalar_lea.vmem %s1028_s26, 16  ;;  %s8643_s2 = smov [#allocation25]  }
 0x1c0   : > { %p8488_p0 = scmp.ne.s32.totalorder %s1028_s26, %s8487_s12  ;;  %s8491_s29 = sshll.u32 %s8643_s2, 4  ;;  %s8492_s29 = int_to_ptr.vmem [resolvable:$false] %s8491_s29 }
 0x1c1   : > { %s8493_s3 = scalar_lea.vmem %s8492_s29, 32  ;;  %p8494_p3 = scmp.lt.s32.totalorder %s1028_s26, %s8492_s29 }
 0x1c2   : > { %p8489_p13 = pnand %p8488_p0, %p8816_p4  ;;  %p8495_p1 = scmp.lt.s32.totalorder %s8493_s3, %s8487_s12 }
 0x1c4   : > { %p8490_p2 = pneg %p8489_p13  ;;  %p8496_p5 = por %p8495_p1, %p8494_p3 }
 0x1c6   : > { %p8497_p7 = pnand %p8496_p5, %p8490_p2 }
 0x1c8   : > { %8500 = shalt.err (!%p8497_p7)
}
 0x1c9   : > { %7929 = dma.hbm_to_vmem [thread:$0]  (%p8816_p4), %s9266_s6, 16, %s1028_s26, %s997_s10  }
 0x1ca   : > { %s9292_s28 = scalar_lea.hbm %s10188_s23, %s8830_s8  ;;  %s1045_s1 = scalar_lea.vmem [#allocation26], %s8827_s25 }
 0x1cb   : > { %s1052_s7 = sshll.u32 %s1045_s1, 4  ;;  %s1043_s22 = scalar_lea.sflag [#allocation27], %s8827_s25  ;;  %s1053_s7 = int_to_ptr.vmem [resolvable:$true] %s1052_s7 }
 0x1cc   : > { %s8501_s4 = scalar_lea.hbm %s9292_s28, 16  ;;  %s8505_s6 = scalar_lea.hbm %s10188_s23, 32 }
 0x1cd   : > { %p8502_p6 = scmp.ne.s32.totalorder %s9292_s28, %s8501_s4  ;;  %p8506_p10 = scmp.lt.u32.totalorder %s9292_s28, %s10188_s23 }
 0x1ce   : > { %p8507_p12 = scmp.lt.u32.totalorder %s8505_s6, %s8501_s4  ;;  %p8509_p0 = scmp.lt.u32.totalorder %s8501_s4, %s9292_s28 }
 0x1cf   : > { %p8503_p8 = pnand %p8502_p6, %p8816_p4 }
 0x1d0   : > { %p8508_p11 = por %p8507_p12, %p8506_p10 }
 0x1d1   : > { %p8504_p9 = pneg %p8503_p8 }
 0x1d2   : > { %p8510_p13 = por %p8509_p0, %p8508_p11 }
 0x1d4   : > { %p8511_p2 = pnand %p8510_p13, %p8504_p9 }
 0x1d6   : > { %8514 = shalt.err (!%p8511_p2)
}
 0x1d7   : > { %s8515_s25 = scalar_lea.vmem %s1053_s7, 16  ;;  %s8644_s12 = smov [#allocation26]  }
 0x1d8   : > { %p8516_p3 = scmp.ne.s32.totalorder %s1053_s7, %s8515_s25  ;;  %s8519_s2 = sshll.u32 %s8644_s12, 4  ;;  %s8520_s2 = int_to_ptr.vmem [resolvable:$false] %s8519_s2 }
 0x1d9   : > { %s8521_s29 = scalar_lea.vmem %s8520_s2, 32  ;;  %p8522_p7 = scmp.lt.s32.totalorder %s1053_s7, %s8520_s2 }
 0x1da   : > { %p8517_p1 = pnand %p8516_p3, %p8816_p4  ;;  %p8523_p6 = scmp.lt.s32.totalorder %s8521_s29, %s8515_s25 }
 0x1dc   : > { %p8518_p5 = pneg %p8517_p1  ;;  %p8524_p8 = por %p8523_p6, %p8522_p7 }
 0x1de   : > { %p8525_p10 = pnand %p8524_p8, %p8518_p5 }
 0x1e0   : > { %8528 = shalt.err (!%p8525_p10)
}
 0x1e1   : > { %7930 = dma.hbm_to_vmem [thread:$0]  (%p8816_p4), %s9292_s28, 16, %s1053_s7, %s1043_s22  }
 0x1e2 PF: > { %s10262_s3 = sld [smem:[#allocation41_spill]] }
 0x1e8   : > { %p7267_p9 = scmp.ge.s32.totalorder %s10262_s3, 1  ;;  %p1057_p12 = scmp.lt.s32.totalorder %s10262_s3, 3 }
 0x1ea   : > { %p1058_p11 = pnand %p7267_p9, %p1057_p12 }
 0x1eb   : > { %s10263_s24 = sld [smem:[#allocation39_spill]] (!%p1058_p11)  ;;  %s10264_s27 = sld [smem:[#allocation45_spill]] (!%p1058_p11) }
 0x1ec   : > { %1061 = sbr.rel (%p1058_p11) target bundleno = 6067 (0x17b3), region = 116 }
 0x1f1   : > { %s9316_s1 = sand.u32 (!%p1058_p11), 1, %s10263_s24   ;;  %p10265_p0 = scmp.ne.s32.totalorder (!%p1058_p11), %s10264_s27, 0 }
 0x1f2   : > { %s1064_s4 = scalar_lea.sflag (!%p1058_p11), [#allocation3], %s9316_s1 }
 0x1f3   : > { %8572 = dma.done.wait (%p10265_p0), %s1064_s4, 16  }
 0x1f4   : > { %8574 = vsyncadd (%p10265_p0), %s1064_s4, 4294967280  ;;  %s10266_s30 = sld [smem:[#allocation42_spill]] }
 0x1fa   : > { %s9325_s28 = sand.u32 1, %s10266_s30  }
 0x1fb   : > { %s1072_s7 = scalar_lea.sflag [#allocation6], %s9325_s28 }
 0x1fc   : > { %8576 = dma.done.wait (%p10265_p0), %s1072_s7, 32  }
 0x1fd   : > { %8578 = vsyncadd (%p10265_p0), %s1072_s7, 4294967264  ;;  %s7268_s10 = sshll.u32 %s9316_s1, 5  ;;  %s1088_s26 = scalar_lea.sflag [#allocation9], %s9325_s28 }
 0x1fe   : > { %s9336_s8 = scalar_lea.vmem [#allocation8], %s7268_s10 }
 0x1ff   : > { %8580 = dma.done.wait (%p10265_p0), %s1088_s26, 528  }
 0x200   : > { %8582 = vsyncadd (%p10265_p0), %s1088_s26, 4294966768  ;;  %s1105_s12 = scalar_lea.sflag [#allocation12], %s9325_s28  ;;  %s9344_s2 = scalar_lea.vmem [#allocation11], %s7268_s10 }
 0x201   : > { %8584 = dma.done.wait (%p10265_p0), %s1105_s12, 528  }
 0x202   : > { %8586 = vsyncadd (%p10265_p0), %s1105_s12, 4294966768  ;;  %s1122_s3 = scalar_lea.sflag [#allocation15], %s9325_s28  ;;  %s9352_s24 = scalar_lea.vmem [#allocation14], %s7268_s10 }
 0x203   : > { %8588 = dma.done.wait (%p10265_p0), %s1122_s3, 528  }
 0x204   : > { %8590 = vsyncadd (%p10265_p0), %s1122_s3, 4294966768  ;;  %s1139_s7 = scalar_lea.sflag [#allocation18], %s9325_s28  ;;  %s9360_s26 = scalar_lea.vmem [#allocation17], %s7268_s10 }
 0x205   : > { %8592 = dma.done.wait (%p10265_p0), %s1139_s7, 528  }
 0x206   : > { %8594 = vsyncadd (%p10265_p0), %s1139_s7, 4294966768  ;;  %s1156_s29 = scalar_lea.sflag [#allocation21], %s9325_s28 }
 0x207   : > { %8596 = dma.done.wait (%p10265_p0), %s1156_s29, 32  }
 0x208   : > { %8598 = vsyncadd (%p10265_p0), %s1156_s29, 4294967264  ;;  %s1172_s4 = scalar_lea.sflag [#allocation24], %s9325_s28  ;;  %s9375_s6 = scalar_lea.vmem [#allocation23], %s7268_s10 }
 0x209   : > { %8600 = dma.done.wait (%p10265_p0), %s1172_s4, 528  }
 0x20a   : > { %8602 = vsyncadd (%p10265_p0), %s1172_s4, 4294966768  ;;  %s1189_s25 = scalar_lea.sflag [#allocation27], %s9316_s1 }
 0x20b   : > { %8604 = dma.done.wait (%p10265_p0), %s1189_s25, 16  }
 0x20c   : > { %8606 = vsyncadd (%p10265_p0), %s1189_s25, 4294967280  ;;  %p1343_p4 = scmp.lt.s32.totalorder %s10266_s30, 1  ;;  %s10268_s5 = sld [smem:[#allocation50_spill]] }
 0x20d   : > { %s10269_s9 = sld [smem:[#allocation51_spill]]  ;;  %s10270_s15 = sld [smem:[#allocation52_spill]] }
 0x20e   : > { %s9390_s28 = scalar_select %p1343_p4, %s10266_s30, 1 }
 0x20f   : > { %s10271_s17 = sld [smem:[#allocation53_spill]]  ;;  %p7282_p13 = scmp.ne.s32.totalorder %s10266_s30, 0 }
 0x210   : > { %s7396_s7 = sshll.u32 %s9390_s28, 5  ;;  %s7914_s3 = smul.u32 96, %s9390_s28  ;;  %vm1377_vm0 = vcmask (!%p7282_p13), 261120  }
 0x211   : > { %s10273_s25 = sld [smem:[#allocation46_spill]] (!%p7282_p13) }
 0x212   : > { %s9400_s0 = scalar_lea.vmem %s10268_s5, %s7396_s7  ;;  %s10272_s5 = sld [smem:[#allocation65_spill]] }
 0x213   : > { %s9405_s11 = scalar_lea.vmem %s10269_s9, %s7396_s7  ;;  %s9410_s16 = scalar_lea.vmem %s10270_s15, %s7396_s7 }
 0x214   : > { %1374 = sbr.rel (%p7282_p13) target bundleno = 539 (0x21b), region = 184 }
 0x215   : > { %s9415_s4 = scalar_lea.vmem %s10271_s17, %s7396_s7 }
 0x217   : > { %v1375_v0 = vld [vmem:[%s10273_s25] sm:$0xff] (!%p7282_p13)  ;;  %v1376_v1 = vld [vmem:[%s10273_s25 + $0x8] sm:$0xff] (!%p7282_p13) }
 0x218   : > { %s9421_s12 = scalar_lea.vmem %s10272_s5, %s7914_s3  ;;  %1378 = vst.msk [vmem:[#allocation28] sm:$0xff] (!%p7282_p13), %vm1377_vm0, %v1375_v0  ;;  %1379 = vst.msk [vmem:[#allocation28 + $0x8] sm:$0xff] (!%p7282_p13), %vm1377_vm0, %v1376_v1 }
 0x21b PF: > { %vm1385_vm1 = vcmask 261120   ;;  %v1429_v16 = vld [vmem:[%s9400_s0] sm:$0xff]  ;;  %v1430_v17 = vld [vmem:[%s9400_s0 + $0x8] sm:$0xff]  ;;  %v1431_v21 = vld [vmem:[%s9400_s0 + $0x10] sm:$0xff]  ;;  %s10274_s17 = sld [smem:[#allocation48_spill]]  ;;  %s8646_s30 = smov 112   ;;  %v1691_v59 = vlaneseq }
 0x21c   : > { %v1437_v18 = vld [vmem:[%s9410_s16] sm:$0xff]  ;;  %v7818_v19 = vpack.c.bf16 %v1430_v17, %v1429_v16  ;;  %v1438_v20 = vld [vmem:[%s9410_s16 + $0x8] sm:$0xff]  ;;  %v1432_v22 = vld [vmem:[%s9400_s0 + $0x18] sm:$0xff]  ;;  %s10276_s0 = scalar_lea.vmem [#allocation2], %s9316_s1  ;;  %s8647_s3 = smov 104   ;;  %v8648_v56 = vmov 0.0  }
 0x21d   : > { %v7834_v23 = vpack.c.bf16 %v1438_v20, %v1437_v18  ;;  %v7822_v24 = vpack.c.bf16 %v1432_v22, %v1431_v21  ;;  %v1439_v25 = vld [vmem:[%s9410_s16 + $0x10] sm:$0xff]  ;;  %v1440_v26 = vld [vmem:[%s9410_s16 + $0x18] sm:$0xff]  ;;  %v1433_v28 = vld [vmem:[%s9405_s11] sm:$0xff]  ;;  %vm8649_vm2 = vmmov 0   ;;  %v8650_v57 = vmov 1983009808  }
 0x21e   : > { %7819 = vmatprep.subr.bf16.mxu1 %v7818_v19  ;;  %v7838_v27 = vpack.c.bf16 %v1440_v26, %v1439_v25  ;;  %v1434_v29 = vld [vmem:[%s9405_s11 + $0x8] sm:$0xff]  ;;  %v7284_v40 = vld [vmem:[%s10276_s0] ss:$0 sm:$0xff]  ;;  %v1435_v45 = vld [vmem:[%s9405_s11 + $0x10] sm:$0xff]  ;;  %v1689_v58 = vunpack.c.l.s4 %v8650_v57  ;;  %v8651_v61 = vmov 1934713408  }
 0x21f   : > { %v1380_v2 = vld [vmem:[#allocation28] sm:$0xff]  ;;  %v1381_v3 = vld [vmem:[#allocation28 + $0x8] sm:$0xff]  ;;  %7821 = vmatpush3.bf16.msra.mxu1 %v7818_v19  ;;  %7835 = vmatprep.subr.bf16.mxu0 %v7834_v23  ;;  %v7826_v30 = vpack.c.bf16 %v1434_v29, %v1433_v28  ;;  %v1721_v62 = vunpack.c.l.s4 %v8651_v61  ;;  %v1692_v0 = vshrl.u32 %v1691_v59, 7  ;;  %vm2114_vm3 = vcmask 64512   ;;  %s10277_s10 = sld [smem:[#allocation47_spill]]  ;;  %s8652_s29 = smov 8  }
 0x220   : > { %v1386_v4 = vsel %vm1385_vm1, %v1380_v2, 0.0  ;;  %v1389_v5 = vsel %vm1385_vm1, %v1381_v3, 0.0  ;;  %7837 = vmatpush3.bf16.msra.mxu0 %v7834_v23  ;;  %7823 = vmatprep.subr.bf16.mxu1 %v7822_v24  ;;  %v1436_v46 = vld [vmem:[%s9405_s11 + $0x18] sm:$0xff]  ;;  %s8645_s11 = smov 120   ;;  %v1690_v63 = vunpack.c.0.s8 %v1689_v58  ;;  %s8653_s22 = smov 16   ;;  %vm2776_vm4 = vcmask 130048  }
 0x221   : > { %1387 = vadd.xlane.f32.xlu0 %v1386_v4  ;;  %7839 = vmatprep.subr.bf16.mxu0 %v7838_v27  ;;  %s10275_s18 = scalar_lea.vmem %s10274_s17, %s9390_s28  ;;  %v7830_v49 = vpack.c.bf16 %v1436_v46, %v1435_v45  ;;  %s8654_s5 = smov 24   ;;  %vm2778_vm5 = vcmask 195584   ;;  %vm6733_vm6 = vcmask 785408  }
 0x222   : > { %v7283_v38 = vld [vmem:[%s10275_s18] ss:$0 sm:$0xff]  ;;  %v9479_v4 = vsub.s32 %v1690_v63, %v1692_v0  ;;  %s10282_s9 = scalar_lea.vmem [#allocation16], %s9316_s1  ;;  %s10284_s27 = scalar_lea.vmem [#allocation20], %s9316_s1 }
 0x223   : > { %7825 = vmatpush3.bf16.msra.mxu1 %v7822_v24  ;;  %s10286_s13 = scalar_lea.vmem [#allocation25], %s9316_s1  ;;  %s10288_s14 = scalar_lea.vmem [#allocation26], %s9316_s1 }
 0x224   : > { %7841 = vmatpush3.bf16.msra.mxu0 %v7838_v27  ;;  %7827 = vmatprep.subr.bf16.mxu1 %v7826_v30  ;;  %s8655_s15 = smov [#allocation28]  }
 0x225   : > { %1390 = vadd.xlane.f32.xlu0 %v1389_v5  ;;  %7585 = vmatprep.subr.mxu0 %v8648_v56  ;;  %s6825_s16 = sshll.u32 %s8655_s15, 4  ;;  %s6826_s16 = int_to_ptr.vmem [resolvable:$true] %s6825_s16 }
 0x226   : > { %s8529_s17 = scalar_lea.vmem %s6826_s16, 256  ;;  %p8536_p7 = scmp.lt.s32.totalorder %s6826_s16, %s6826_s16 }
 0x227   : > { %p8530_p3 = scmp.ne.s32.totalorder %s6826_s16, %s8529_s17  ;;  %p8537_p6 = scmp.lt.s32.totalorder %s8529_s17, %s8529_s17 }
 0x229   : > { %p8538_p8 = por %p8537_p6, %p8536_p7 }
 0x2ae   : > { %v1388_v6 = vpop.xlane.xlu0 %1387 }
 0x2af   : > { %v1393_v7 = vmul.f32 0.03125, %v1388_v6 }
 0x2b1   : > { %v1395_v8 = vsub.f32 %v1380_v2, %v1393_v7 }
 0x2b2   : > { %v1391_v9 = vpop.xlane.xlu0 %1390 }
 0x2b3   : > { %v1394_v10 = vmul.f32 0.03125, %v1391_v9  ;;  %v1397_v11 = vmul.f32 %v1395_v8, %v1395_v8 }
 0x2b5   : > { %v1396_v12 = vsub.f32 %v1381_v3, %v1394_v10  ;;  %v1399_v13 = vsel %vm1385_vm1, %v1397_v11, 0.0  ;;  %v1722_v3 = vunpack.c.0.s8 %v1721_v62 }
 0x2b6   : > { %1400 = vadd.xlane.f32.xlu1 %v1399_v13 }
 0x2b7   : > { %v1398_v14 = vmul.f32 %v1396_v12, %v1396_v12  ;;  %v9481_v11 = vsub.s32 %v1722_v3, %v1692_v0 }
 0x2b9   : > { %v1402_v15 = vsel %vm1385_vm1, %v1398_v14, 0.0 }
 0x2ba   : > { %1403 = vadd.xlane.f32.xlu1 %v1402_v15 }
 0x343   : > { %v1401_v31 = vpop.xlane.xlu1 %1400 }
 0x344   : > { %v1405_v32 = vmul.f32 0.03125, %v1401_v31 }
 0x346   : > { %v1407_v33 = vadd.f32 1e-05, %v1405_v32 }
 0x347   : > { %v1404_v34 = vpop.xlane.xlu1 %1403 }
 0x348   : > { %7999 = vrsqrt.f32 %v1407_v33  ;;  %v1406_v35 = vmul.f32 0.03125, %v1404_v34 }
 0x34a   : > { %v1408_v36 = vadd.f32 1e-05, %v1406_v35 }
 0x34c   : > { %8001 = vrsqrt.f32 %v1408_v36 }
 0x352   : > { %v8000_v37 = vpop.eup %7999 }
 0x353   : > { %v1411_v39 = vmul.f32 %v8000_v37, %v1395_v8 }
 0x355   : > { %v1419_v41 = vmul.f32 %v7283_v38, %v1411_v39 }
 0x356   : > { %v8002_v42 = vpop.eup %8001 }
 0x357   : > { %v1412_v43 = vmul.f32 %v8002_v42, %v1396_v12  ;;  %v1427_v44 = vadd.f32 %v7284_v40, %v1419_v41 }
 0x359   : > { %v1420_v47 = vmul.f32 %v7283_v38, %v1412_v43  ;;  %7540 = vmatprep.mubr.msk.f32.mxu1 %vm1385_vm1, %v1427_v44  ;;  %7562 = vmatprep.mubr.msk.f32.mxu0 %vm1385_vm1, %v1427_v44 }
 0x35b   : > { %v1428_v48 = vadd.f32 %v7284_v40, %v1420_v47 }
 0x35d   : > { %7541 = vmatmul.mubr.msk.f32.vlgmr.msra.gmra.mrb[0].mxu1 %vm1385_vm1, %v1428_v48  ;;  %7563 = vmatmul.mubr.msk.f32.vlgmr.msra.gmra.mrb[0].mxu0 %vm1385_vm1, %v1428_v48 }
 0x35e   : > { %7829 = vmatpush3.bf16.msra.mxu1 %v7826_v30  ;;  %7551 = vmatprep.mubr.msk.f32.mxu1 %vm1385_vm1, %v1427_v44 }
 0x35f   : > { %7831 = vmatprep.subr.bf16.mxu1 %v7830_v49  ;;  %7587 = vmatprep.mubr.msk.f32.mxu0 %vm8649_vm2, %v8648_v56 }
 0x362   : > { %7833 = vmatpush3.bf16.msra.mxu1 %v7830_v49 }
 0x363   : > { %7565 = vmatprep.subr.mxu1 %v8648_v56 }
 0x365   : > { %7552 = vmatmul.mubr.msk.f32.vlgmr.msra.gmra.mrb[2].mxu1 %vm1385_vm1, %v1428_v48 }
 0x366   : > { %7567 = vmatprep.mubr.msk.f32.mxu1 %vm8649_vm2, %v8648_v56 }
 0x430   : > { %v9459_v50 = vpop.f32.mrb[0].mxu1  ;;  %v9461_v51 = vpop.f32.mrb[0].mxu0 }
 0x431   : > { %v1517_v52 = vpop.f32.mrb[1].mxu1  ;;  %v9463_v53 = vpop.f32.mrb[1].mxu0 }
 0x432   : > { %1677 = vrot.lane.b32.xlu1 %v1517_v52, %s8645_s11 }
 0x438   : > { %v9466_v54 = vpop.f32.mrb[2].mxu1 }
 0x439   : > { %v1592_v55 = vpop.f32.mrb[3].mxu1 }
 0x43a   : > { %1826 = vrot.lane.b32.xlu1 %v1592_v55, %s8646_s30  ;;  %1823 = vrot.lane.b32.xlu0 %v1592_v55, %s8645_s11 }
 0x43e   : > { %1829 = vrot.lane.b32.xlu1 %v1592_v55, %s8647_s3  ;;  %1680 = vrot.lane.b32.xlu0 %v1517_v52, %s8646_s30 }
 0x442   : > { %1683 = vrot.lane.b32.xlu1 %v1517_v52, %s8647_s3 }
 0x4a4   : > { %v1678_v60 = vpop.permute.xlu1 %1677 }
 0x4ac   : > { %v1827_v1 = vpop.permute.xlu1 %1826  ;;  %v1824_v2 = vpop.permute.xlu0 %1823 }
 0x4ad   : > { %v1832_v5 = vcombine.low %v1592_v55, %v1827_v1  ;;  %v1833_v6 = vcombine.high %v1592_v55, %v1827_v1 }
 0x4af   : > { %v1840_v12 = vrot.slane %v1832_v5, %v9479_v4  ;;  %v1847_v13 = vrot.slane %v1833_v6, %v9479_v4 }
 0x4b0   : > { %v1830_v7 = vpop.permute.xlu1 %1829  ;;  %v1681_v10 = vpop.permute.xlu0 %1680 }
 0x4b1   : > { %v1848_v8 = vcombine.low %v1824_v2, %v1830_v7  ;;  %v1849_v9 = vcombine.high %v1824_v2, %v1830_v7  ;;  %v1686_v16 = vcombine.low %v1517_v52, %v1681_v10  ;;  %v1687_v17 = vcombine.high %v1517_v52, %v1681_v10 }
 0x4b3   : > { %v1856_v14 = vrot.slane %v1848_v8, %v9479_v4  ;;  %v1863_v15 = vrot.slane %v1849_v9, %v9479_v4  ;;  %v1694_v29 = vrot.slane %v1686_v16, %v9479_v4  ;;  %v1701_v30 = vrot.slane %v1687_v17, %v9479_v4 }
 0x4b4   : > { %v1684_v18 = vpop.permute.xlu1 %1683 }
 0x4b5   : > { %v1864_v19 = vcombine.low %v1840_v12, %v1856_v14  ;;  %v1865_v20 = vcombine.high %v1840_v12, %v1856_v14  ;;  %v1880_v21 = vcombine.low %v1847_v13, %v1863_v15  ;;  %v1881_v22 = vcombine.high %v1847_v13, %v1863_v15 }
 0x4b6   : > { %v1702_v23 = vcombine.low %v1678_v60, %v1684_v18  ;;  %v1703_v24 = vcombine.high %v1678_v60, %v1684_v18 }
 0x4b7   : > { %v1872_v25 = vrot.slane %v1864_v19, %v9481_v11  ;;  %v1879_v26 = vrot.slane %v1865_v20, %v9481_v11  ;;  %v1888_v27 = vrot.slane %v1880_v21, %v9481_v11  ;;  %v1895_v28 = vrot.slane %v1881_v22, %v9481_v11 }
 0x4b8   : > { %v1710_v31 = vrot.slane %v1702_v23, %v9479_v4  ;;  %v1717_v32 = vrot.slane %v1703_v24, %v9479_v4 }
 0x4b9   : > { %v1900_v33 = vcombine.low %v1872_v25, %v1879_v26  ;;  %v7293_v34 = vcombine.high %v1872_v25, %v1879_v26  ;;  %v1916_v35 = vcombine.low %v1888_v27, %v1895_v28  ;;  %v7294_v36 = vcombine.high %v1888_v27, %v1895_v28  ;;  %v9538_v25 = vld [vmem:[%s10277_s10] sm:$0xff] }
 0x4ba   : > { %v1718_v37 = vcombine.low %v1694_v29, %v1710_v31  ;;  %v1719_v38 = vcombine.high %v1694_v29, %v1710_v31  ;;  %v1734_v39 = vcombine.low %v1701_v30, %v1717_v32  ;;  %v1735_v40 = vcombine.high %v1701_v30, %v1717_v32 }
 0x4bb   : > { %v1907_v41 = vrot.slane %v1900_v33, %v9479_v4  ;;  %v1915_v42 = vrot.slane %v7293_v34, %v9479_v4  ;;  %v1923_v43 = vrot.slane %v1916_v35, %v9479_v4  ;;  %v1931_v44 = vrot.slane %v7294_v36, %v9479_v4 }
 0x4bc   : > { %v1726_v45 = vrot.slane %v1718_v37, %v9481_v11  ;;  %v1733_v46 = vrot.slane %v1719_v38, %v9481_v11  ;;  %v1742_v47 = vrot.slane %v1734_v39, %v9481_v11  ;;  %v1749_v48 = vrot.slane %v1735_v40, %v9481_v11 }
 0x4bd   : > { %v1932_v49 = vcombine.low %v1907_v41, %v1915_v42  ;;  %v1948_v52 = vcombine.low %v1923_v43, %v1931_v44  ;;  %v1933_v6 = vcombine.high %v1907_v41, %v1915_v42  ;;  %v1949_v7 = vcombine.high %v1923_v43, %v1931_v44 }
 0x4be   : > { %v1754_v55 = vcombine.low %v1726_v45, %v1733_v46  ;;  %v7291_v57 = vcombine.high %v1726_v45, %v1733_v46  ;;  %v1770_v58 = vcombine.low %v1742_v47, %v1749_v48  ;;  %v7292_v59 = vcombine.high %v1742_v47, %v1749_v48 }
 0x4bf   : > { %v1940_v60 = vrot.slane %v1932_v49, %v9481_v11  ;;  %v1956_v61 = vrot.slane %v1948_v52, %v9481_v11  ;;  %v1947_v15 = vrot.slane %v1933_v6, %v9481_v11  ;;  %v1963_v16 = vrot.slane %v1949_v7, %v9481_v11 }
 0x4c0   : > { %v1761_v62 = vrot.slane %v1754_v55, %v9479_v4  ;;  %v1769_v63 = vrot.slane %v7291_v57, %v9479_v4  ;;  %v1777_v0 = vrot.slane %v1770_v58, %v9479_v4  ;;  %v1785_v1 = vrot.slane %v7292_v59, %v9479_v4 }
 0x4c1   : > { %v1964_v2 = vcombine.low %v1940_v60, %v1956_v61  ;;  %v1965_v14 = vcombine.high %v1940_v60, %v1956_v61  ;;  %v1966_v20 = vcombine.low %v1947_v15, %v1963_v16  ;;  %v1967_v22 = vcombine.high %v1947_v15, %v1963_v16 }
 0x4c2   : > { %v1786_v3 = vcombine.low %v1761_v62, %v1769_v63  ;;  %v1802_v5 = vcombine.low %v1777_v0, %v1785_v1  ;;  %v1787_v10 = vcombine.high %v1761_v62, %v1769_v63  ;;  %v1803_v12 = vcombine.high %v1777_v0, %v1785_v1 }
 0x4c3   : > { %7566 = vmatpush3.xpose.msk.msra.mxu1 %vm2114_vm3, %v1964_v2 }
 0x4c4   : > { %7570 = vmatprep.subr.mxu1 %v8648_v56  ;;  %v1794_v8 = vrot.slane %v1786_v3, %v9481_v11  ;;  %v1810_v9 = vrot.slane %v1802_v5, %v9481_v11  ;;  %v1801_v18 = vrot.slane %v1787_v10, %v9481_v11  ;;  %v1817_v19 = vrot.slane %v1803_v12, %v9481_v11 }
 0x4c6   : > { %v1818_v13 = vcombine.low %v1794_v8, %v1810_v9  ;;  %v1819_v17 = vcombine.high %v1794_v8, %v1810_v9  ;;  %v1820_v21 = vcombine.low %v1801_v18, %v1817_v19  ;;  %v1821_v23 = vcombine.high %v1801_v18, %v1817_v19 }
 0x4c8   : > { %7568 = vmatmul.mubr.msk.f32.vlgmr.msra.gmra.mrb[4].mxu1 %vm2114_vm3, %v1818_v13 }
 0x4c9   : > { %7571 = vmatpush3.xpose.msk.msra.mxu1 %vm2114_vm3, %v1965_v14  ;;  %7572 = vmatprep.mubr.msk.f32.mxu1 %vm8649_vm2, %v8648_v56 }
 0x4ca   : > { %7575 = vmatprep.subr.mxu1 %v8648_v56 }
 0x4cc   : > { %7573 = vmatmul.mubr.msk.f32.vlgmr.msra.gmra.mrb[6].mxu1 %vm2114_vm3, %v1819_v17 }
 0x4cd   : > { %7576 = vmatpush3.xpose.msk.msra.mxu1 %vm2114_vm3, %v1966_v20  ;;  %7577 = vmatprep.mubr.msk.f32.mxu1 %vm8649_vm2, %v8648_v56 }
 0x4ce   : > { %7580 = vmatprep.subr.mxu1 %v8648_v56 }
 0x4d0   : > { %7578 = vmatmul.mubr.msk.f32.vlgmr.msra.gmra.mrb[8].mxu1 %vm2114_vm3, %v1820_v21 }
 0x4d1   : > { %7581 = vmatpush3.xpose.msk.msra.mxu1 %vm2114_vm3, %v1967_v22  ;;  %7582 = vmatprep.mubr.msk.f32.mxu1 %vm8649_vm2, %v8648_v56 }
 0x4d2   : > { %7590 = vmatprep.subr.mxu1 %v8648_v56 }
 0x4d4   : > { %7583 = vmatmul.mubr.msk.f32.vlgmr.msra.gmra.mrb[10].mxu1 %vm2114_vm3, %v1821_v23 }
 0x4d5   : > { %7592 = vmatprep.mubr.msk.f32.mxu1 %vm8649_vm2, %v8648_v56 }
 0x59b   : > { %v2187_v24 = vpop.f32.mrb[4].mxu1 }
 0x59c   : > { %v2419_v26 = vmul.f32 0.35355338, %v2187_v24  ;;  %v7569_v27 = vpop.f32.mrb[5].mxu1 }
 0x59e   : > { %v2423_v28 = vadd.f32 %v2419_v26, %v9538_v25 }
 0x59f   : > { %v2263_v29 = vpop.f32.mrb[6].mxu1 }
 0x5a0   : > { %v2420_v30 = vmul.f32 0.35355338, %v2263_v29  ;;  %v7574_v31 = vpop.f32.mrb[7].mxu1  ;;  %v2427_v32 = vsel %vm2114_vm3, %v2423_v28, -inf }
 0x5a1   : > { %2428 = vmax.xlane.f32.xlu0 %v2427_v32 }
 0x5a2   : > { %v2424_v33 = vadd.f32 %v2420_v30, %v9538_v25 }
 0x5a3   : > { %v2339_v34 = vpop.f32.mrb[8].mxu1 }
 0x5a4   : > { %v2421_v35 = vmul.f32 0.35355338, %v2339_v34  ;;  %v7579_v36 = vpop.f32.mrb[9].mxu1  ;;  %v2430_v37 = vsel %vm2114_vm3, %v2424_v33, -inf }
 0x5a5   : > { %2431 = vmax.xlane.f32.xlu1 %v2430_v37 }
 0x5a6   : > { %v2425_v38 = vadd.f32 %v2421_v35, %v9538_v25 }
 0x5a7   : > { %v2415_v39 = vpop.f32.mrb[10].mxu1 }
 0x5a8   : > { %v2422_v40 = vmul.f32 0.35355338, %v2415_v39  ;;  %v7584_v41 = vpop.f32.mrb[11].mxu1  ;;  %v2433_v42 = vsel %vm2114_vm3, %v2425_v38, -inf }
 0x5a9   : > { %2434 = vmax.xlane.f32.xlu0 %v2433_v42 }
 0x5aa   : > { %v2426_v43 = vadd.f32 %v2422_v40, %v9538_v25 }
 0x5ac   : > { %v2436_v44 = vsel %vm2114_vm3, %v2426_v43, -inf }
 0x5ad   : > { %2437 = vmax.xlane.f32.xlu0 %v2436_v44 }
 0x5b6   : > { %1969 = vrot.lane.b32.xlu1 %v9463_v53, %s8645_s11 }
 0x5c3   : > { %1972 = vrot.lane.b32.xlu0 %v9463_v53, %s8646_s30 }
 0x62e   : > { %v2429_v45 = vpop.xlane.xlu0 %2428 }
 0x62f   : > { %v2439_v46 = vsub.f32 %v2423_v28, %v2429_v45 }
 0x631   : > { %v2443_v47 = vmul.f32 1.442695, %v2439_v46 }
 0x632   : > { %v2432_v48 = vpop.xlane.xlu1 %2431 }
 0x633   : > { %8003 = vpow2.f32 %v2443_v47  ;;  %v2440_v49 = vsub.f32 %v2424_v33, %v2432_v48 }
 0x635   : > { %v2445_v52 = vmul.f32 1.442695, %v2440_v49 }
 0x636   : > { %v2435_v55 = vpop.xlane.xlu0 %2434  ;;  %v1970_v7 = vpop.permute.xlu1 %1969 }
 0x637   : > { %8005 = vpow2.f32 %v2445_v52  ;;  %v2441_v57 = vsub.f32 %v2425_v38, %v2435_v55 }
 0x639   : > { %v2447_v58 = vmul.f32 1.442695, %v2441_v57 }
 0x63a   : > { %v2438_v1 = vpop.xlane.xlu0 %2437 }
 0x63b   : > { %8007 = vpow2.f32 %v2447_v58  ;;  %v2442_v2 = vsub.f32 %v2426_v43, %v2438_v1 }
 0x63d   : > { %v9552_v59 = vpop.eup %8003  ;;  %v2449_v3 = vmul.f32 1.442695, %v2442_v2 }
 0x63e   : > { %v2451_v60 = vsel %vm2114_vm3, %v9552_v59, 0.0  ;;  %v1973_v8 = vpop.permute.xlu0 %1972 }
 0x63f   : > { %2452 = vadd.xlane.f32.xlu0 %v2451_v60  ;;  %8009 = vpow2.f32 %v2449_v3  ;;  %v1978_v12 = vcombine.low %v9463_v53, %v1973_v8  ;;  %v1979_v13 = vcombine.high %v9463_v53, %v1973_v8 }
 0x641   : > { %v9556_v61 = vpop.eup %8005  ;;  %v1986_v18 = vrot.slane %v1978_v12, %v9479_v4  ;;  %v1993_v19 = vrot.slane %v1979_v13, %v9479_v4 }
 0x642   : > { %v2454_v62 = vsel %vm2114_vm3, %v9556_v61, 0.0 }
 0x643   : > { %2455 = vadd.xlane.f32.xlu1 %v2454_v62 }
 0x645   : > { %v9560_v63 = vpop.eup %8007 }
 0x646   : > { %v2457_v0 = vsel %vm2114_vm3, %v9560_v63, 0.0 }
 0x647   : > { %2458 = vadd.xlane.f32.xlu0 %v2457_v0 }
 0x649   : > { %v9578_v5 = vpop.eup %8009 }
 0x64a   : > { %v2460_v6 = vsel %vm2114_vm3, %v9578_v5, 0.0 }
 0x654   : > { %1975 = vrot.lane.b32.xlu1 %v9463_v53, %s8647_s3 }
 0x65d   : > { %2927 = vrot.lane.b32.xlu0 %v9466_v54, %s8645_s11 }
 0x661   : > { %2930 = vrot.lane.b32.xlu0 %v9466_v54, %s8646_s30 }
 0x665   : > { %2933 = vrot.lane.b32.xlu0 %v9466_v54, %s8647_s3 }
 0x669   : > { %2781 = vrot.lane.b32.xlu0 %v9459_v50, %s8645_s11 }
 0x66d   : > { %2784 = vrot.lane.b32.xlu0 %v9459_v50, %s8646_s30 }
 0x671   : > { %2787 = vrot.lane.b32.xlu0 %v9459_v50, %s8647_s3 }
 0x678   : > { %2461 = vadd.xlane.f32.xlu1 %v2460_v6 }
 0x6cc   : > { %v2453_v9 = vpop.xlane.xlu0 %2452 }
 0x6cd   : > { %8011 = vrcp.f32 %v2453_v9 }
 0x6d0   : > { %v2456_v10 = vpop.xlane.xlu1 %2455 }
 0x6d1   : > { %8013 = vrcp.f32 %v2456_v10 }
 0x6d4   : > { %v1976_v14 = vpop.permute.xlu1 %1975  ;;  %v2459_v15 = vpop.xlane.xlu0 %2458 }
 0x6d5   : > { %v1994_v16 = vcombine.low %v1970_v7, %v1976_v14  ;;  %v1995_v17 = vcombine.high %v1970_v7, %v1976_v14  ;;  %8015 = vrcp.f32 %v2459_v15 }
 0x6d7   : > { %v2002_v20 = vrot.slane %v1994_v16, %v9479_v4  ;;  %v2009_v21 = vrot.slane %v1995_v17, %v9479_v4  ;;  %v8012_v43 = vpop.eup %8011 }
 0x6d8   : > { %v2928_v22 = vpop.permute.xlu0 %2927  ;;  %v2464_v0 = vmul.f32 %v8012_v43, %v9552_v59 }
 0x6d9   : > { %v2010_v23 = vcombine.low %v1986_v18, %v2002_v20  ;;  %v2011_v24 = vcombine.high %v1986_v18, %v2002_v20  ;;  %v2026_v26 = vcombine.low %v1993_v19, %v2009_v21  ;;  %v2027_v27 = vcombine.high %v1993_v19, %v2009_v21 }
 0x6db   : > { %v2018_v53 = vrot.slane %v2010_v23, %v9481_v11  ;;  %v2025_v28 = vrot.slane %v2011_v24, %v9481_v11  ;;  %v2034_v29 = vrot.slane %v2026_v26, %v9481_v11  ;;  %v2041_v30 = vrot.slane %v2027_v27, %v9481_v11  ;;  %v8014_v62 = vpop.eup %8013 }
 0x6dc   : > { %v2931_v31 = vpop.permute.xlu0 %2930  ;;  %v2466_v17 = vmul.f32 %v8014_v62, %v9556_v61 }
 0x6dd   : > { %v2046_v32 = vcombine.low %v2018_v53, %v2025_v28  ;;  %v7295_v33 = vcombine.high %v2018_v53, %v2025_v28  ;;  %v2062_v34 = vcombine.low %v2034_v29, %v2041_v30  ;;  %v7296_v35 = vcombine.high %v2034_v29, %v2041_v30 }
 0x6de   : > { %v2936_v36 = vcombine.low %v9466_v54, %v2931_v31  ;;  %v2937_v37 = vcombine.high %v9466_v54, %v2931_v31 }
 0x6df   : > { %v2053_v38 = vrot.slane %v2046_v32, %v9479_v4  ;;  %v2061_v39 = vrot.slane %v7295_v33, %v9479_v4  ;;  %v2069_v40 = vrot.slane %v2062_v34, %v9479_v4  ;;  %v2077_v41 = vrot.slane %v7296_v35, %v9479_v4  ;;  %v8016_v59 = vpop.eup %8015 }
 0x6e0   : > { %v2934_v42 = vpop.permute.xlu0 %2933  ;;  %v2944_v48 = vrot.slane %v2936_v36, %v9479_v4  ;;  %v2951_v49 = vrot.slane %v2937_v37, %v9479_v4  ;;  %v2468_v29 = vmul.f32 %v8016_v59, %v9560_v63 }
 0x6e1   : > { %v2952_v44 = vcombine.low %v2928_v22, %v2934_v42  ;;  %v2953_v45 = vcombine.high %v2928_v22, %v2934_v42  ;;  %v2078_v46 = vcombine.low %v2053_v38, %v2061_v39  ;;  %v2094_v47 = vcombine.low %v2069_v40, %v2077_v41 }
 0x6e2   : > { %v2079_v52 = vcombine.high %v2053_v38, %v2061_v39  ;;  %v2095_v54 = vcombine.high %v2069_v40, %v2077_v41 }
 0x6e3   : > { %v2960_v55 = vrot.slane %v2952_v44, %v9479_v4  ;;  %v2967_v57 = vrot.slane %v2953_v45, %v9479_v4  ;;  %v2086_v58 = vrot.slane %v2078_v46, %v9481_v11  ;;  %v2102_v60 = vrot.slane %v2094_v47, %v9481_v11 }
 0x6e4   : > { %v2782_v1 = vpop.permute.xlu0 %2781  ;;  %v2093_v10 = vrot.slane %v2079_v52, %v9481_v11  ;;  %v2109_v12 = vrot.slane %v2095_v54, %v9481_v11 }
 0x6e5   : > { %v2968_v2 = vcombine.low %v2944_v48, %v2960_v55  ;;  %v2969_v3 = vcombine.high %v2944_v48, %v2960_v55  ;;  %v2984_v6 = vcombine.low %v2951_v49, %v2967_v57  ;;  %v2985_v7 = vcombine.high %v2951_v49, %v2967_v57 }
 0x6e6   : > { %v2110_v8 = vcombine.low %v2086_v58, %v2102_v60  ;;  %v2111_v9 = vcombine.high %v2086_v58, %v2102_v60  ;;  %v2112_v24 = vcombine.low %v2093_v10, %v2109_v12  ;;  %v2113_v26 = vcombine.high %v2093_v10, %v2109_v12 }
 0x6e7   : > { %v2976_v13 = vrot.slane %v2968_v2, %v9481_v11  ;;  %v2983_v14 = vrot.slane %v2969_v3, %v9481_v11  ;;  %v2992_v15 = vrot.slane %v2984_v6, %v9481_v11  ;;  %v2999_v16 = vrot.slane %v2985_v7, %v9481_v11 }
 0x6e8   : > { %7586 = vmatpush3.msra.mxu0 %v2110_v8  ;;  %7591 = vmatpush3.msra.mxu1 %v2111_v9  ;;  %v2785_v18 = vpop.permute.xlu0 %2784 }
 0x6e9   : > { %v3004_v19 = vcombine.low %v2976_v13, %v2983_v14  ;;  %v7311_v20 = vcombine.high %v2976_v13, %v2983_v14  ;;  %v3020_v21 = vcombine.low %v2992_v15, %v2999_v16  ;;  %v7312_v22 = vcombine.high %v2992_v15, %v2999_v16  ;;  %7588 = vmatmul.mubr.msk.f32.vlgmr.msra.gmra.mrb[2].mxu0 %vm2114_vm3, %v2464_v0 }
 0x6ea   : > { %7593 = vmatmul.mubr.msk.f32.vlgmr.msra.gmra.mrb[12].mxu1 %vm2114_vm3, %v2466_v17  ;;  %7595 = vmatprep.subr.mxu0 %v8648_v56  ;;  %v2790_v23 = vcombine.low %v9459_v50, %v2785_v18  ;;  %v2791_v30 = vcombine.high %v9459_v50, %v2785_v18 }
 0x6eb   : > { %v3011_v27 = vrot.slane %v3004_v19, %v9479_v4  ;;  %v3019_v61 = vrot.slane %v7311_v20, %v9479_v4  ;;  %v3027_v53 = vrot.slane %v3020_v21, %v9479_v4  ;;  %v3035_v28 = vrot.slane %v7312_v22, %v9479_v4  ;;  %7600 = vmatprep.subr.mxu1 %v8648_v56 }
 0x6ec   : > { %7596 = vmatpush3.msra.mxu0 %v2112_v24  ;;  %7601 = vmatpush3.msra.mxu1 %v2113_v26  ;;  %v2788_v31 = vpop.permute.xlu0 %2787  ;;  %v2798_v36 = vrot.slane %v2790_v23, %v9479_v4  ;;  %v2805_v37 = vrot.slane %v2791_v30, %v9479_v4 }
 0x6ed   : > { %v3036_v32 = vcombine.low %v3011_v27, %v3019_v61  ;;  %v3052_v33 = vcombine.low %v3027_v53, %v3035_v28  ;;  %7597 = vmatprep.mubr.msk.f32.mxu0 %vm8649_vm2, %v8648_v56  ;;  %v2806_v34 = vcombine.low %v2782_v1, %v2788_v31  ;;  %v2807_v35 = vcombine.high %v2782_v1, %v2788_v31 }
 0x6ee   : > { %7598 = vmatmul.mubr.msk.f32.vlgmr.msra.gmra.mrb[4].mxu0 %vm2114_vm3, %v2468_v29  ;;  %7605 = vmatprep.subr.mxu0 %v8648_v56  ;;  %v3037_v57 = vcombine.high %v3011_v27, %v3019_v61  ;;  %v3053_v58 = vcombine.high %v3027_v53, %v3035_v28 }
 0x6ef   : > { %v3044_v63 = vrot.slane %v3036_v32, %v9481_v11  ;;  %v3060_v50 = vrot.slane %v3052_v33, %v9481_v11  ;;  %7607 = vmatprep.mubr.msk.f32.mxu0 %vm8649_vm2, %v8648_v56  ;;  %v2814_v38 = vrot.slane %v2806_v34, %v9479_v4  ;;  %v2821_v39 = vrot.slane %v2807_v35, %v9479_v4 }
 0x6f0   : > { %7602 = vmatprep.mubr.msk.f32.mxu1 %vm8649_vm2, %v8648_v56  ;;  %7610 = vmatprep.subr.mxu1 %v8648_v56  ;;  %v3051_v8 = vrot.slane %v3037_v57, %v9481_v11  ;;  %v3067_v9 = vrot.slane %v3053_v58, %v9481_v11 }
 0x6f1   : > { %v3068_v40 = vcombine.low %v3044_v63, %v3060_v50  ;;  %v2822_v41 = vcombine.low %v2798_v36, %v2814_v38  ;;  %v2823_v42 = vcombine.high %v2798_v36, %v2814_v38  ;;  %v2838_v43 = vcombine.low %v2805_v37, %v2821_v39 }
 0x6f2   : > { %v2839_v44 = vcombine.high %v2805_v37, %v2821_v39  ;;  %v3070_v16 = vcombine.low %v3051_v8, %v3067_v9  ;;  %v3069_v20 = vcombine.high %v3044_v63, %v3060_v50  ;;  %v3071_v22 = vcombine.high %v3051_v8, %v3067_v9 }
 0x6f3   : > { %7606 = vmatpush3.xpose.msk.msra.mxu0 %vm2114_vm3, %v3068_v40  ;;  %v2830_v45 = vrot.slane %v2822_v41, %v9481_v11  ;;  %v2837_v46 = vrot.slane %v2823_v42, %v9481_v11  ;;  %v2846_v47 = vrot.slane %v2838_v43, %v9481_v11 }
 0x6f4   : > { %v2853_v48 = vrot.slane %v2839_v44, %v9481_v11  ;;  %7615 = vmatprep.subr.mxu0 %v8648_v56 }
 0x6f5   : > { %v2858_v49 = vcombine.low %v2830_v45, %v2837_v46  ;;  %v7309_v52 = vcombine.high %v2830_v45, %v2837_v46 }
 0x6f6   : > { %v2874_v54 = vcombine.low %v2846_v47, %v2853_v48  ;;  %v7310_v55 = vcombine.high %v2846_v47, %v2853_v48 }
 0x6f7   : > { %v2865_v60 = vrot.slane %v2858_v49, %v9479_v4  ;;  %v2873_v62 = vrot.slane %v7309_v52, %v9479_v4 }
 0x6f8   : > { %v2881_v0 = vrot.slane %v2874_v54, %v9479_v4  ;;  %v2889_v1 = vrot.slane %v7310_v55, %v9479_v4 }
 0x6f9   : > { %v2890_v2 = vcombine.low %v2865_v60, %v2873_v62  ;;  %v2891_v3 = vcombine.high %v2865_v60, %v2873_v62 }
 0x6fa   : > { %v2906_v6 = vcombine.low %v2881_v0, %v2889_v1  ;;  %v2907_v7 = vcombine.high %v2881_v0, %v2889_v1 }
 0x6fb   : > { %v2898_v10 = vrot.slane %v2890_v2, %v9481_v11  ;;  %v2905_v14 = vrot.slane %v2891_v3, %v9481_v11 }
 0x6fc   : > { %v2914_v12 = vrot.slane %v2906_v6, %v9481_v11  ;;  %v2921_v15 = vrot.slane %v2907_v7, %v9481_v11 }
 0x6fe   : > { %v2922_v13 = vcombine.low %v2898_v10, %v2914_v12  ;;  %v2924_v59 = vcombine.low %v2905_v14, %v2921_v15  ;;  %v2923_v21 = vcombine.high %v2898_v10, %v2914_v12 }
 0x700   : > { %7608 = vmatmul.mubr.msk.f32.vlgmr.msra.gmra.mrb[6].mxu0 %vm2114_vm3, %v2922_v13 }
 0x701   : > { %7616 = vmatpush3.xpose.msk.msra.mxu0 %vm2114_vm3, %v3070_v16  ;;  %7617 = vmatprep.mubr.msk.f32.mxu0 %vm8649_vm2, %v8648_v56 }
 0x702   : > { %7625 = vmatprep.subr.mxu0 %v8648_v56 }
 0x704   : > { %7618 = vmatmul.mubr.msk.f32.vlgmr.msra.gmra.mrb[8].mxu0 %vm2114_vm3, %v2924_v59 }
 0x705   : > { %v2462_v17 = vpop.xlane.xlu1 %2461  ;;  %7627 = vmatprep.mubr.msk.f32.mxu0 %vm8649_vm2, %v8648_v56 }
 0x706   : > { %8017 = vrcp.f32 %v2462_v17 }
 0x710   : > { %v8018_v18 = vpop.eup %8017 }
 0x711   : > { %v2470_v19 = vmul.f32 %v8018_v18, %v9578_v5  ;;  %v2925_v5 = vcombine.high %v2905_v14, %v2921_v15 }
 0x713   : > { %7603 = vmatmul.mubr.msk.f32.vlgmr.msra.gmra.mrb[14].mxu1 %vm2114_vm3, %v2470_v19 }
 0x714   : > { %7611 = vmatpush3.xpose.msk.msra.mxu1 %vm2114_vm3, %v3069_v20  ;;  %7612 = vmatprep.mubr.msk.f32.mxu1 %vm8649_vm2, %v8648_v56 }
 0x715   : > { %7620 = vmatprep.subr.mxu1 %v8648_v56 }
 0x717   : > { %7613 = vmatmul.mubr.msk.f32.vlgmr.msra.gmra.mrb[16].mxu1 %vm2114_vm3, %v2923_v21 }
 0x718   : > { %7621 = vmatpush3.xpose.msk.msra.mxu1 %vm2114_vm3, %v3071_v22  ;;  %7622 = vmatprep.mubr.msk.f32.mxu1 %vm8649_vm2, %v8648_v56 }
 0x719   : > { %7630 = vmatprep.subr.mxu1 %v8648_v56 }
 0x71b   : > { %7623 = vmatmul.mubr.msk.f32.vlgmr.msra.gmra.mrb[18].mxu1 %vm2114_vm3, %v2925_v5 }
 0x71c   : > { %7632 = vmatprep.mubr.msk.f32.mxu1 %vm8649_vm2, %v8648_v56 }
 0x7bc   : > { %v9676_v23 = vpop.f32.mrb[2].mxu0 }
 0x7bd   : > { %v2613_v24 = vpop.f32.mrb[12].mxu1  ;;  %v7589_v26 = vpop.f32.mrb[3].mxu0 }
 0x7be   : > { %v7594_v27 = vpop.f32.mrb[13].mxu1 }
 0x7c1   : > { %v2686_v61 = vpop.f32.mrb[4].mxu0 }
 0x7c2   : > { %v7599_v53 = vpop.f32.mrb[5].mxu0 }
 0x7d3   : > { %v3290_v28 = vpop.f32.mrb[6].mxu0 }
 0x7d4   : > { %v3522_v29 = vmul.f32 0.35355338, %v3290_v28  ;;  %v7609_v30 = vpop.f32.mrb[7].mxu0 }
 0x7d6   : > { %v3526_v31 = vadd.f32 %v3522_v29, %v9538_v25 }
 0x7d7   : > { %v3442_v32 = vpop.f32.mrb[8].mxu0 }
 0x7d8   : > { %v7619_v33 = vpop.f32.mrb[9].mxu0  ;;  %v3530_v34 = vsel %vm2114_vm3, %v3526_v31, -inf  ;;  %v3524_v50 = vmul.f32 0.35355338, %v3442_v32 }
 0x7d9   : > { %3531 = vmax.xlane.f32.xlu0 %v3530_v34 }
 0x7da   : > { %v3528_v44 = vadd.f32 %v3524_v50, %v9538_v25 }
 0x7dc   : > { %v3536_v45 = vsel %vm2114_vm3, %v3528_v44, -inf }
 0x7e6   : > { %v2759_v35 = vpop.f32.mrb[14].mxu1 }
 0x7e7   : > { %v7604_v36 = vpop.f32.mrb[15].mxu1 }
 0x7ea   : > { %v3366_v63 = vpop.f32.mrb[16].mxu1 }
 0x7eb   : > { %v3523_v37 = vmul.f32 0.35355338, %v3366_v63  ;;  %v7614_v38 = vpop.f32.mrb[17].mxu1 }
 0x7ed   : > { %v3527_v39 = vadd.f32 %v3523_v37, %v9538_v25 }
 0x7ee   : > { %v3518_v40 = vpop.f32.mrb[18].mxu1 }
 0x7ef   : > { %v3525_v41 = vmul.f32 0.35355338, %v3518_v40  ;;  %v7624_v42 = vpop.f32.mrb[19].mxu1  ;;  %v3533_v43 = vsel %vm2114_vm3, %v3527_v39, -inf }
 0x7f0   : > { %3534 = vmax.xlane.f32.xlu1 %v3533_v43 }
 0x7f1   : > { %v3529_v46 = vadd.f32 %v3525_v41, %v9538_v25 }
 0x7f3   : > { %v3539_v47 = vsel %vm2114_vm3, %v3529_v46, -inf }
 0x7f4   : > { %3537 = vmax.xlane.f32.xlu1 %v3536_v45 }
 0x7f8   : > { %3540 = vmax.xlane.f32.xlu1 %v3539_v47 }
 0x809   : > { %3073 = vrot.lane.b32.xlu1 %v9461_v51, %s8645_s11 }
 0x866   : > { %v3532_v48 = vpop.xlane.xlu0 %3531 }
 0x867   : > { %v3542_v49 = vsub.f32 %v3526_v31, %v3532_v48 }
 0x869   : > { %v3546_v52 = vmul.f32 1.442695, %v3542_v49 }
 0x86b   : > { %8019 = vpow2.f32 %v3546_v52 }
 0x875   : > { %v9688_v54 = vpop.eup %8019 }
 0x876   : > { %v3554_v55 = vsel %vm2114_vm3, %v9688_v54, 0.0 }
 0x877   : > { %3555 = vadd.xlane.f32.xlu1 %v3554_v55 }
 0x87d   : > { %v3535_v57 = vpop.xlane.xlu1 %3534 }
 0x87e   : > { %v3543_v58 = vsub.f32 %v3527_v39, %v3535_v57 }
 0x880   : > { %v3548_v25 = vmul.f32 1.442695, %v3543_v58 }
 0x881   : > { %v3538_v60 = vpop.xlane.xlu1 %3537 }
 0x882   : > { %8021 = vpow2.f32 %v3548_v25  ;;  %v3544_v62 = vsub.f32 %v3528_v44, %v3538_v60 }
 0x884   : > { %v3550_v0 = vmul.f32 1.442695, %v3544_v62 }
 0x885   : > { %v3541_v1 = vpop.xlane.xlu1 %3540 }
 0x886   : > { %8023 = vpow2.f32 %v3550_v0  ;;  %v3545_v2 = vsub.f32 %v3529_v46, %v3541_v1 }
 0x888   : > { %v3552_v3 = vmul.f32 1.442695, %v3545_v2 }
 0x889   : > { %v3074_v13 = vpop.permute.xlu1 %3073 }
 0x88a   : > { %8025 = vpow2.f32 %v3552_v3 }
 0x88c   : > { %v9692_v6 = vpop.eup %8021 }
 0x88d   : > { %v3557_v7 = vsel %vm2114_vm3, %v9692_v6, 0.0 }
 0x88e   : > { %3558 = vadd.xlane.f32.xlu1 %v3557_v7 }
 0x890   : > { %v9696_v8 = vpop.eup %8023 }
 0x891   : > { %v3560_v9 = vsel %vm2114_vm3, %v9696_v8, 0.0 }
 0x892   : > { %3561 = vadd.xlane.f32.xlu1 %v3560_v9 }
 0x894   : > { %v9700_v10 = vpop.eup %8025 }
 0x895   : > { %v3563_v12 = vsel %vm2114_vm3, %v9700_v10, 0.0 }
 0x896   : > { %3564 = vadd.xlane.f32.xlu0 %v3563_v12  ;;  %v1443_v12 = vld [vmem:[%s9415_s4 + $0x10] sm:$0xff] }
 0x8a3   : > { %3079 = vrot.lane.b32.xlu1 %v9461_v51, %s8647_s3 }
 0x8a7   : > { %2764 = vrot.lane.b32.xlu1 %v2613_v24, %s8652_s29 }
 0x8ab   : > { %2768 = vrot.lane.b32.xlu1 %v2686_v61, %s8653_s22 }
 0x8ac   : > { %3076 = vrot.lane.b32.xlu0 %v9461_v51, %s8646_s30 }
 0x8af   : > { %2772 = vrot.lane.b32.xlu1 %v2759_v35, %s8654_s5 }
 0x904   : > { %v3556_v14 = vpop.xlane.xlu1 %3555 }
 0x905   : > { %8027 = vrcp.f32 %v3556_v14 }
 0x90f   : > { %v8028_v40 = vpop.eup %8027 }
 0x910   : > { %v3567_v60 = vmul.f32 %v8028_v40, %v9688_v54 }
 0x91b   : > { %v3559_v15 = vpop.xlane.xlu1 %3558 }
 0x91c   : > { %8029 = vrcp.f32 %v3559_v15 }
 0x91f   : > { %v3562_v16 = vpop.xlane.xlu1 %3561 }
 0x920   : > { %8031 = vrcp.f32 %v3562_v16 }
 0x923   : > { %v3565_v59 = vpop.xlane.xlu0 %3564  ;;  %v3080_v17 = vpop.permute.xlu1 %3079 }
 0x924   : > { %v3098_v18 = vcombine.low %v3074_v13, %v3080_v17  ;;  %v3099_v19 = vcombine.high %v3074_v13, %v3080_v17  ;;  %8033 = vrcp.f32 %v3565_v59  ;;  %v1444_v13 = vld [vmem:[%s9415_s4 + $0x18] sm:$0xff] }
 0x925   : > { %v7846_v14 = vpack.c.bf16 %v1444_v13, %v1443_v12 }
 0x926   : > { %v3106_v5 = vrot.slane %v3098_v18, %v9479_v4  ;;  %v3113_v24 = vrot.slane %v3099_v19, %v9479_v4  ;;  %v8030_v45 = vpop.eup %8029 }
 0x927   : > { %v3077_v20 = vpop.permute.xlu0 %3076  ;;  %v2765_v63 = vpop.permute.xlu1 %2764  ;;  %v3569_v62 = vmul.f32 %v8030_v45, %v9692_v6  ;;  %v4012_v45 = vld [vmem:[%s9344_s2] sm:$0xff] }
 0x928   : > { %v3082_v21 = vcombine.low %v9461_v51, %v3077_v20  ;;  %v3083_v22 = vcombine.high %v9461_v51, %v3077_v20  ;;  %v2775_v6 = vsel %vm2114_vm3, %v9676_v23, %v2765_v63  ;;  %v1441_v23 = vld [vmem:[%s9415_s4] sm:$0xff] }
 0x92a   : > { %v3090_v26 = vrot.slane %v3082_v21, %v9479_v4  ;;  %v3097_v27 = vrot.slane %v3083_v22, %v9479_v4  ;;  %v8032_v49 = vpop.eup %8031 }
 0x92b   : > { %v2769_v46 = vpop.permute.xlu1 %2768  ;;  %v3571_v54 = vmul.f32 %v8032_v49, %v9696_v8  ;;  %v1442_v8 = vld [vmem:[%s9415_s4 + $0x8] sm:$0xff]  ;;  %v4011_v49 = vld [vmem:[%s9336_s8 + $0x18] sm:$0xff]  ;;  %s10281_s4 = scalar_lea.vmem [#allocation13], %s9316_s1 }
 0x92c   : > { %v3114_v61 = vcombine.low %v3090_v26, %v3106_v5  ;;  %v3115_v53 = vcombine.high %v3090_v26, %v3106_v5  ;;  %v3130_v28 = vcombine.low %v3097_v27, %v3113_v24  ;;  %v3131_v29 = vcombine.high %v3097_v27, %v3113_v24 }
 0x92d   : > { %v2777_v7 = vsel %vm2776_vm4, %v2775_v6, %v2769_v46  ;;  %v4013_v46 = vld [vmem:[%s9344_s2 + $0x8] sm:$0xff] }
 0x92e   : > { %v3122_v30 = vrot.slane %v3114_v61, %v9481_v11  ;;  %v3129_v31 = vrot.slane %v3115_v53, %v9481_v11  ;;  %v3138_v51 = vrot.slane %v3130_v28, %v9481_v11  ;;  %v3145_v32 = vrot.slane %v3131_v29, %v9481_v11  ;;  %v8034_v25 = vpop.eup %8033  ;;  %v8079_v28 = vld [vmem:[#allocation28 + $0x8] sm:$0xff] }
 0x92f   : > { %v2773_v2 = vpop.permute.xlu1 %2772  ;;  %v3573_v3 = vmul.f32 %v8034_v25, %v9700_v10  ;;  %v7842_v10 = vpack.c.bf16 %v1442_v8, %v1441_v23  ;;  %v4016_v25 = vld [vmem:[%s9352_s24] sm:$0xff] }
 0x930   : > { %v3150_v33 = vcombine.low %v3122_v30, %v3129_v31  ;;  %v7313_v34 = vcombine.high %v3122_v30, %v3129_v31  ;;  %v3166_v35 = vcombine.low %v3138_v51, %v3145_v32  ;;  %v7314_v36 = vcombine.high %v3138_v51, %v3145_v32  ;;  %v8080_v31 = vld [vmem:[#allocation28] sm:$0xff] }
 0x931   : > { %v2779_v9 = vsel %vm2778_vm5, %v2777_v7, %v2773_v2 }
 0x932   : > { %v3157_v50 = vrot.slane %v3150_v33, %v9479_v4  ;;  %v3165_v37 = vrot.slane %v7313_v34, %v9479_v4  ;;  %v3173_v38 = vrot.slane %v3166_v35, %v9479_v4  ;;  %v3181_v39 = vrot.slane %v7314_v36, %v9479_v4 }
 0x934   : > { %v3182_v41 = vcombine.low %v3157_v50, %v3165_v37  ;;  %v3198_v42 = vcombine.low %v3173_v38, %v3181_v39  ;;  %v3183_v43 = vcombine.high %v3157_v50, %v3165_v37  ;;  %v3199_v44 = vcombine.high %v3173_v38, %v3181_v39 }
 0x936   : > { %v3190_v47 = vrot.slane %v3182_v41, %v9481_v11  ;;  %v3206_v48 = vrot.slane %v3198_v42, %v9481_v11  ;;  %v3197_v52 = vrot.slane %v3183_v43, %v9481_v11  ;;  %v3213_v55 = vrot.slane %v3199_v44, %v9481_v11  ;;  %v4008_v42 = vld [vmem:[%s9336_s8] sm:$0xff]  ;;  %v4009_v43 = vld [vmem:[%s9336_s8 + $0x8] sm:$0xff] }
 0x937   : > { %v7850_v44 = vpack.c.bf16 %v4009_v43, %v4008_v42 }
 0x938   : > { %v3214_v57 = vcombine.low %v3190_v47, %v3206_v48  ;;  %v3215_v58 = vcombine.high %v3190_v47, %v3206_v48  ;;  %v3216_v0 = vcombine.low %v3197_v52, %v3213_v55  ;;  %v3217_v1 = vcombine.high %v3197_v52, %v3213_v55  ;;  %v4010_v48 = vld [vmem:[%s9336_s8 + $0x10] sm:$0xff]  ;;  %s10278_s8 = scalar_lea.vmem [#allocation5], %s9316_s1 }
 0x939   : > { %v7858_v47 = vpack.c.bf16 %v4013_v46, %v4012_v45  ;;  %v7854_v52 = vpack.c.bf16 %v4011_v49, %v4010_v48  ;;  %v4014_v55 = vld [vmem:[%s9344_s2 + $0x10] sm:$0xff] }
 0x93a   : > { %7626 = vmatpush3.msra.mxu0 %v3214_v57  ;;  %7631 = vmatpush3.msra.mxu1 %v3215_v58  ;;  %v4015_v57 = vld [vmem:[%s9344_s2 + $0x18] sm:$0xff]  ;;  %s10279_s2 = scalar_lea.vmem [#allocation7], %s9316_s1 }
 0x93b   : > { %7628 = vmatmul.mubr.msk.f32.vlgmr.msra.gmra.mrb[10].mxu0 %vm2114_vm3, %v3567_v60  ;;  %7633 = vmatmul.mubr.msk.f32.vlgmr.msra.gmra.mrb[20].mxu1 %vm2114_vm3, %v3569_v62  ;;  %v7862_v58 = vpack.c.bf16 %v4015_v57, %v4014_v55  ;;  %v4017_v60 = vld [vmem:[%s9352_s24 + $0x8] sm:$0xff]  ;;  %v7330_v8 = vld [vmem:[%s10279_s2] ss:$0 sm:$0xff] }
 0x93c   : > { %7635 = vmatprep.subr.mxu0 %v8648_v56  ;;  %7640 = vmatprep.subr.mxu1 %v8648_v56  ;;  %v7866_v62 = vpack.c.bf16 %v4017_v60, %v4016_v25 }
 0x93d   : > { %7636 = vmatpush3.msra.mxu0 %v3216_v0  ;;  %7641 = vmatpush3.msra.mxu1 %v3217_v1 }
 0x93e   : > { %7637 = vmatprep.mubr.msk.f32.mxu0 %vm8649_vm2, %v8648_v56  ;;  %7642 = vmatprep.mubr.msk.f32.mxu1 %vm8649_vm2, %v8648_v56 }
 0x93f   : > { %7638 = vmatmul.mubr.msk.f32.vlgmr.msra.gmra.mrb[12].mxu0 %vm2114_vm3, %v3571_v54  ;;  %7643 = vmatmul.mubr.msk.f32.vlgmr.msra.gmra.mrb[22].mxu1 %vm2114_vm3, %v3573_v3 }
 0x940   : > { %7653 = vmatprep.mubr.msk.f32.mxu0 %vm1385_vm1, %v2779_v9  ;;  %7843 = vmatprep.subr.bf16.mxu0 %v7842_v10  ;;  %v7329_v9 = vld [vmem:[%s10278_s8] ss:$0 sm:$0xff] }
 0x941   : > { %7845 = vmatpush3.bf16.msra.mxu0 %v7842_v10  ;;  %7851 = vmatprep.subr.bf16.mxu1 %v7850_v44 }
 0x942   : > { %7847 = vmatprep.subr.bf16.mxu0 %v7846_v14  ;;  %7853 = vmatpush3.bf16.msra.mxu1 %v7850_v44 }
 0x943   : > { %7855 = vmatprep.subr.bf16.mxu1 %v7854_v52 }
 0x945   : > { %7849 = vmatpush3.bf16.msra.mxu0 %v7846_v14 }
 0x946   : > { %7859 = vmatprep.subr.bf16.mxu0 %v7858_v47  ;;  %7857 = vmatpush3.bf16.msra.mxu1 %v7854_v52 }
 0x947   : > { %7867 = vmatprep.subr.bf16.mxu1 %v7866_v62 }
 0xa0e   : > { %v3643_v15 = vpop.f32.mrb[10].mxu0  ;;  %v3716_v16 = vpop.f32.mrb[20].mxu1 }
 0xa0f   : > { %v7629_v59 = vpop.f32.mrb[11].mxu0  ;;  %3867 = vrot.lane.b32.xlu0 %v3716_v16, %s8652_s29  ;;  %v7634_v17 = vpop.f32.mrb[21].mxu1  ;;  %v4019_v16 = vld [vmem:[%s9352_s24 + $0x18] sm:$0xff] }
 0xa12   : > { %v3789_v18 = vpop.f32.mrb[12].mxu0  ;;  %v3862_v19 = vpop.f32.mrb[22].mxu1 }
 0xa13   : > { %v7639_v20 = vpop.f32.mrb[13].mxu0  ;;  %3871 = vrot.lane.b32.xlu0 %v3789_v18, %s8653_s22  ;;  %3875 = vrot.lane.b32.xlu1 %v3862_v19, %s8654_s5  ;;  %v7644_v21 = vpop.f32.mrb[23].mxu1 }
 0xa14   : > { %v7334_v20 = vld [vmem:[%s10281_s4] ss:$0 sm:$0xff] }
 0xa81   : > { %v3868_v22 = vpop.permute.xlu0 %3867 }
 0xa82   : > { %v3878_v5 = vsel %vm2114_vm3, %v3643_v15, %v3868_v22  ;;  %v4018_v15 = vld [vmem:[%s9352_s24 + $0x10] sm:$0xff]  ;;  %s10280_s24 = scalar_lea.vmem [#allocation10], %s9316_s1 }
 0xa83   : > { %v7870_v18 = vpack.c.bf16 %v4019_v16, %v4018_v15  ;;  %v7331_v19 = vld [vmem:[%s10280_s24] ss:$0 sm:$0xff] }
 0xa85   : > { %v3872_v24 = vpop.permute.xlu0 %3871  ;;  %v3876_v26 = vpop.permute.xlu1 %3875 }
 0xa86   : > { %v3879_v27 = vsel %vm2776_vm4, %v3878_v5, %v3872_v24 }
 0xa87   : > { %v3880_v61 = vsel %vm2778_vm5, %v3879_v27, %v3876_v26 }
 0xa88   : > { %7654 = vmatmul.mubr.msk.f32.vlgmr.msra.gmra.mrb[14].mxu0 %vm1385_vm1, %v3880_v61 }
 0xa89   : > { %7861 = vmatpush3.bf16.msra.mxu0 %v7858_v47 }
 0xa8a   : > { %7863 = vmatprep.subr.bf16.mxu0 %v7862_v58 }
 0xa8d   : > { %7865 = vmatpush3.bf16.msra.mxu0 %v7862_v58 }
 0xa8e   : > { %7689 = vmatprep.subr.mxu0 %v8648_v56 }
 0xb5b   : > { %v7655_v53 = vpop.f32.mrb[14].mxu0 }
 0xb5c   : > { %v9759_v29 = vadd.f32 %v8079_v28, %v7655_v53  ;;  %v3953_v30 = vpop.f32.mrb[15].mxu0  ;;  %v9811_v28 = vld [vmem:[%s10282_s9] ss:$0 sm:$0xff] }
 0xb5d   : > { %v9761_v51 = vadd.f32 %v8080_v31, %v3953_v30 }
 0xb5e   : > { %v3969_v32 = vsel %vm1385_vm1, %v9759_v29, 0.0 }
 0xb5f   : > { %3970 = vadd.xlane.f32.xlu1 %v3969_v32  ;;  %v3966_v33 = vsel %vm1385_vm1, %v9761_v51, 0.0 }
 0xb60   : > { %3967 = vadd.xlane.f32.xlu0 %v3966_v33 }
 0xbec   : > { %v3971_v34 = vpop.xlane.xlu1 %3970 }
 0xbed   : > { %v3973_v35 = vmul.f32 0.03125, %v3971_v34  ;;  %v3968_v36 = vpop.xlane.xlu0 %3967 }
 0xbee   : > { %v3972_v63 = vmul.f32 0.03125, %v3968_v36 }
 0xbef   : > { %v3975_v50 = vsub.f32 %v9759_v29, %v3973_v35 }
 0xbf0   : > { %v3974_v37 = vsub.f32 %v9761_v51, %v3972_v63 }
 0xbf1   : > { %v3977_v40 = vmul.f32 %v3975_v50, %v3975_v50 }
 0xbf2   : > { %v3976_v38 = vmul.f32 %v3974_v37, %v3974_v37 }
 0xbf3   : > { %v3981_v41 = vsel %vm1385_vm1, %v3977_v40, 0.0 }
 0xbf4   : > { %v3978_v39 = vsel %vm1385_vm1, %v3976_v38, 0.0 }
 0xbf5   : > { %3979 = vadd.xlane.f32.xlu0 %v3978_v39 }
 0xbf9   : > { %3982 = vadd.xlane.f32.xlu0 %v3981_v41 }
 0xc82   : > { %v3980_v0 = vpop.xlane.xlu0 %3979 }
 0xc83   : > { %v3984_v1 = vmul.f32 0.03125, %v3980_v0 }
 0xc85   : > { %v3986_v2 = vadd.f32 1e-05, %v3984_v1 }
 0xc86   : > { %v3983_v54 = vpop.xlane.xlu0 %3982 }
 0xc87   : > { %8035 = vrsqrt.f32 %v3986_v2  ;;  %v3985_v3 = vmul.f32 0.03125, %v3983_v54 }
 0xc89   : > { %v3987_v6 = vadd.f32 1e-05, %v3985_v3 }
 0xc8b   : > { %8037 = vrsqrt.f32 %v3987_v6 }
 0xc91   : > { %v8036_v7 = vpop.eup %8035 }
 0xc92   : > { %v3990_v23 = vmul.f32 %v8036_v7, %v3974_v37 }
 0xc94   : > { %v3998_v10 = vmul.f32 %v7329_v9, %v3990_v23 }
 0xc95   : > { %v8038_v12 = vpop.eup %8037 }
 0xc96   : > { %v3991_v13 = vmul.f32 %v8038_v12, %v3975_v50  ;;  %v4006_v14 = vadd.f32 %v7330_v8, %v3998_v10 }
 0xc98   : > { %v3999_v59 = vmul.f32 %v7329_v9, %v3991_v13  ;;  %7664 = vmatprep.mubr.msk.f32.mxu1 %vm1385_vm1, %v4006_v14  ;;  %7675 = vmatprep.mubr.msk.f32.mxu0 %vm1385_vm1, %v4006_v14 }
 0xc9a   : > { %v4007_v17 = vadd.f32 %v7330_v8, %v3999_v59 }
 0xc9c   : > { %7665 = vmatmul.mubr.msk.f32.vlgmr.msra.gmra.mrb[24].mxu1 %vm1385_vm1, %v4007_v17  ;;  %7676 = vmatmul.mubr.msk.f32.vlgmr.msra.gmra.mrb[16].mxu0 %vm1385_vm1, %v4007_v17 }
 0xc9d   : > { %7869 = vmatpush3.bf16.msra.mxu1 %v7866_v62  ;;  %7686 = vmatprep.mubr.msk.f32.mxu1 %vm1385_vm1, %v4006_v14 }
 0xc9e   : > { %7871 = vmatprep.subr.bf16.mxu1 %v7870_v18  ;;  %7691 = vmatprep.mubr.msk.f32.mxu0 %vm8649_vm2, %v8648_v56 }
 0xca1   : > { %7873 = vmatpush3.bf16.msra.mxu1 %v7870_v18 }
 0xca2   : > { %7694 = vmatprep.subr.mxu1 %v8648_v56 }
 0xca4   : > { %7687 = vmatmul.mubr.msk.f32.vlgmr.msra.gmra.mrb[26].mxu1 %vm1385_vm1, %v4007_v17 }
 0xca5   : > { %7696 = vmatprep.mubr.msk.f32.mxu1 %vm8649_vm2, %v8648_v56 }
 0xd6f   : > { %v7666_v21 = vpop.f32.mrb[24].mxu1  ;;  %v7677_v22 = vpop.f32.mrb[16].mxu0 }
 0xd70   : > { %v9803_v5 = vadd.f32 %v7666_v21, %v7331_v19  ;;  %v9805_v24 = vadd.f32 %v7677_v22, %v7334_v20  ;;  %v4106_v26 = vpop.f32.mrb[25].mxu1  ;;  %v4187_v27 = vpop.f32.mrb[17].mxu0 }
 0xd71   : > { %v4188_v61 = vadd.f32 %v7334_v20, %v4187_v27  ;;  %v4107_v53 = vadd.f32 %v7331_v19, %v4106_v26 }
 0xd73   : > { %4427 = vrot.lane.b32.xlu1 %v4188_v61, %s8646_s30  ;;  %4424 = vrot.lane.b32.xlu0 %v4188_v61, %s8645_s11 }
 0xd77   : > { %v7688_v30 = vpop.f32.mrb[26].mxu1  ;;  %4430 = vrot.lane.b32.xlu1 %v4188_v61, %s8647_s3  ;;  %4281 = vrot.lane.b32.xlu0 %v4107_v53, %s8646_s30 }
 0xd78   : > { %v9816_v31 = vadd.f32 %v7688_v30, %v9811_v28  ;;  %v9818_v32 = vpop.f32.mrb[27].mxu1 }
 0xd7b   : > { %4278 = vrot.lane.b32.xlu1 %v4107_v53, %s8645_s11 }
 0xd7f   : > { %4284 = vrot.lane.b32.xlu1 %v4107_v53, %s8647_s3 }
 0xde5   : > { %v4428_v33 = vpop.permute.xlu1 %4427  ;;  %v4425_v36 = vpop.permute.xlu0 %4424 }
 0xde6   : > { %v4433_v34 = vcombine.low %v4188_v61, %v4428_v33  ;;  %v4434_v35 = vcombine.high %v4188_v61, %v4428_v33 }
 0xde8   : > { %v4441_v38 = vrot.slane %v4433_v34, %v9479_v4  ;;  %v4448_v39 = vrot.slane %v4434_v35, %v9479_v4 }
 0xde9   : > { %v4431_v63 = vpop.permute.xlu1 %4430  ;;  %v4282_v47 = vpop.permute.xlu0 %4281 }
 0xdea   : > { %v4449_v50 = vcombine.low %v4425_v36, %v4431_v63  ;;  %v4450_v37 = vcombine.high %v4425_v36, %v4431_v63  ;;  %v4287_v57 = vcombine.low %v4107_v53, %v4282_v47  ;;  %v4288_v58 = vcombine.high %v4107_v53, %v4282_v47 }
 0xdec   : > { %v4457_v40 = vrot.slane %v4449_v50, %v9479_v4  ;;  %v4464_v41 = vrot.slane %v4450_v37, %v9479_v4  ;;  %v4295_v23 = vrot.slane %v4287_v57, %v9479_v4  ;;  %v4302_v8 = vrot.slane %v4288_v58, %v9479_v4 }
 0xded   : > { %v4279_v42 = vpop.permute.xlu1 %4278 }
 0xdee   : > { %v4465_v43 = vcombine.low %v4441_v38, %v4457_v40  ;;  %v4466_v44 = vcombine.high %v4441_v38, %v4457_v40  ;;  %v4481_v45 = vcombine.low %v4448_v39, %v4464_v41  ;;  %v4482_v46 = vcombine.high %v4448_v39, %v4464_v41 }
 0xdf0   : > { %v4473_v48 = vrot.slane %v4465_v43, %v9481_v11  ;;  %v4480_v49 = vrot.slane %v4466_v44, %v9481_v11  ;;  %v4489_v52 = vrot.slane %v4481_v45, %v9481_v11  ;;  %v4496_v55 = vrot.slane %v4482_v46, %v9481_v11 }
 0xdf1   : > { %v4285_v25 = vpop.permute.xlu1 %4284 }
 0xdf2   : > { %v4501_v60 = vcombine.low %v4473_v48, %v4480_v49  ;;  %v7342_v62 = vcombine.high %v4473_v48, %v4480_v49  ;;  %v4517_v0 = vcombine.low %v4489_v52, %v4496_v55  ;;  %v7343_v1 = vcombine.high %v4489_v52, %v4496_v55 }
 0xdf3   : > { %v4303_v2 = vcombine.low %v4279_v42, %v4285_v25  ;;  %v4304_v54 = vcombine.high %v4279_v42, %v4285_v25 }
 0xdf4   : > { %v4508_v3 = vrot.slane %v4501_v60, %v9479_v4  ;;  %v4516_v6 = vrot.slane %v7342_v62, %v9479_v4  ;;  %v4524_v7 = vrot.slane %v4517_v0, %v9479_v4  ;;  %v4532_v9 = vrot.slane %v7343_v1, %v9479_v4 }
 0xdf5   : > { %v4311_v10 = vrot.slane %v4303_v2, %v9479_v4  ;;  %v4318_v12 = vrot.slane %v4304_v54, %v9479_v4 }
 0xdf6   : > { %v4533_v13 = vcombine.low %v4508_v3, %v4516_v6  ;;  %v4549_v14 = vcombine.low %v4524_v7, %v4532_v9  ;;  %v4534_v35 = vcombine.high %v4508_v3, %v4516_v6  ;;  %v4550_v36 = vcombine.high %v4524_v7, %v4532_v9 }
 0xdf7   : > { %v4319_v15 = vcombine.low %v4295_v23, %v4311_v10  ;;  %v4320_v16 = vcombine.high %v4295_v23, %v4311_v10  ;;  %v4335_v59 = vcombine.low %v4302_v8, %v4318_v12  ;;  %v4336_v17 = vcombine.high %v4302_v8, %v4318_v12 }
 0xdf8   : > { %v4541_v18 = vrot.slane %v4533_v13, %v9481_v11  ;;  %v4557_v19 = vrot.slane %v4549_v14, %v9481_v11  ;;  %v4548_v43 = vrot.slane %v4534_v35, %v9481_v11  ;;  %v4564_v44 = vrot.slane %v4550_v36, %v9481_v11 }
 0xdf9   : > { %v4327_v20 = vrot.slane %v4319_v15, %v9481_v11  ;;  %v4334_v21 = vrot.slane %v4320_v16, %v9481_v11  ;;  %v4343_v22 = vrot.slane %v4335_v59, %v9481_v11  ;;  %v4350_v26 = vrot.slane %v4336_v17, %v9481_v11 }
 0xdfa   : > { %v4565_v27 = vcombine.low %v4541_v18, %v4557_v19  ;;  %v4566_v61 = vcombine.high %v4541_v18, %v4557_v19  ;;  %v4567_v55 = vcombine.low %v4548_v43, %v4564_v44  ;;  %v4568_v57 = vcombine.high %v4548_v43, %v4564_v44 }
 0xdfb   : > { %v4355_v53 = vcombine.low %v4327_v20, %v4334_v21  ;;  %v7340_v30 = vcombine.high %v4327_v20, %v4334_v21  ;;  %v4371_v33 = vcombine.low %v4343_v22, %v4350_v26  ;;  %v7341_v34 = vcombine.high %v4343_v22, %v4350_v26 }
 0xdfc   : > { %7690 = vmatpush3.xpose.msk.msra.mxu0 %vm2114_vm3, %v4565_v27  ;;  %7695 = vmatpush3.xpose.msk.msra.mxu1 %vm2114_vm3, %v4566_v61  ;;  %v4269_v15 = vadd.f32 %v9811_v28, %v9818_v32 }
 0xdfd   : > { %v4362_v63 = vrot.slane %v4355_v53, %v9479_v4  ;;  %v4370_v50 = vrot.slane %v7340_v30, %v9479_v4  ;;  %v4378_v37 = vrot.slane %v4371_v33, %v9479_v4  ;;  %v4386_v38 = vrot.slane %v7341_v34, %v9479_v4  ;;  %7699 = vmatprep.subr.mxu0 %v8648_v56 }
 0xdfe   : > { %7704 = vmatprep.subr.mxu1 %v8648_v56 }
 0xdff   : > { %v4387_v39 = vcombine.low %v4362_v63, %v4370_v50  ;;  %v4388_v40 = vcombine.high %v4362_v63, %v4370_v50  ;;  %v4403_v41 = vcombine.low %v4378_v37, %v4386_v38  ;;  %v4404_v42 = vcombine.high %v4378_v37, %v4386_v38 }
 0xe01   : > { %v4395_v45 = vrot.slane %v4387_v39, %v9481_v11  ;;  %v4411_v46 = vrot.slane %v4403_v41, %v9481_v11  ;;  %v4402_v49 = vrot.slane %v4388_v40, %v9481_v11  ;;  %v4418_v52 = vrot.slane %v4404_v42, %v9481_v11 }
 0xe03   : > { %v4419_v47 = vcombine.low %v4395_v45, %v4411_v46  ;;  %v4420_v48 = vcombine.high %v4395_v45, %v4411_v46  ;;  %v4421_v58 = vcombine.low %v4402_v49, %v4418_v52  ;;  %v4422_v25 = vcombine.high %v4402_v49, %v4418_v52 }
 0xe05   : > { %7692 = vmatmul.mubr.msk.f32.vlgmr.msra.gmra.mrb[18].mxu0 %vm2114_vm3, %v4419_v47  ;;  %7697 = vmatmul.mubr.msk.f32.vlgmr.msra.gmra.mrb[28].mxu1 %vm2114_vm3, %v4420_v48 }
 0xe06   : > { %7700 = vmatpush3.xpose.msk.msra.mxu0 %vm2114_vm3, %v4567_v55  ;;  %7705 = vmatpush3.xpose.msk.msra.mxu1 %vm2114_vm3, %v4568_v57 }
 0xe07   : > { %7701 = vmatprep.mubr.msk.f32.mxu0 %vm8649_vm2, %v8648_v56  ;;  %7706 = vmatprep.mubr.msk.f32.mxu1 %vm8649_vm2, %v8648_v56 }
 0xe08   : > { %7709 = vmatprep.subr.mxu0 %v8648_v56  ;;  %7714 = vmatprep.subr.mxu1 %v8648_v56 }
 0xe09   : > { %7702 = vmatmul.mubr.msk.f32.vlgmr.msra.gmra.mrb[20].mxu0 %vm2114_vm3, %v4421_v58  ;;  %7707 = vmatmul.mubr.msk.f32.vlgmr.msra.gmra.mrb[30].mxu1 %vm2114_vm3, %v4422_v25 }
 0xe0a   : > { %7711 = vmatprep.mubr.msk.f32.mxu0 %vm8649_vm2, %v8648_v56  ;;  %7716 = vmatprep.mubr.msk.f32.mxu1 %vm8649_vm2, %v8648_v56 }
 0xed8   : > { %v4787_v60 = vpop.f32.mrb[18].mxu0  ;;  %v4863_v62 = vpop.f32.mrb[28].mxu1 }
 0xed9   : > { %v5019_v0 = vmul.f32 0.35355338, %v4787_v60  ;;  %v5020_v1 = vmul.f32 0.35355338, %v4863_v62  ;;  %v7693_v2 = vpop.f32.mrb[19].mxu0  ;;  %v7698_v54 = vpop.f32.mrb[29].mxu1 }
 0xedb   : > { %v5026_v3 = vsel %vm2114_vm3, %v5020_v1, -inf  ;;  %v5023_v6 = vsel %vm2114_vm3, %v5019_v0, -inf }
 0xedc   : > { %5027 = vmax.xlane.f32.xlu1 %v5026_v3  ;;  %v5015_v7 = vpop.f32.mrb[30].mxu1  ;;  %5024 = vmax.xlane.f32.xlu0 %v5023_v6  ;;  %v4939_v9 = vpop.f32.mrb[20].mxu0 }
 0xedd   : > { %v5021_v23 = vmul.f32 0.35355338, %v4939_v9  ;;  %v7703_v8 = vpop.f32.mrb[21].mxu0  ;;  %v7708_v10 = vpop.f32.mrb[31].mxu1  ;;  %v5022_v12 = vmul.f32 0.35355338, %v5015_v7 }
 0xedf   : > { %v5029_v13 = vsel %vm2114_vm3, %v5021_v23, -inf  ;;  %v5032_v14 = vsel %vm2114_vm3, %v5022_v12, -inf }
 0xee0   : > { %5030 = vmax.xlane.f32.xlu0 %v5029_v13 }
 0xee4   : > { %5033 = vmax.xlane.f32.xlu0 %v5032_v14 }
 0xeed   : > { %4570 = vrot.lane.b32.xlu1 %v4269_v15, %s8645_s11 }
 0xefa   : > { %4573 = vrot.lane.b32.xlu0 %v4269_v15, %s8646_s30 }
 0xf69   : > { %v5028_v16 = vpop.xlane.xlu1 %5027  ;;  %v5025_v59 = vpop.xlane.xlu0 %5024 }
 0xf6a   : > { %v5036_v17 = vsub.f32 %v5020_v1, %v5028_v16  ;;  %v5035_v18 = vsub.f32 %v5019_v0, %v5025_v59 }
 0xf6c   : > { %v5041_v19 = vmul.f32 1.442695, %v5036_v17  ;;  %v5039_v20 = vmul.f32 1.442695, %v5035_v18 }
 0xf6d   : > { %v5031_v21 = vpop.xlane.xlu0 %5030  ;;  %v4571_v50 = vpop.permute.xlu1 %4570 }
 0xf6e   : > { %8039 = vpow2.f32 %v5041_v19  ;;  %v5037_v22 = vsub.f32 %v5021_v23, %v5031_v21 }
 0xf6f   : > { %8041 = vpow2.f32 %v5039_v20 }
 0xf70   : > { %v5043_v26 = vmul.f32 1.442695, %v5037_v22 }
 0xf71   : > { %v5034_v33 = vpop.xlane.xlu0 %5033 }
 0xf72   : > { %8043 = vpow2.f32 %v5043_v26  ;;  %v5038_v34 = vsub.f32 %v5022_v12, %v5034_v33 }
 0xf74   : > { %v5045_v35 = vmul.f32 1.442695, %v5038_v34 }
 0xf75   : > { %v4574_v37 = vpop.permute.xlu0 %4573 }
 0xf76   : > { %8045 = vpow2.f32 %v5045_v35  ;;  %v4579_v40 = vcombine.low %v4269_v15, %v4574_v37  ;;  %v4580_v41 = vcombine.high %v4269_v15, %v4574_v37 }
 0xf78   : > { %v9882_v27 = vpop.eup %8039  ;;  %v4587_v46 = vrot.slane %v4579_v40, %v9479_v4  ;;  %v4594_v47 = vrot.slane %v4580_v41, %v9479_v4 }
 0xf79   : > { %v9884_v61 = vpop.eup %8041  ;;  %v5050_v28 = vsel %vm2114_vm3, %v9882_v27, 0.0 }
 0xf7a   : > { %5051 = vadd.xlane.f32.xlu1 %v5050_v28  ;;  %v5047_v32 = vsel %vm2114_vm3, %v9884_v61, 0.0 }
 0xf7b   : > { %5048 = vadd.xlane.f32.xlu0 %v5047_v32 }
 0xf7c   : > { %v9890_v53 = vpop.eup %8043 }
 0xf7d   : > { %v5053_v30 = vsel %vm2114_vm3, %v9890_v53, 0.0 }
 0xf7f   : > { %5054 = vadd.xlane.f32.xlu0 %v5053_v30 }
 0xf80   : > { %v9907_v36 = vpop.eup %8045 }
 0xf81   : > { %v5056_v63 = vsel %vm2114_vm3, %v9907_v36, 0.0 }
 0xf8b   : > { %4576 = vrot.lane.b32.xlu1 %v4269_v15, %s8647_s3 }
 0xf95   : > { %5521 = vrot.lane.b32.xlu0 %v9805_v24, %s8645_s11 }
 0xf99   : > { %5524 = vrot.lane.b32.xlu0 %v9805_v24, %s8646_s30 }
 0xf9d   : > { %5527 = vrot.lane.b32.xlu0 %v9805_v24, %s8647_s3 }
 0xfa1   : > { %5375 = vrot.lane.b32.xlu0 %v9803_v5, %s8645_s11 }
 0xfa5   : > { %5378 = vrot.lane.b32.xlu0 %v9803_v5, %s8646_s30 }
 0xfa9   : > { %5381 = vrot.lane.b32.xlu0 %v9803_v5, %s8647_s3 }
 0xfaf   : > { %5057 = vadd.xlane.f32.xlu1 %v5056_v63 }
0x1007   : > { %v5052_v38 = vpop.xlane.xlu1 %5051 }
0x1008   : > { %v5049_v39 = vpop.xlane.xlu0 %5048 }
0x1009   : > { %8047 = vrcp.f32 %v5049_v39 }
0x100a   : > { %8049 = vrcp.f32 %v5052_v38 }
0x100b   : > { %v4577_v42 = vpop.permute.xlu1 %4576 }
0x100c   : > { %v4595_v43 = vcombine.low %v4571_v50, %v4577_v42  ;;  %v4596_v44 = vcombine.high %v4571_v50, %v4577_v42  ;;  %v5055_v45 = vpop.xlane.xlu0 %5054 }
0x100d   : > { %8051 = vrcp.f32 %v5055_v45 }
0x100e   : > { %v4603_v48 = vrot.slane %v4595_v43, %v9479_v4  ;;  %v4610_v49 = vrot.slane %v4596_v44, %v9479_v4 }
0x1010   : > { %v4611_v52 = vcombine.low %v4587_v46, %v4603_v48  ;;  %v4612_v55 = vcombine.high %v4587_v46, %v4603_v48  ;;  %v4627_v57 = vcombine.low %v4594_v47, %v4610_v49  ;;  %v4628_v58 = vcombine.high %v4594_v47, %v4610_v49  ;;  %v5522_v25 = vpop.permute.xlu0 %5521 }
0x1012   : > { %v4619_v60 = vrot.slane %v4611_v52, %v9481_v11  ;;  %v4626_v62 = vrot.slane %v4612_v55, %v9481_v11  ;;  %v4635_v0 = vrot.slane %v4627_v57, %v9481_v11  ;;  %v4642_v1 = vrot.slane %v4628_v58, %v9481_v11 }
0x1013   : > { %v8048_v16 = vpop.eup %8047 }
0x1014   : > { %v4647_v2 = vcombine.low %v4619_v60, %v4626_v62  ;;  %v7344_v54 = vcombine.high %v4619_v60, %v4626_v62  ;;  %v4663_v3 = vcombine.low %v4635_v0, %v4642_v1  ;;  %v5525_v6 = vpop.permute.xlu0 %5524  ;;  %v7345_v7 = vcombine.high %v4635_v0, %v4642_v1  ;;  %v8050_v34 = vpop.eup %8049 }
0x1015   : > { %v5530_v10 = vcombine.low %v9805_v24, %v5525_v6  ;;  %v5531_v13 = vcombine.high %v9805_v24, %v5525_v6  ;;  %v5060_v30 = vmul.f32 %v8048_v16, %v9884_v61  ;;  %v5062_v45 = vmul.f32 %v8050_v34, %v9882_v27 }
0x1016   : > { %v4654_v9 = vrot.slane %v4647_v2, %v9479_v4  ;;  %v4662_v23 = vrot.slane %v7344_v54, %v9479_v4  ;;  %v4670_v8 = vrot.slane %v4663_v3, %v9479_v4  ;;  %v4678_v12 = vrot.slane %v7345_v7, %v9479_v4 }
0x1017   : > { %v5538_v19 = vrot.slane %v5530_v10, %v9479_v4  ;;  %v5545_v26 = vrot.slane %v5531_v13, %v9479_v4  ;;  %v8052_v47 = vpop.eup %8051 }
0x1018   : > { %v5528_v14 = vpop.permute.xlu0 %5527  ;;  %v4679_v15 = vcombine.low %v4654_v9, %v4662_v23  ;;  %v4695_v18 = vcombine.low %v4670_v8, %v4678_v12  ;;  %v4680_v21 = vcombine.high %v4654_v9, %v4662_v23  ;;  %v4696_v22 = vcombine.high %v4670_v8, %v4678_v12 }
0x1019   : > { %v5546_v59 = vcombine.low %v5522_v25, %v5528_v14  ;;  %v5547_v17 = vcombine.high %v5522_v25, %v5528_v14  ;;  %v5064_v1 = vmul.f32 %v8052_v47, %v9890_v53 }
0x101a   : > { %v4687_v20 = vrot.slane %v4679_v15, %v9481_v11  ;;  %v4703_v24 = vrot.slane %v4695_v18, %v9481_v11  ;;  %v4694_v40 = vrot.slane %v4680_v21, %v9481_v11  ;;  %v4710_v41 = vrot.slane %v4696_v22, %v9481_v11 }
0x101b   : > { %v5554_v28 = vrot.slane %v5546_v59, %v9479_v4  ;;  %v5561_v32 = vrot.slane %v5547_v17, %v9479_v4 }
0x101c   : > { %v5376_v33 = vpop.permute.xlu0 %5375  ;;  %v4711_v38 = vcombine.low %v4687_v20, %v4703_v24  ;;  %v4712_v39 = vcombine.high %v4687_v20, %v4703_v24  ;;  %v4713_v58 = vcombine.low %v4694_v40, %v4710_v41  ;;  %v4714_v25 = vcombine.high %v4694_v40, %v4710_v41 }
0x101d   : > { %v5562_v35 = vcombine.low %v5538_v19, %v5554_v28  ;;  %v5563_v63 = vcombine.high %v5538_v19, %v5554_v28  ;;  %v5578_v50 = vcombine.low %v5545_v26, %v5561_v32  ;;  %v5579_v37 = vcombine.high %v5545_v26, %v5561_v32 }
0x101e   : > { %7710 = vmatpush3.msra.mxu0 %v4711_v38  ;;  %7715 = vmatpush3.msra.mxu1 %v4712_v39 }
0x101f   : > { %v5570_v42 = vrot.slane %v5562_v35, %v9481_v11  ;;  %v5577_v43 = vrot.slane %v5563_v63, %v9481_v11  ;;  %v5586_v44 = vrot.slane %v5578_v50, %v9481_v11  ;;  %v5593_v61 = vrot.slane %v5579_v37, %v9481_v11  ;;  %7712 = vmatmul.mubr.msk.f32.vlgmr.msra.gmra.mrb[22].mxu0 %vm2114_vm3, %v5060_v30 }
0x1020   : > { %v5379_v46 = vpop.permute.xlu0 %5378  ;;  %7717 = vmatmul.mubr.msk.f32.vlgmr.msra.gmra.mrb[32].mxu1 %vm2114_vm3, %v5062_v45  ;;  %7719 = vmatprep.subr.mxu0 %v8648_v56 }
0x1021   : > { %v5598_v48 = vcombine.low %v5570_v42, %v5577_v43  ;;  %v7360_v49 = vcombine.high %v5570_v42, %v5577_v43  ;;  %v5614_v52 = vcombine.low %v5586_v44, %v5593_v61  ;;  %v7361_v55 = vcombine.high %v5586_v44, %v5593_v61  ;;  %7724 = vmatprep.subr.mxu1 %v8648_v56 }
0x1022   : > { %v5384_v57 = vcombine.low %v9803_v5, %v5379_v46  ;;  %v5385_v2 = vcombine.high %v9803_v5, %v5379_v46  ;;  %7720 = vmatpush3.msra.mxu0 %v4713_v58  ;;  %7725 = vmatpush3.msra.mxu1 %v4714_v25 }
0x1023   : > { %v5605_v27 = vrot.slane %v5598_v48, %v9479_v4  ;;  %v5613_v60 = vrot.slane %v7360_v49, %v9479_v4  ;;  %v5621_v62 = vrot.slane %v5614_v52, %v9479_v4  ;;  %v5629_v0 = vrot.slane %v7361_v55, %v9479_v4  ;;  %7721 = vmatprep.mubr.msk.f32.mxu0 %vm8649_vm2, %v8648_v56 }
0x1024   : > { %v5382_v54 = vpop.permute.xlu0 %5381  ;;  %7722 = vmatmul.mubr.msk.f32.vlgmr.msra.gmra.mrb[24].mxu0 %vm2114_vm3, %v5064_v1  ;;  %7729 = vmatprep.subr.mxu0 %v8648_v56  ;;  %v5392_v23 = vrot.slane %v5384_v57, %v9479_v4  ;;  %v5399_v8 = vrot.slane %v5385_v2, %v9479_v4 }
0x1025   : > { %v5630_v3 = vcombine.low %v5605_v27, %v5613_v60  ;;  %v5646_v6 = vcombine.low %v5621_v62, %v5629_v0  ;;  %v5400_v7 = vcombine.low %v5376_v33, %v5382_v54  ;;  %v5401_v9 = vcombine.high %v5376_v33, %v5382_v54  ;;  %7731 = vmatprep.mubr.msk.f32.mxu0 %vm8649_vm2, %v8648_v56 }
0x1026   : > { %7726 = vmatprep.mubr.msk.f32.mxu1 %vm8649_vm2, %v8648_v56  ;;  %7734 = vmatprep.subr.mxu1 %v8648_v56  ;;  %v5631_v32 = vcombine.high %v5605_v27, %v5613_v60  ;;  %v5647_v24 = vcombine.high %v5621_v62, %v5629_v0 }
0x1027   : > { %v5638_v53 = vrot.slane %v5630_v3, %v9481_v11  ;;  %v5654_v5 = vrot.slane %v5646_v6, %v9481_v11  ;;  %v5408_v10 = vrot.slane %v5400_v7, %v9479_v4  ;;  %v5415_v12 = vrot.slane %v5401_v9, %v9479_v4 }
0x1028   : > { %v5645_v39 = vrot.slane %v5631_v32, %v9481_v11  ;;  %v5661_v40 = vrot.slane %v5647_v24, %v9481_v11 }
0x1029   : > { %v5662_v13 = vcombine.low %v5638_v53, %v5654_v5  ;;  %v5416_v14 = vcombine.low %v5392_v23, %v5408_v10  ;;  %v5417_v15 = vcombine.high %v5392_v23, %v5408_v10  ;;  %v5432_v16 = vcombine.low %v5399_v8, %v5415_v12 }
0x102a   : > { %v5433_v59 = vcombine.high %v5399_v8, %v5415_v12  ;;  %v5664_v45 = vcombine.low %v5645_v39, %v5661_v40  ;;  %v5663_v52 = vcombine.high %v5638_v53, %v5654_v5  ;;  %v5665_v57 = vcombine.high %v5645_v39, %v5661_v40 }
0x102b   : > { %7730 = vmatpush3.xpose.msk.msra.mxu0 %vm2114_vm3, %v5662_v13  ;;  %v5424_v17 = vrot.slane %v5416_v14, %v9481_v11  ;;  %v5431_v18 = vrot.slane %v5417_v15, %v9481_v11  ;;  %v5440_v19 = vrot.slane %v5432_v16, %v9481_v11 }
0x102c   : > { %v5447_v20 = vrot.slane %v5433_v59, %v9481_v11  ;;  %7739 = vmatprep.subr.mxu0 %v8648_v56 }
0x102d   : > { %v5452_v21 = vcombine.low %v5424_v17, %v5431_v18  ;;  %v7358_v22 = vcombine.high %v5424_v17, %v5431_v18 }
0x102e   : > { %v5468_v26 = vcombine.low %v5440_v19, %v5447_v20  ;;  %v7359_v28 = vcombine.high %v5440_v19, %v5447_v20 }
0x102f   : > { %v5459_v30 = vrot.slane %v5452_v21, %v9479_v4  ;;  %v5467_v33 = vrot.slane %v7358_v22, %v9479_v4 }
0x1030   : > { %v5475_v34 = vrot.slane %v5468_v26, %v9479_v4  ;;  %v5483_v35 = vrot.slane %v7359_v28, %v9479_v4 }
0x1031   : > { %v5484_v63 = vcombine.low %v5459_v30, %v5467_v33  ;;  %v5485_v50 = vcombine.high %v5459_v30, %v5467_v33 }
0x1032   : > { %v5500_v37 = vcombine.low %v5475_v34, %v5483_v35  ;;  %v5501_v38 = vcombine.high %v5475_v34, %v5483_v35 }
0x1033   : > { %v5492_v41 = vrot.slane %v5484_v63, %v9481_v11  ;;  %v5499_v44 = vrot.slane %v5485_v50, %v9481_v11 }
0x1034   : > { %v5508_v42 = vrot.slane %v5500_v37, %v9481_v11  ;;  %v5515_v61 = vrot.slane %v5501_v38, %v9481_v11 }
0x1036   : > { %v5516_v43 = vcombine.low %v5492_v41, %v5508_v42  ;;  %v5518_v46 = vcombine.low %v5499_v44, %v5515_v61  ;;  %v5517_v55 = vcombine.high %v5492_v41, %v5508_v42 }
0x1038   : > { %7732 = vmatmul.mubr.msk.f32.vlgmr.msra.gmra.mrb[26].mxu0 %vm2114_vm3, %v5516_v43 }
0x1039   : > { %7740 = vmatpush3.xpose.msk.msra.mxu0 %vm2114_vm3, %v5664_v45  ;;  %7741 = vmatprep.mubr.msk.f32.mxu0 %vm8649_vm2, %v8648_v56 }
0x103a   : > { %7749 = vmatprep.subr.mxu0 %v8648_v56 }
0x103c   : > { %7742 = vmatmul.mubr.msk.f32.vlgmr.msra.gmra.mrb[28].mxu0 %vm2114_vm3, %v5518_v46  ;;  %v5058_v47 = vpop.xlane.xlu1 %5057 }
0x103d   : > { %8053 = vrcp.f32 %v5058_v47  ;;  %7751 = vmatprep.mubr.msk.f32.mxu0 %vm8649_vm2, %v8648_v56 }
0x1047   : > { %v8054_v48 = vpop.eup %8053 }
0x1048   : > { %v5066_v49 = vmul.f32 %v8054_v48, %v9907_v36  ;;  %v5519_v36 = vcombine.high %v5499_v44, %v5515_v61 }
0x104a   : > { %7727 = vmatmul.mubr.msk.f32.vlgmr.msra.gmra.mrb[34].mxu1 %vm2114_vm3, %v5066_v49 }
0x104b   : > { %7735 = vmatpush3.xpose.msk.msra.mxu1 %vm2114_vm3, %v5663_v52  ;;  %7736 = vmatprep.mubr.msk.f32.mxu1 %vm8649_vm2, %v8648_v56 }
0x104c   : > { %7744 = vmatprep.subr.mxu1 %v8648_v56 }
0x104e   : > { %7737 = vmatmul.mubr.msk.f32.vlgmr.msra.gmra.mrb[36].mxu1 %vm2114_vm3, %v5517_v55 }
0x104f   : > { %7745 = vmatpush3.xpose.msk.msra.mxu1 %vm2114_vm3, %v5665_v57  ;;  %7746 = vmatprep.mubr.msk.f32.mxu1 %vm8649_vm2, %v8648_v56 }
0x1050   : > { %7754 = vmatprep.subr.mxu1 %v8648_v56 }
0x1052   : > { %7747 = vmatmul.mubr.msk.f32.vlgmr.msra.gmra.mrb[38].mxu1 %vm2114_vm3, %v5519_v36 }
0x1053   : > { %7756 = vmatprep.mubr.msk.f32.mxu1 %vm8649_vm2, %v8648_v56 }
0x10f2   : > { %v10003_v58 = vpop.f32.mrb[22].mxu0 }
0x10f3   : > { %v5209_v25 = vpop.f32.mrb[32].mxu1  ;;  %v7713_v27 = vpop.f32.mrb[23].mxu0 }
0x10f4   : > { %v7718_v60 = vpop.f32.mrb[33].mxu1 }
0x10f7   : > { %v5282_v62 = vpop.f32.mrb[24].mxu0 }
0x10f8   : > { %v7723_v0 = vpop.f32.mrb[25].mxu0 }
0x110b   : > { %v5884_v1 = vpop.f32.mrb[26].mxu0 }
0x110c   : > { %v6116_v2 = vmul.f32 0.35355338, %v5884_v1  ;;  %v7733_v54 = vpop.f32.mrb[27].mxu0 }
0x110e   : > { %v6120_v3 = vsel %vm2114_vm3, %v6116_v2, -inf }
0x110f   : > { %6121 = vmax.xlane.f32.xlu0 %v6120_v3  ;;  %v6036_v6 = vpop.f32.mrb[28].mxu0 }
0x1110   : > { %v7743_v7 = vpop.f32.mrb[29].mxu0  ;;  %v6118_v10 = vmul.f32 0.35355338, %v6036_v6 }
0x1112   : > { %v6126_v16 = vsel %vm2114_vm3, %v6118_v10, -inf }
0x111d   : > { %v5355_v9 = vpop.f32.mrb[34].mxu1 }
0x111e   : > { %v7728_v23 = vpop.f32.mrb[35].mxu1 }
0x1121   : > { %v5960_v53 = vpop.f32.mrb[36].mxu1 }
0x1122   : > { %v6117_v5 = vmul.f32 0.35355338, %v5960_v53  ;;  %v7738_v8 = vpop.f32.mrb[37].mxu1 }
0x1124   : > { %v6123_v12 = vsel %vm2114_vm3, %v6117_v5, -inf }
0x1125   : > { %6124 = vmax.xlane.f32.xlu1 %v6123_v12  ;;  %v6112_v13 = vpop.f32.mrb[38].mxu1 }
0x1126   : > { %v7748_v14 = vpop.f32.mrb[39].mxu1  ;;  %v6119_v15 = vmul.f32 0.35355338, %v6112_v13 }
0x1128   : > { %v6129_v59 = vsel %vm2114_vm3, %v6119_v15, -inf }
0x1129   : > { %6127 = vmax.xlane.f32.xlu1 %v6126_v16 }
0x112d   : > { %6130 = vmax.xlane.f32.xlu1 %v6129_v59 }
0x113e   : > { %5667 = vrot.lane.b32.xlu1 %v9816_v31, %s8645_s11 }
0x119c   : > { %v6122_v17 = vpop.xlane.xlu0 %6121 }
0x119d   : > { %v6132_v18 = vsub.f32 %v6116_v2, %v6122_v17 }
0x119f   : > { %v6136_v19 = vmul.f32 1.442695, %v6132_v18 }
0x11a1   : > { %8055 = vpow2.f32 %v6136_v19 }
0x11ab   : > { %v10011_v20 = vpop.eup %8055 }
0x11ac   : > { %v6144_v21 = vsel %vm2114_vm3, %v10011_v20, 0.0 }
0x11ad   : > { %6145 = vadd.xlane.f32.xlu1 %v6144_v21 }
0x11b2   : > { %v6125_v22 = vpop.xlane.xlu1 %6124 }
0x11b3   : > { %v6133_v26 = vsub.f32 %v6117_v5, %v6125_v22 }
0x11b5   : > { %v6138_v28 = vmul.f32 1.442695, %v6133_v26 }
0x11b6   : > { %v6128_v32 = vpop.xlane.xlu1 %6127 }
0x11b7   : > { %8057 = vpow2.f32 %v6138_v28  ;;  %v6134_v24 = vsub.f32 %v6118_v10, %v6128_v32 }
0x11b9   : > { %v6140_v30 = vmul.f32 1.442695, %v6134_v24 }
0x11ba   : > { %v6131_v33 = vpop.xlane.xlu1 %6130 }
0x11bb   : > { %8059 = vpow2.f32 %v6140_v30  ;;  %v6135_v34 = vsub.f32 %v6119_v15, %v6131_v33 }
0x11bd   : > { %v6142_v35 = vmul.f32 1.442695, %v6135_v34 }
0x11be   : > { %v5668_v41 = vpop.permute.xlu1 %5667 }
0x11bf   : > { %8061 = vpow2.f32 %v6142_v35 }
0x11c1   : > { %v10015_v63 = vpop.eup %8057 }
0x11c2   : > { %v6147_v50 = vsel %vm2114_vm3, %v10015_v63, 0.0 }
0x11c3   : > { %6148 = vadd.xlane.f32.xlu1 %v6147_v50 }
0x11c5   : > { %v10019_v37 = vpop.eup %8059 }
0x11c6   : > { %v6150_v38 = vsel %vm2114_vm3, %v10019_v37, 0.0 }
0x11c7   : > { %6151 = vadd.xlane.f32.xlu1 %v6150_v38 }
0x11c9   : > { %v10023_v39 = vpop.eup %8061 }
0x11ca   : > { %v6153_v40 = vsel %vm2114_vm3, %v10023_v39, 0.0 }
0x11cb   : > { %6154 = vadd.xlane.f32.xlu0 %v6153_v40  ;;  %v4022_v40 = vld [vmem:[%s9360_s26 + $0x10] sm:$0xff] }
0x11d8   : > { %5673 = vrot.lane.b32.xlu1 %v9816_v31, %s8647_s3 }
0x11dc   : > { %5360 = vrot.lane.b32.xlu1 %v5209_v25, %s8652_s29 }
0x11e0   : > { %5364 = vrot.lane.b32.xlu1 %v5282_v62, %s8653_s22 }
0x11e1   : > { %5670 = vrot.lane.b32.xlu0 %v9816_v31, %s8646_s30 }
0x11e4   : > { %5368 = vrot.lane.b32.xlu1 %v5355_v9, %s8654_s5 }
0x123a   : > { %v6146_v42 = vpop.xlane.xlu1 %6145 }
0x123b   : > { %8063 = vrcp.f32 %v6146_v42 }
0x1245   : > { %v8064_v12 = vpop.eup %8063 }
0x1250   : > { %v6149_v43 = vpop.xlane.xlu1 %6148 }
0x1251   : > { %8065 = vrcp.f32 %v6149_v43 }
0x1254   : > { %v6152_v44 = vpop.xlane.xlu1 %6151 }
0x1255   : > { %8067 = vrcp.f32 %v6152_v44 }
0x1258   : > { %v6155_v61 = vpop.xlane.xlu0 %6154  ;;  %v5674_v45 = vpop.permute.xlu1 %5673 }
0x1259   : > { %v5692_v46 = vcombine.low %v5668_v41, %v5674_v45  ;;  %v5693_v47 = vcombine.high %v5668_v41, %v5674_v45  ;;  %8069 = vrcp.f32 %v6155_v61  ;;  %v4023_v41 = vld [vmem:[%s9360_s26 + $0x18] sm:$0xff] }
0x125a   : > { %v7878_v42 = vpack.c.bf16 %v4023_v41, %v4022_v40  ;;  %v6613_v40 = vld [vmem:[%s9421_s12 + $0x20] sm:$0xff]  ;;  %v6614_v41 = vld [vmem:[%s9421_s12 + $0x28] sm:$0xff] }
0x125b   : > { %v5700_v55 = vrot.slane %v5692_v46, %v9479_v4  ;;  %v5707_v57 = vrot.slane %v5693_v47, %v9479_v4  ;;  %v8066_v59 = vpop.eup %8065 }
0x125c   : > { %v5671_v48 = vpop.permute.xlu0 %5670  ;;  %v5361_v23 = vpop.permute.xlu1 %5360  ;;  %v6159_v30 = vmul.f32 %v8066_v59, %v10015_v63 }
0x125d   : > { %v5676_v49 = vcombine.low %v9816_v31, %v5671_v48  ;;  %v5677_v52 = vcombine.high %v9816_v31, %v5671_v48  ;;  %v5371_v63 = vsel %vm2114_vm3, %v10003_v58, %v5361_v23  ;;  %v4020_v58 = vld [vmem:[%s9360_s26] sm:$0xff] }
0x125f   : > { %v5684_v36 = vrot.slane %v5676_v49, %v9479_v4  ;;  %v5691_v25 = vrot.slane %v5677_v52, %v9479_v4  ;;  %v8068_v21 = vpop.eup %8067 }
0x1260   : > { %v5365_v17 = vpop.permute.xlu1 %5364 }
0x1261   : > { %v5708_v27 = vcombine.low %v5684_v36, %v5700_v55  ;;  %v5709_v60 = vcombine.high %v5684_v36, %v5700_v55  ;;  %v5724_v62 = vcombine.low %v5691_v25, %v5707_v57  ;;  %v5725_v0 = vcombine.high %v5691_v25, %v5707_v57 }
0x1262   : > { %v5372_v50 = vsel %vm2776_vm4, %v5371_v63, %v5365_v17  ;;  %v6609_v63 = vld [vmem:[%s9421_s12] sm:$0xff] }
0x1263   : > { %v5716_v1 = vrot.slane %v5708_v27, %v9481_v11  ;;  %v5723_v2 = vrot.slane %v5709_v60, %v9481_v11  ;;  %v5732_v31 = vrot.slane %v5724_v62, %v9481_v11  ;;  %v5739_v54 = vrot.slane %v5725_v0, %v9481_v11  ;;  %v8070_v24 = vpop.eup %8069 }
0x1264   : > { %v5369_v35 = vpop.permute.xlu1 %5368 }
0x1265   : > { %v5744_v3 = vcombine.low %v5716_v1, %v5723_v2  ;;  %v7362_v6 = vcombine.high %v5716_v1, %v5723_v2  ;;  %v5760_v7 = vcombine.low %v5732_v31, %v5739_v54  ;;  %v7363_v9 = vcombine.high %v5732_v31, %v5739_v54 }
0x1266   : > { %v5373_v38 = vsel %vm2778_vm5, %v5372_v50, %v5369_v35  ;;  %v6610_v50 = vld [vmem:[%s9421_s12 + $0x8] sm:$0xff] }
0x1267   : > { %v5751_v53 = vrot.slane %v5744_v3, %v9479_v4  ;;  %v5759_v5 = vrot.slane %v7362_v6, %v9479_v4  ;;  %v5767_v8 = vrot.slane %v5760_v7, %v9479_v4  ;;  %v5775_v10 = vrot.slane %v7363_v9, %v9479_v4 }
0x1268   : > { %v6157_v4 = vmul.f32 %v8064_v12, %v10011_v20  ;;  %v6163_v20 = vmul.f32 %v8070_v24, %v10023_v39  ;;  %v6604_v12 = vld [vmem:[%s9375_s6] sm:$0xff] }
0x1269   : > { %v5776_v13 = vcombine.low %v5751_v53, %v5759_v5  ;;  %v5792_v14 = vcombine.low %v5767_v8, %v5775_v10  ;;  %v5777_v15 = vcombine.high %v5751_v53, %v5759_v5  ;;  %v5793_v16 = vcombine.high %v5767_v8, %v5775_v10 }
0x126b   : > { %v5784_v18 = vrot.slane %v5776_v13, %v9481_v11  ;;  %v5800_v19 = vrot.slane %v5792_v14, %v9481_v11  ;;  %v5791_v22 = vrot.slane %v5777_v15, %v9481_v11  ;;  %v5807_v26 = vrot.slane %v5793_v16, %v9481_v11  ;;  %v6605_v13 = vld [vmem:[%s9375_s6 + $0x8] sm:$0xff]  ;;  %v6606_v15 = vld [vmem:[%s9375_s6 + $0x10] sm:$0xff]  ;;  %v6607_v16 = vld [vmem:[%s9375_s6 + $0x18] sm:$0xff]  ;;  %s10285_s6 = scalar_lea.vmem [#allocation22], %s9316_s1 }
0x126c   : > { %v6161_v11 = vmul.f32 %v8068_v21, %v10019_v37  ;;  %v4021_v37 = vld [vmem:[%s9360_s26 + $0x8] sm:$0xff]  ;;  %s10283_s26 = scalar_lea.vmem [#allocation19], %s9316_s1  ;;  %v7882_v14 = vpack.c.bf16 %v6605_v13, %v6604_v12  ;;  %v7886_v59 = vpack.c.bf16 %v6607_v16, %v6606_v15  ;;  %v7384_v13 = vld [vmem:[%s10288_s14] ss:$0 sm:$0xff] }
0x126d   : > { %v5808_v28 = vcombine.low %v5784_v18, %v5800_v19  ;;  %v5809_v32 = vcombine.high %v5784_v18, %v5800_v19  ;;  %v5810_v33 = vcombine.low %v5791_v22, %v5807_v26  ;;  %v5811_v34 = vcombine.high %v5791_v22, %v5807_v26  ;;  %v7376_v27 = vld [vmem:[%s10283_s26] ss:$0 sm:$0xff] }
0x126e   : > { %v7874_v39 = vpack.c.bf16 %v4021_v37, %v4020_v58  ;;  %v6611_v58 = vld [vmem:[%s9421_s12 + $0x10] sm:$0xff]  ;;  %v6612_v37 = vld [vmem:[%s9421_s12 + $0x18] sm:$0xff] }
0x126f   : > { %7750 = vmatpush3.msra.mxu0 %v5808_v28  ;;  %7755 = vmatpush3.msra.mxu1 %v5809_v32  ;;  %v7379_v32 = vld [vmem:[%s10284_s27] ss:$0 sm:$0xff] }
0x1270   : > { %7752 = vmatmul.mubr.msk.f32.vlgmr.msra.gmra.mrb[30].mxu0 %vm2114_vm3, %v6157_v4  ;;  %7757 = vmatmul.mubr.msk.f32.vlgmr.msra.gmra.mrb[40].mxu1 %vm2114_vm3, %v6159_v30  ;;  %v7380_v4 = vld [vmem:[%s10285_s6] ss:$0 sm:$0xff] }
0x1271   : > { %7759 = vmatprep.subr.mxu0 %v8648_v56  ;;  %7764 = vmatprep.subr.mxu1 %v8648_v56 }
0x1272   : > { %7760 = vmatpush3.msra.mxu0 %v5810_v33  ;;  %7765 = vmatpush3.msra.mxu1 %v5811_v34 }
0x1273   : > { %7761 = vmatprep.mubr.msk.f32.mxu0 %vm8649_vm2, %v8648_v56  ;;  %7766 = vmatprep.mubr.msk.f32.mxu1 %vm8649_vm2, %v8648_v56 }
0x1274   : > { %7762 = vmatmul.mubr.msk.f32.vlgmr.msra.gmra.mrb[32].mxu0 %vm2114_vm3, %v6161_v11  ;;  %7767 = vmatmul.mubr.msk.f32.vlgmr.msra.gmra.mrb[42].mxu1 %vm2114_vm3, %v6163_v20 }
0x1275   : > { %7777 = vmatprep.mubr.msk.f32.mxu0 %vm1385_vm1, %v5373_v38  ;;  %7875 = vmatprep.subr.bf16.mxu0 %v7874_v39  ;;  %v7890_v38 = vpack.c.bf16 %v6610_v50, %v6609_v63 }
0x1276   : > { %7877 = vmatpush3.bf16.msra.mxu0 %v7874_v39  ;;  %7883 = vmatprep.subr.bf16.mxu1 %v7882_v14  ;;  %v7894_v39 = vpack.c.bf16 %v6612_v37, %v6611_v58 }
0x1277   : > { %7879 = vmatprep.subr.bf16.mxu0 %v7878_v42  ;;  %7885 = vmatpush3.bf16.msra.mxu1 %v7882_v14 }
0x1278   : > { %7887 = vmatprep.subr.bf16.mxu1 %v7886_v59 }
0x127a   : > { %7881 = vmatpush3.bf16.msra.mxu0 %v7878_v42  ;;  %v6615_v42 = vld [vmem:[%s9421_s12 + $0x30] sm:$0xff] }
0x127b   : > { %7889 = vmatpush3.bf16.msra.mxu1 %v7886_v59  ;;  %7891 = vmatprep.subr.bf16.mxu0 %v7890_v38 }
0x1343   : > { %v6233_v43 = vpop.f32.mrb[30].mxu0  ;;  %v6306_v56 = vpop.f32.mrb[40].mxu1 }
0x1344   : > { %6457 = vrot.lane.b32.xlu0 %v6306_v56, %s8652_s29  ;;  %v7753_v44 = vpop.f32.mrb[31].mxu0  ;;  %v7758_v61 = vpop.f32.mrb[41].mxu1  ;;  %v6616_v56 = vld [vmem:[%s9421_s12 + $0x38] sm:$0xff] }
0x1345   : > { %v7902_v44 = vpack.c.bf16 %v6616_v56, %v6615_v42  ;;  %v6617_v61 = vld [vmem:[%s9421_s12 + $0x40] sm:$0xff] }
0x1347   : > { %v6379_v45 = vpop.f32.mrb[32].mxu0  ;;  %v6452_v46 = vpop.f32.mrb[42].mxu1 }
0x1348   : > { %6465 = vrot.lane.b32.xlu1 %v6452_v46, %s8654_s5  ;;  %v7768_v47 = vpop.f32.mrb[43].mxu1  ;;  %6461 = vrot.lane.b32.xlu0 %v6379_v45, %s8653_s22  ;;  %v7763_v48 = vpop.f32.mrb[33].mxu0  ;;  %v6618_v45 = vld [vmem:[%s9421_s12 + $0x48] sm:$0xff] }
0x1349   : > { %v7906_v46 = vpack.c.bf16 %v6618_v45, %v6617_v61  ;;  %v6619_v47 = vld [vmem:[%s9421_s12 + $0x50] sm:$0xff]  ;;  %v6620_v48 = vld [vmem:[%s9421_s12 + $0x58] sm:$0xff]  ;;  %s10287_s12 = sld [smem:[#allocation42_spill]] }
0x134f   : > { %p7951_p2 = scmp.eq.s32.totalorder %s10287_s12, 1 }
0x1351   : > { %p8531_p1 = pnand %p8530_p3, %p7951_p2 }
0x1353   : > { %p8532_p5 = pneg %p8531_p1 }
0x1355   : > { %p8539_p10 = pnand %p8538_p8, %p8532_p5 }
0x13b6   : > { %v6458_v49 = vpop.permute.xlu0 %6457 }
0x13b7   : > { %v6468_v52 = vsel %vm2114_vm3, %v6233_v43, %v6458_v49  ;;  %v7898_v43 = vpack.c.bf16 %v6614_v41, %v6613_v40  ;;  %v7910_v49 = vpack.c.bf16 %v6620_v48, %v6619_v47 }
0x13ba   : > { %v6466_v55 = vpop.permute.xlu1 %6465  ;;  %v6462_v57 = vpop.permute.xlu0 %6461 }
0x13bb   : > { %v6469_v36 = vsel %vm2776_vm4, %v6468_v52, %v6462_v57  ;;  %v7381_v52 = vld [vmem:[%s10286_s13] ss:$0 sm:$0xff] }
0x13bc   : > { %v6470_v25 = vsel %vm2778_vm5, %v6469_v36, %v6466_v55 }
0x13bd   : > { %7778 = vmatmul.mubr.msk.f32.vlgmr.msra.gmra.mrb[34].mxu0 %vm1385_vm1, %v6470_v25 }
0x13be   : > { %7893 = vmatpush3.bf16.msra.mxu0 %v7890_v38 }
0x13bf   : > { %7895 = vmatprep.subr.bf16.mxu0 %v7894_v39 }
0x13c2   : > { %7897 = vmatpush3.bf16.msra.mxu0 %v7894_v39 }
0x13c3   : > { %7899 = vmatprep.subr.bf16.mxu0 %v7898_v43 }
0x13c6   : > { %7901 = vmatpush3.bf16.msra.mxu0 %v7898_v43 }
0x13c7   : > { %7903 = vmatprep.subr.bf16.mxu0 %v7902_v44 }
0x13ca   : > { %7905 = vmatpush3.bf16.msra.mxu0 %v7902_v44 }
0x13cb   : > { %7907 = vmatprep.subr.bf16.mxu0 %v7906_v46 }
0x13ce   : > { %7909 = vmatpush3.bf16.msra.mxu0 %v7906_v46 }
0x13cf   : > { %7911 = vmatprep.subr.bf16.mxu0 %v7910_v49 }
0x13d2   : > { %7913 = vmatpush3.bf16.msra.mxu0 %v7910_v49 }
0x1490   : > { %v7779_v60 = vpop.f32.mrb[34].mxu0 }
0x1491   : > { %v6555_v62 = vadd.f32 %v7779_v60, %v7376_v27  ;;  %v6549_v0 = vpop.f32.mrb[35].mxu0 }
0x1492   : > { %v6550_v1 = vadd.f32 %v7376_v27, %v6549_v0 }
0x1493   : > { %v10085_v2 = vadd.f32 %v6555_v62, %v9759_v29 }
0x1494   : > { %v10088_v31 = vadd.f32 %v6550_v1, %v9761_v51 }
0x1495   : > { %v6565_v54 = vsel %vm1385_vm1, %v10085_v2, 0.0 }
0x1496   : > { %6566 = vadd.xlane.f32.xlu1 %v6565_v54  ;;  %v6562_v3 = vsel %vm1385_vm1, %v10088_v31, 0.0 }
0x1497   : > { %6563 = vadd.xlane.f32.xlu0 %v6562_v3 }
0x1523   : > { %v6567_v6 = vpop.xlane.xlu1 %6566 }
0x1524   : > { %v6569_v7 = vmul.f32 0.03125, %v6567_v6  ;;  %v6564_v9 = vpop.xlane.xlu0 %6563 }
0x1525   : > { %v6568_v29 = vmul.f32 0.03125, %v6564_v9 }
0x1526   : > { %v6571_v23 = vsub.f32 %v10085_v2, %v6569_v7 }
0x1527   : > { %v6570_v51 = vsub.f32 %v10088_v31, %v6568_v29 }
0x1528   : > { %v6573_v8 = vmul.f32 %v6571_v23, %v6571_v23 }
0x1529   : > { %v6572_v53 = vmul.f32 %v6570_v51, %v6570_v51 }
0x152a   : > { %v6577_v10 = vsel %vm1385_vm1, %v6573_v8, 0.0 }
0x152b   : > { %v6574_v5 = vsel %vm1385_vm1, %v6572_v53, 0.0 }
0x152c   : > { %6575 = vadd.xlane.f32.xlu0 %v6574_v5 }
0x1530   : > { %6578 = vadd.xlane.f32.xlu0 %v6577_v10 }
0x15b9   : > { %v6576_v17 = vpop.xlane.xlu0 %6575 }
0x15ba   : > { %v6580_v18 = vmul.f32 0.03125, %v6576_v17 }
0x15bc   : > { %v6582_v19 = vadd.f32 1e-05, %v6580_v18 }
0x15bd   : > { %v6579_v21 = vpop.xlane.xlu0 %6578 }
0x15be   : > { %8071 = vrsqrt.f32 %v6582_v19  ;;  %v6581_v22 = vmul.f32 0.03125, %v6579_v21 }
0x15c0   : > { %v6583_v26 = vadd.f32 1e-05, %v6581_v22 }
0x15c2   : > { %8073 = vrsqrt.f32 %v6583_v26 }
0x15c8   : > { %v8072_v28 = vpop.eup %8071 }
0x15c9   : > { %v6586_v24 = vmul.f32 %v8072_v28, %v6570_v51 }
0x15cb   : > { %v6594_v30 = vmul.f32 %v7379_v32, %v6586_v24 }
0x15cc   : > { %v8074_v33 = vpop.eup %8073 }
0x15cd   : > { %v6587_v34 = vmul.f32 %v8074_v33, %v6571_v23  ;;  %v6602_v35 = vadd.f32 %v7380_v4, %v6594_v30 }
0x15cf   : > { %v6595_v11 = vmul.f32 %v7379_v32, %v6587_v34  ;;  %7788 = vmatprep.mubr.msk.f32.mxu1 %vm1385_vm1, %v6602_v35 }
0x15d1   : > { %v6603_v20 = vadd.f32 %v7380_v4, %v6595_v11 }
0x15d3   : > { %7789 = vmatmul.mubr.msk.f32.vlgmr.msra.gmra.mrb[44].mxu1 %vm1385_vm1, %v6603_v20 }
0x16a6   : > { %v7790_v55 = vpop.f32.mrb[44].mxu1 }
0x16a7   : > { %v6706_v57 = vadd.f32 %v7790_v55, %v7381_v52  ;;  %v6700_v36 = vpop.f32.mrb[45].mxu1 }
0x16a8   : > { %v6701_v25 = vadd.f32 %v7381_v52, %v6700_v36 }
0x16a9   : > { %v6712_v27 = vmul.f32 0.044715, %v6706_v57  ;;  %v6710_v8 = vmul.f32 0.5, %v6706_v57 }
0x16aa   : > { %v6711_v60 = vmul.f32 0.044715, %v6701_v25  ;;  %v6709_v53 = vmul.f32 0.5, %v6701_v25 }
0x16ab   : > { %v6714_v62 = vmul.f32 %v6712_v27, %v6706_v57 }
0x16ac   : > { %v6713_v0 = vmul.f32 %v6711_v60, %v6701_v25 }
0x16ad   : > { %v6716_v1 = vmul.f32 %v6714_v62, %v6706_v57 }
0x16ae   : > { %v6715_v54 = vmul.f32 %v6713_v0, %v6701_v25 }
0x16af   : > { %v6718_v3 = vadd.f32 %v6716_v1, %v6706_v57 }
0x16b0   : > { %v6717_v6 = vadd.f32 %v6715_v54, %v6701_v25 }
0x16b1   : > { %v6720_v7 = vmul.f32 0.7978846, %v6718_v3 }
0x16b2   : > { %v6719_v9 = vmul.f32 0.7978846, %v6717_v6 }
0x16b3   : > { %8075 = vtanh.f32 %v6720_v7 }
0x16b4   : > { %8077 = vtanh.f32 %v6719_v9 }
0x16bd   : > { %v8076_v29 = vpop.eup %8075 }
0x16be   : > { %v8078_v23 = vpop.eup %8077  ;;  %v6724_v51 = vadd.f32 1.0, %v8076_v29 }
0x16bf   : > { %v6723_v5 = vadd.f32 1.0, %v8078_v23 }
0x16c0   : > { %v6726_v12 = vmul.f32 %v6724_v51, %v6710_v8 }
0x16c1   : > { %v6725_v10 = vmul.f32 %v6723_v5, %v6709_v53 }
0x16c3   : > { %7815 = vmatprep.mubr.msk.f32.mxu0 %vm6733_vm6, %v6725_v10 }
0x16c4   : > { %7816 = vmatmul.mubr.msk.f32.vlgmr.msra.gmra.mrb[36].mxu0 %vm6733_vm6, %v6726_v12 }
0x1797   : > { %v7817_v14 = vpop.f32.mrb[36].mxu0 }
0x1798   : > { %v6812_v15 = vadd.f32 %v7817_v14, %v7384_v13  ;;  %v6806_v16 = vpop.f32.mrb[37].mxu0 }
0x1799   : > { %v6807_v59 = vadd.f32 %v7384_v13, %v6806_v16 }
0x179a   : > { %v6816_v17 = vadd.f32 %v6812_v15, %v10085_v2 }
0x179b   : > { %v6815_v18 = vadd.f32 %v6807_v59, %v10088_v31 }
0x179c   : > { %6818 = vst.msk [vmem:[#allocation28 + $0x8] sm:$0xff] %vm1385_vm1, %v6816_v17 }
0x179d   : > { %6817 = vst.msk [vmem:[#allocation28] sm:$0xff] %vm1385_vm1, %v6815_v18 }
0x179e   : > { %8542 = shalt.err (!%p8539_p10)
}
0x179f   : > { %s10289_s0 = sld [smem:[#allocation66_spill]] }
0x17a5   : > { %s8543_s11 = scalar_lea.hbm %s10289_s0, 256 }
0x17a6   : > { %p8544_p9 = scmp.ne.s32.totalorder %s10289_s0, %s8543_s11  ;;  %p8549_p0 = scmp.lt.u32.totalorder %s8543_s11, %s10289_s0 }
0x17a8   : > { %p8545_p12 = pnand %p8544_p9, %p7951_p2 }
0x17aa   : > { %p8546_p11 = pneg %p8545_p12 }
0x17ac   : > { %p8551_p4 = pnand %p8549_p0, %p8546_p11 }
0x17ae   : > { %8554 = shalt.err (!%p8551_p4)
}
0x17af   : > { %s8656_s10 = smov 128  }
0x17b0   : > { %7948 = dma.vmem_to_hbm [thread:$0]  (%p7951_p2), %s6826_s16, 256, %s10289_s0, [#allocation4], %s8656_s10, %s8656_s10, %s8652_s29  }
0x17b1   : > { %8608 = dma.done.wait (%p7951_p2), [#allocation4], 256  }
0x17b2   : > { %8610 = vsyncadd (%p7951_p2), [#allocation4], 4294967040 }
0x17b3 PF: > { %s10290_s28 = sld [smem:[#allocation43_spill]]  ;;  %s10291_s5 = sld [smem:[#allocation39_spill]] }
0x17b4   : > { %s10292_s26 = sld [smem:[#allocation40_spill]]  ;;  %s10293_s27 = sld [smem:[#allocation44_spill]] }
0x17b9   : > { %p59_p13 = scmp.ge.s32.totalorder %s10290_s28, 4  }
0x17bb   :  { %61 = sbr.rel (!%p59_p13) target bundleno = 42 (0x2a), region = 356 }
0x17c2   :  { %6841 = vsyncpa [#allocation3], 1 }
0x17c3   :  { %6843 = vsyncpa [#allocation3 + $0x1], 1 }
0x17c4   :  { %6844 = vsyncpa [#allocation6], 1 }
0x17c5   :  { %6846 = vsyncpa [#allocation6 + $0x1], 1 }
0x17c6   :  { %6847 = vsyncpa [#allocation9], 1 }
0x17c7   :  { %6849 = vsyncpa [#allocation9 + $0x1], 1 }
0x17c8   :  { %6850 = vsyncpa [#allocation12], 1 }
0x17c9   :  { %6852 = vsyncpa [#allocation12 + $0x1], 1 }
0x17ca   :  { %6853 = vsyncpa [#allocation15], 1 }
0x17cb   :  { %6855 = vsyncpa [#allocation15 + $0x1], 1 }
0x17cc   :  { %6856 = vsyncpa [#allocation18], 1 }
0x17cd   :  { %6858 = vsyncpa [#allocation18 + $0x1], 1 }
0x17ce   :  { %6859 = vsyncpa [#allocation21], 1 }
0x17cf   :  { %6861 = vsyncpa [#allocation21 + $0x1], 1 }
0x17d0   :  { %6862 = vsyncpa [#allocation24], 1 }
0x17d1   :  { %6864 = vsyncpa [#allocation24 + $0x1], 1 }
0x17d2   :  { %6865 = vsyncpa [#allocation27], 1 }
0x17d3   :  { %6867 = vsyncpa [#allocation27 + $0x1], 1 }
0x17d4   :  { %6868 = vsyncpa [#allocation4], 1 }
0x17d5   :  { %6870 = vsyncpa [#allocation4 + $0x1], 1 }

</bundles_post_ra>
